<compile_context>
chip_gen: v7x
topology: tpu7x:2x2x1
jax: 0.10.0
libtpu: 0.0.40
codegen_flags: <defaults>
</compile_context>

<pallas_src>
import functools

import jax
import jax.numpy as jnp
from jax import lax
from jax.experimental import pallas as pl
from jax.experimental.pallas import tpu as pltpu

EPS = 1e-5
LAYER_SIZES = [256, 128, 2]
IN_DIM = 512
PAD_OUT = 128  # lane-dense padding for the 2-wide final output


# ----------------------------- kernels ------------------------------------ #

def _row_mask(i, block_b, true_b):
    """(block_b, 1) bool mask selecting rows that belong to the real batch."""
    row = i * block_b + lax.broadcasted_iota(jnp.int32, (block_b, 1), 0)
    return row < true_b


def _stats_kernel(x_ref, sum_ref, sq_ref, *, true_b, block_b):
    """Accumulate per-feature sum and sum-of-squares of x over the batch."""
    i = pl.program_id(0)

    @pl.when(i == 0)
    def _():
        sum_ref[...] = jnp.zeros_like(sum_ref)
        sq_ref[...] = jnp.zeros_like(sq_ref)

    x = x_ref[...]
    xv = jnp.where(_row_mask(i, block_b, true_b), x, 0.0)
    sum_ref[...] += jnp.sum(xv, axis=0, keepdims=True)
    sq_ref[...] += jnp.sum(xv * xv, axis=0, keepdims=True)


def _linear_stats_kernel(x_ref, w_ref, b_ref, o_ref, sum_ref, sq_ref, *,
                         true_b, block_b, relu):
    """h = relu(x @ W_eff + b_eff); also accumulate sum/sumsq of h (next BN)."""
    i = pl.program_id(0)

    @pl.when(i == 0)
    def _():
        sum_ref[...] = jnp.zeros_like(sum_ref)
        sq_ref[...] = jnp.zeros_like(sq_ref)

    h = jnp.dot(x_ref[...].astype(jnp.bfloat16), w_ref[...],
                preferred_element_type=jnp.float32) + b_ref[...]
    if relu:
        h = jnp.maximum(h, 0.0)
    o_ref[...] = h

    hv = jnp.where(_row_mask(i, block_b, true_b), h, 0.0)
    sum_ref[...] += jnp.sum(hv, axis=0, keepdims=True)
    sq_ref[...] += jnp.sum(hv * hv, axis=0, keepdims=True)


def _linear_kernel(x_ref, w_ref, b_ref, o_ref, *, relu):
    """Final layer: h = x @ W_eff + b_eff (lane-dense padded output)."""
    h = jnp.dot(x_ref[...].astype(jnp.bfloat16), w_ref[...],
                preferred_element_type=jnp.float32) + b_ref[...]
    if relu:
        h = jnp.maximum(h, 0.0)
    o_ref[...] = h


# --------------------------- pallas_call wrappers -------------------------- #

def _stats_pass(x, *, true_b, block_b):
    bp, d = x.shape
    grid = (bp // block_b,)
    return pl.pallas_call(
        functools.partial(_stats_kernel, true_b=true_b, block_b=block_b),
        out_shape=(jax.ShapeDtypeStruct((1, d), jnp.float32),
                   jax.ShapeDtypeStruct((1, d), jnp.float32)),
        grid=grid,
        in_specs=[pl.BlockSpec((block_b, d), lambda i: (i, 0))],
        out_specs=(pl.BlockSpec((1, d), lambda i: (0, 0)),
                   pl.BlockSpec((1, d), lambda i: (0, 0))),
        compiler_params=pltpu.CompilerParams(
            dimension_semantics=("arbitrary",)),
    )(x)


def _linear_stats_pass(x, w, b, *, relu, true_b, block_b):
    bp, d_in = x.shape
    d_out = w.shape[1]
    grid = (bp // block_b,)
    return pl.pallas_call(
        functools.partial(_linear_stats_kernel, true_b=true_b,
                          block_b=block_b, relu=relu),
        out_shape=(jax.ShapeDtypeStruct((bp, d_out), jnp.float32),
                   jax.ShapeDtypeStruct((1, d_out), jnp.float32),
                   jax.ShapeDtypeStruct((1, d_out), jnp.float32)),
        grid=grid,
        in_specs=[pl.BlockSpec((block_b, d_in), lambda i: (i, 0)),
                  pl.BlockSpec((d_in, d_out), lambda i: (0, 0)),
                  pl.BlockSpec((1, d_out), lambda i: (0, 0))],
        out_specs=(pl.BlockSpec((block_b, d_out), lambda i: (i, 0)),
                   pl.BlockSpec((1, d_out), lambda i: (0, 0)),
                   pl.BlockSpec((1, d_out), lambda i: (0, 0))),
        compiler_params=pltpu.CompilerParams(
            dimension_semantics=("arbitrary",)),  # stats accumulator revisits block
    )(x, w, b)


def _linear_pass(x, w, b, *, relu, block_b):
    bp, d_in = x.shape
    d_out = w.shape[1]
    grid = (bp // block_b,)
    return pl.pallas_call(
        functools.partial(_linear_kernel, relu=relu),
        out_shape=jax.ShapeDtypeStruct((bp, d_out), jnp.float32),
        grid=grid,
        in_specs=[pl.BlockSpec((block_b, d_in), lambda i: (i, 0)),
                  pl.BlockSpec((d_in, d_out), lambda i: (0, 0)),
                  pl.BlockSpec((1, d_out), lambda i: (0, 0))],
        out_specs=pl.BlockSpec((block_b, d_out), lambda i: (i, 0)),
        compiler_params=pltpu.CompilerParams(
            dimension_semantics=("parallel",)),  # shardable across v7x TCs
    )(x, w, b)


# ----------------------------- forward pass -------------------------------- #

def _fold_bn(gamma, beta, w, b, s, sq, n):
    """Fold training-mode BN into the following Linear (all math in f32)."""
    mean = s / n
    var = sq / n - mean * mean                 # biased variance (BN training)
    inv_std = lax.rsqrt(var + EPS)
    scale = gamma * inv_std                    # (1, D_in)
    shift = beta - mean * scale                # (1, D_in)
    w_eff = (w * scale.reshape(-1, 1)).astype(jnp.bfloat16)   # (D_in, D_out)
    b_eff = b + shift @ w                      # (1, D_out), f32
    return w_eff, b_eff


def generic_net_forward(x, params, *, block_b=512):
    """x: (B, 512) float32.  params: flat [gamma, beta, W(in,out), b] * layers."""
    B, d = x.shape
    assert d == IN_DIM

    # Batch tile size: multiple of 8 sublanes, no larger than needed.
    block_b = max(8, min(block_b, B))
    block_b = ((block_b + 7) // 8) * 8
    bp = ((B + block_b - 1) // block_b) * block_b
    if bp != B:
        x = jnp.pad(x, ((0, bp - B), (0, 0)))   # padded rows masked out of stats

    # Stats of the raw input (first BN). Hidden-layer stats are produced by
    # the fused linear+stats kernels below.
    s, sq = _stats_pass(x, true_b=B, block_b=block_b)

    h = x
    n_layers = len(LAYER_SIZES)
    for li in range(n_layers):
        gamma, beta, w, b = params[4 * li: 4 * li + 4]
        last = li == n_layers - 1
        if last:
            pad_n = PAD_OUT - w.shape[1]
            if pad_n > 0:   # zero-pad final projection to a lane-dense width
                w = jnp.pad(w, ((0, 0), (0, pad_n)))
                b = jnp.pad(b, ((0, 0), (0, pad_n)))
        w_eff, b_eff = _fold_bn(gamma, beta, w, b, s, sq, B)
        if not last:
            h, s, sq = _linear_stats_pass(h, w_eff, b_eff, relu=True,
                                          true_b=B, block_b=block_b)
        else:
            h = _linear_pass(h, w_eff, b_eff, relu=False, block_b=block_b)

    return h[:B, :LAYER_SIZES[-1]]


# ------------------------------ references --------------------------------- #

def init_params(key):
    """Deterministic parameter init (shapes match the PyTorch module)."""
    params = []
    prev = IN_DIM
    for size in LAYER_SIZES:
        key, kg, kb, kw, kc = jax.random.split(key, 5)
        gamma = 1.0 + 0.1 * jax.random.normal(kg, (1, prev), jnp.float32)
        beta = 0.1 * jax.random.normal(kb, (1, prev), jnp.float32)
        bound = 1.0 / (prev ** 0.5)
        # PyTorch Linear weight is (out, in); store transposed (in, out).
        w = jax.random.uniform(kw, (prev, size), jnp.float32, -bound, bound)
        b = jax.random.uniform(kc, (1, size), jnp.float32, -bound, bound)
        params += [gamma, beta, w, b]
        prev = size
    return params


def reference_forward(x, params):
    """Pure-f32 reference with PyTorch semantics (training-mode BN)."""
    h = x
    n_layers = len(LAYER_SIZES)
    for i in range(n_layers):
        gamma, beta, w, b = params[4 * i: 4 * i + 4]
        mean = jnp.mean(h, axis=0, keepdims=True)
        var = jnp.mean((h - mean) ** 2, axis=0, keepdims=True)
        h = (h - mean) * lax.rsqrt(var + EPS) * gamma + beta
        h = h @ w + b
        if i != n_layers - 1:
            h = jnp.maximum(h, 0.0)
    return h


def mirrored_reference(x, params):
    """Reference mirroring the kernel's numerics (folded BN, bf16 matmul ops)."""
    h = x
    n = x.shape[0]
    n_layers = len(LAYER_SIZES)
    for i in range(n_layers):
        gamma, beta, w, b = params[4 * i: 4 * i + 4]
        s = jnp.sum(h, axis=0, keepdims=True)
        sq = jnp.sum(h * h, axis=0, keepdims=True)
        w_eff, b_eff = _fold_bn(gamma, beta, w, b, s, sq, n)
        h = jnp.dot(h.astype(jnp.bfloat16), w_eff,
                    preferred_element_type=jnp.float32) + b_eff
        if i != n_layers - 1:
            h = jnp.maximum(h, 0.0)
    return h


if __name__ == "__main__":
    key = jax.random.PRNGKey(0)
    kx, kp = jax.random.split(key)
    B = 256
    x = jax.random.normal(kx, (B, IN_DIM), jnp.float32)
    params = init_params(kp)

    fwd = jax.jit(generic_net_forward, static_argnames=("block_b",))
    out = fwd(x, params, block_b=128)        # 2 batch tiles: exercises tiling
    out = jax.block_until_ready(out)
    assert out.shape == (B, LAYER_SIZES[-1])

    # Strict check vs a reference with identical numerics (bf16 matmul operands).
    ref_mirror = mirrored_reference(x, params)
    assert jnp.allclose(out, ref_mirror, atol=2e-3, rtol=2e-3), \
        "mismatch vs mirrored reference"

    # Semantic check vs the pure-f32 PyTorch-equivalent forward.
    ref_f32 = reference_forward(x, params)
    assert jnp.allclose(out, ref_f32, atol=5e-2, rtol=5e-2), \
        "mismatch vs f32 reference"

    print("KERNEL_OK")
</pallas_src>

<mosaic_0001>
module attributes {stable_mosaic.version = 11 : i64} {
  func.func @_stats_kernel(%arg0: i32, %arg1: memref<128x512xf32, #tpu.memory_space<vmem>>, %arg2: memref<1x512xf32, #tpu.memory_space<vmem>>, %arg3: memref<1x512xf32, #tpu.memory_space<vmem>>) attributes {dimension_semantics = [#tpu.dimension_semantics<arbitrary>], iteration_bounds = array<i64: 2>, scalar_prefetch = 0 : i64, scratch_operands = 0 : i64, tpu.core_type = #tpu.core_type<tc>, window_params = [{transform_indices = @transform_0, window_bounds = array<i64: 128, 512>}, {pipeline_mode = #tpu.pipeline_mode<synchronous>, transform_indices = @transform_1, window_bounds = array<i64: 1, 512>}, {pipeline_mode = #tpu.pipeline_mode<synchronous>, transform_indices = @transform_2, window_bounds = array<i64: 1, 512>}]} {
    %c0_i32 = arith.constant 0 : i32
    %0 = arith.cmpi eq, %arg0, %c0_i32 : i32
    %1 = arith.extui %0 : i1 to i32
    %c0_i32_0 = arith.constant 0 : i32
    %2 = arith.cmpi ne, %1, %c0_i32_0 : i32
    scf.if %2 {
      %cst_12 = arith.constant 0.000000e+00 : f32
      %25 = vector.broadcast %cst_12 : f32 to vector<1x512xf32>
      %c0_13 = arith.constant 0 : index
      %c0_14 = arith.constant 0 : index
      %26 = vector.load %arg2[%c0_13, %c0_14] : memref<1x512xf32, #tpu.memory_space<vmem>>, vector<1x512xf32>
      tpu.vector_store %arg2[%c0_13, %c0_14], %25 {strides = array<i32>} : memref<1x512xf32, #tpu.memory_space<vmem>>, vector<1x512xf32>,
      %cst_15 = arith.constant 0.000000e+00 : f32
      %27 = vector.broadcast %cst_15 : f32 to vector<1x512xf32>
      %c0_16 = arith.constant 0 : index
      %c0_17 = arith.constant 0 : index
      %28 = vector.load %arg3[%c0_16, %c0_17] : memref<1x512xf32, #tpu.memory_space<vmem>>, vector<1x512xf32>
      tpu.vector_store %arg3[%c0_16, %c0_17], %27 {strides = array<i32>} : memref<1x512xf32, #tpu.memory_space<vmem>>, vector<1x512xf32>,
    } else {
    }
    %c0 = arith.constant 0 : index
    %c0_1 = arith.constant 0 : index
    %3 = vector.load %arg1[%c0, %c0_1] : memref<128x512xf32, #tpu.memory_space<vmem>>, vector<128x512xf32>
    %c128_i32 = arith.constant 128 : i32
    %4 = arith.muli %arg0, %c128_i32 : i32
    %5 = tpu.iota {dimensions = array<i32: 0>} : vector<128x1xi32>
    %6 = vector.broadcast %4 : i32 to vector<128x1xi32>
    %7 = arith.addi %6, %5 : vector<128x1xi32>
    %c256_i32 = arith.constant 256 : i32
    %8 = vector.broadcast %c256_i32 : i32 to vector<128x1xi32>
    %9 = arith.cmpi slt, %7, %8 : vector<128x1xi32>
    %cst = arith.constant 0.000000e+00 : f32
    %10 = vector.shape_cast %9 : vector<128x1xi1> to vector<128x1xi1>
    %11 = vector.broadcast %10 : vector<128x1xi1> to vector<128x512xi1>
    %12 = vector.broadcast %cst : f32 to vector<128x512xf32>
    %13 = arith.select %11, %3, %12 : vector<128x512xi1>, vector<128x512xf32>
    %c0_2 = arith.constant 0 : index
    %c0_3 = arith.constant 0 : index
    %14 = vector.load %arg2[%c0_2, %c0_3] : memref<1x512xf32, #tpu.memory_space<vmem>>, vector<1x512xf32>
    %cst_4 = arith.constant dense<0.000000e+00> : vector<512xf32>
    %15 = vector.multi_reduction <add>, %13, %cst_4 [0] : vector<128x512xf32> to vector<512xf32>
    %16 = vector.shape_cast %15 : vector<512xf32> to vector<1x512xf32>
    %17 = arith.addf %14, %16 : vector<1x512xf32>
    %c0_5 = arith.constant 0 : index
    %c0_6 = arith.constant 0 : index
    %18 = vector.load %arg2[%c0_5, %c0_6] : memref<1x512xf32, #tpu.memory_space<vmem>>, vector<1x512xf32>
    tpu.vector_store %arg2[%c0_5, %c0_6], %17 {strides = array<i32>} : memref<1x512xf32, #tpu.memory_space<vmem>>, vector<1x512xf32>,
    %c0_7 = arith.constant 0 : index
    %c0_8 = arith.constant 0 : index
    %19 = vector.load %arg3[%c0_7, %c0_8] : memref<1x512xf32, #tpu.memory_space<vmem>>, vector<1x512xf32>
    %20 = arith.mulf %13, %13 : vector<128x512xf32>
    %cst_9 = arith.constant dense<0.000000e+00> : vector<512xf32>
    %21 = vector.multi_reduction <add>, %20, %cst_9 [0] : vector<128x512xf32> to vector<512xf32>
    %22 = vector.shape_cast %21 : vector<512xf32> to vector<1x512xf32>
    %23 = arith.addf %19, %22 : vector<1x512xf32>
    %c0_10 = arith.constant 0 : index
    %c0_11 = arith.constant 0 : index
    %24 = vector.load %arg3[%c0_10, %c0_11] : memref<1x512xf32, #tpu.memory_space<vmem>>, vector<1x512xf32>
    tpu.vector_store %arg3[%c0_10, %c0_11], %23 {strides = array<i32>} : memref<1x512xf32, #tpu.memory_space<vmem>>, vector<1x512xf32>,
    return
  }
  func.func @transform_0(%arg0: i32) -> (i32, i32) {
    %c0_i32 = arith.constant 0 : i32
    %c0_i32_0 = arith.constant 0 : i32
    return %arg0, %c0_i32 : i32, i32
  }
  func.func @transform_1(%arg0: i32) -> (i32, i32) {
    %c0_i32 = arith.constant 0 : i32
    %c0_i32_0 = arith.constant 0 : i32
    %c0_i32_1 = arith.constant 0 : i32
    return %c0_i32, %c0_i32_0 : i32, i32
  }
  func.func @transform_2(%arg0: i32) -> (i32, i32) {
    %c0_i32 = arith.constant 0 : i32
    %c0_i32_0 = arith.constant 0 : i32
    %c0_i32_1 = arith.constant 0 : i32
    return %c0_i32, %c0_i32_0 : i32, i32
  }
}

module attributes {stable_mosaic.version = 11 : i64} {
  func.func @_linear_stats_kernel(%arg0: i32, %arg1: memref<128x512xf32, #tpu.memory_space<vmem>>, %arg2: memref<512x256xbf16, #tpu.memory_space<vmem>>, %arg3: memref<1x256xf32, #tpu.memory_space<vmem>>, %arg4: memref<128x256xf32, #tpu.memory_space<vmem>>, %arg5: memref<1x256xf32, #tpu.memory_space<vmem>>, %arg6: memref<1x256xf32, #tpu.memory_space<vmem>>) attributes {dimension_semantics = [#tpu.dimension_semantics<arbitrary>], iteration_bounds = array<i64: 2>, scalar_prefetch = 0 : i64, scratch_operands = 0 : i64, tpu.core_type = #tpu.core_type<tc>, window_params = [{transform_indices = @transform_0, window_bounds = array<i64: 128, 512>}, {pipeline_mode = #tpu.pipeline_mode<synchronous>, transform_indices = @transform_1, window_bounds = array<i64: 512, 256>}, {pipeline_mode = #tpu.pipeline_mode<synchronous>, transform_indices = @transform_2, window_bounds = array<i64: 1, 256>}, {transform_indices = @transform_3, window_bounds = array<i64: 128, 256>}, {pipeline_mode = #tpu.pipeline_mode<synchronous>, transform_indices = @transform_4, window_bounds = array<i64: 1, 256>}, {pipeline_mode = #tpu.pipeline_mode<synchronous>, transform_indices = @transform_5, window_bounds = array<i64: 1, 256>}]} {
    %c0_i32 = arith.constant 0 : i32
    %0 = arith.cmpi eq, %arg0, %c0_i32 : i32
    %1 = arith.extui %0 : i1 to i32
    %c0_i32_0 = arith.constant 0 : i32
    %2 = arith.cmpi ne, %1, %c0_i32_0 : i32
    scf.if %2 {
      %cst_20 = arith.constant 0.000000e+00 : f32
      %34 = vector.broadcast %cst_20 : f32 to vector<1x256xf32>
      %c0_21 = arith.constant 0 : index
      %c0_22 = arith.constant 0 : index
      %35 = vector.load %arg5[%c0_21, %c0_22] : memref<1x256xf32, #tpu.memory_space<vmem>>, vector<1x256xf32>
      tpu.vector_store %arg5[%c0_21, %c0_22], %34 {strides = array<i32>} : memref<1x256xf32, #tpu.memory_space<vmem>>, vector<1x256xf32>,
      %cst_23 = arith.constant 0.000000e+00 : f32
      %36 = vector.broadcast %cst_23 : f32 to vector<1x256xf32>
      %c0_24 = arith.constant 0 : index
      %c0_25 = arith.constant 0 : index
      %37 = vector.load %arg6[%c0_24, %c0_25] : memref<1x256xf32, #tpu.memory_space<vmem>>, vector<1x256xf32>
      tpu.vector_store %arg6[%c0_24, %c0_25], %36 {strides = array<i32>} : memref<1x256xf32, #tpu.memory_space<vmem>>, vector<1x256xf32>,
    } else {
    }
    %c0 = arith.constant 0 : index
    %c0_1 = arith.constant 0 : index
    %3 = vector.load %arg1[%c0, %c0_1] : memref<128x512xf32, #tpu.memory_space<vmem>>, vector<128x512xf32>
    %4 = arith.truncf %3 : vector<128x512xf32> to vector<128x512xbf16>
    %c0_2 = arith.constant 0 : index
    %c0_3 = arith.constant 0 : index
    %5 = vector.load %arg2[%c0_2, %c0_3] : memref<512x256xbf16, #tpu.memory_space<vmem>>, vector<512x256xbf16>
    %cst = arith.constant dense<0.000000e+00> : vector<128x256xf32>
    %6 = tpu.matmul %4, %5, %cst {dimension_numbers = #tpu.dot_dimension_numbers<[1], [0], [0], [1], [0, 0, 1, 1], [], []>} : vector<128x512xbf16>, vector<512x256xbf16>, vector<128x256xf32> -> vector<128x256xf32>
    %c0_4 = arith.constant 0 : index
    %c0_5 = arith.constant 0 : index
    %7 = vector.load %arg3[%c0_4, %c0_5] : memref<1x256xf32, #tpu.memory_space<vmem>>, vector<1x256xf32>
    %8 = vector.broadcast %7 : vector<1x256xf32> to vector<128x256xf32>
    %9 = arith.addf %6, %8 : vector<128x256xf32>
    %cst_6 = arith.constant 0.000000e+00 : f32
    %10 = vector.broadcast %cst_6 : f32 to vector<128x256xf32>
    %11 = arith.maximumf %9, %10 : vector<128x256xf32>
    %c0_7 = arith.constant 0 : index
    %c0_8 = arith.constant 0 : index
    %12 = vector.load %arg4[%c0_7, %c0_8] : memref<128x256xf32, #tpu.memory_space<vmem>>, vector<128x256xf32>
    tpu.vector_store %arg4[%c0_7, %c0_8], %11 {strides = array<i32>} : memref<128x256xf32, #tpu.memory_space<vmem>>, vector<128x256xf32>,
    %c128_i32 = arith.constant 128 : i32
    %13 = arith.muli %arg0, %c128_i32 : i32
    %14 = tpu.iota {dimensions = array<i32: 0>} : vector<128x1xi32>
    %15 = vector.broadcast %13 : i32 to vector<128x1xi32>
    %16 = arith.addi %15, %14 : vector<128x1xi32>
    %c256_i32 = arith.constant 256 : i32
    %17 = vector.broadcast %c256_i32 : i32 to vector<128x1xi32>
    %18 = arith.cmpi slt, %16, %17 : vector<128x1xi32>
    %cst_9 = arith.constant 0.000000e+00 : f32
    %19 = vector.shape_cast %18 : vector<128x1xi1> to vector<128x1xi1>
    %20 = vector.broadcast %19 : vector<128x1xi1> to vector<128x256xi1>
    %21 = vector.broadcast %cst_9 : f32 to vector<128x256xf32>
    %22 = arith.select %20, %11, %21 : vector<128x256xi1>, vector<128x256xf32>
    %c0_10 = arith.constant 0 : index
    %c0_11 = arith.constant 0 : index
    %23 = vector.load %arg5[%c0_10, %c0_11] : memref<1x256xf32, #tpu.memory_space<vmem>>, vector<1x256xf32>
    %cst_12 = arith.constant dense<0.000000e+00> : vector<256xf32>
    %24 = vector.multi_reduction <add>, %22, %cst_12 [0] : vector<128x256xf32> to vector<256xf32>
    %25 = vector.shape_cast %24 : vector<256xf32> to vector<1x256xf32>
    %26 = arith.addf %23, %25 : vector<1x256xf32>
    %c0_13 = arith.constant 0 : index
    %c0_14 = arith.constant 0 : index
    %27 = vector.load %arg5[%c0_13, %c0_14] : memref<1x256xf32, #tpu.memory_space<vmem>>, vector<1x256xf32>
    tpu.vector_store %arg5[%c0_13, %c0_14], %26 {strides = array<i32>} : memref<1x256xf32, #tpu.memory_space<vmem>>, vector<1x256xf32>,
    %c0_15 = arith.constant 0 : index
    %c0_16 = arith.constant 0 : index
    %28 = vector.load %arg6[%c0_15, %c0_16] : memref<1x256xf32, #tpu.memory_space<vmem>>, vector<1x256xf32>
    %29 = arith.mulf %22, %22 : vector<128x256xf32>
    %cst_17 = arith.constant dense<0.000000e+00> : vector<256xf32>
    %30 = vector.multi_reduction <add>, %29, %cst_17 [0] : vector<128x256xf32> to vector<256xf32>
    %31 = vector.shape_cast %30 : vector<256xf32> to vector<1x256xf32>
    %32 = arith.addf %28, %31 : vector<1x256xf32>
    %c0_18 = arith.constant 0 : index
    %c0_19 = arith.constant 0 : index
    %33 = vector.load %arg6[%c0_18, %c0_19] : memref<1x256xf32, #tpu.memory_space<vmem>>, vector<1x256xf32>
    tpu.vector_store %arg6[%c0_18, %c0_19], %32 {strides = array<i32>} : memref<1x256xf32, #tpu.memory_space<vmem>>, vector<1x256xf32>,
    return
  }
  func.func @transform_0(%arg0: i32) -> (i32, i32) {
    %c0_i32 = arith.constant 0 : i32
    %c0_i32_0 = arith.constant 0 : i32
    return %arg0, %c0_i32 : i32, i32
  }
  func.func @transform_1(%arg0: i32) -> (i32, i32) {
    %c0_i32 = arith.constant 0 : i32
    %c0_i32_0 = arith.constant 0 : i32
    %c0_i32_1 = arith.constant 0 : i32
    return %c0_i32, %c0_i32_0 : i32, i32
  }
  func.func @transform_2(%arg0: i32) -> (i32, i32) {
    %c0_i32 = arith.constant 0 : i32
    %c0_i32_0 = arith.constant 0 : i32
    %c0_i32_1 = arith.constant 0 : i32
    return %c0_i32, %c0_i32_0 : i32, i32
  }
  func.func @transform_3(%arg0: i32) -> (i32, i32) {
    %c0_i32 = arith.constant 0 : i32
    %c0_i32_0 = arith.constant 0 : i32
    return %arg0, %c0_i32 : i32, i32
  }
  func.func @transform_4(%arg0: i32) -> (i32, i32) {
    %c0_i32 = arith.constant 0 : i32
    %c0_i32_0 = arith.constant 0 : i32
    %c0_i32_1 = arith.constant 0 : i32
    return %c0_i32, %c0_i32_0 : i32, i32
  }
  func.func @transform_5(%arg0: i32) -> (i32, i32) {
    %c0_i32 = arith.constant 0 : i32
    %c0_i32_0 = arith.constant 0 : i32
    %c0_i32_1 = arith.constant 0 : i32
    return %c0_i32, %c0_i32_0 : i32, i32
  }
}

module attributes {stable_mosaic.version = 11 : i64} {
  func.func @_linear_stats_kernel(%arg0: i32, %arg1: memref<128x256xf32, #tpu.memory_space<vmem>>, %arg2: memref<256x128xbf16, #tpu.memory_space<vmem>>, %arg3: memref<1x128xf32, #tpu.memory_space<vmem>>, %arg4: memref<128x128xf32, #tpu.memory_space<vmem>>, %arg5: memref<1x128xf32, #tpu.memory_space<vmem>>, %arg6: memref<1x128xf32, #tpu.memory_space<vmem>>) attributes {dimension_semantics = [#tpu.dimension_semantics<arbitrary>], iteration_bounds = array<i64: 2>, scalar_prefetch = 0 : i64, scratch_operands = 0 : i64, tpu.core_type = #tpu.core_type<tc>, window_params = [{transform_indices = @transform_0, window_bounds = array<i64: 128, 256>}, {pipeline_mode = #tpu.pipeline_mode<synchronous>, transform_indices = @transform_1, window_bounds = array<i64: 256, 128>}, {pipeline_mode = #tpu.pipeline_mode<synchronous>, transform_indices = @transform_2, window_bounds = array<i64: 1, 128>}, {transform_indices = @transform_3, window_bounds = array<i64: 128, 128>}, {pipeline_mode = #tpu.pipeline_mode<synchronous>, transform_indices = @transform_4, window_bounds = array<i64: 1, 128>}, {pipeline_mode = #tpu.pipeline_mode<synchronous>, transform_indices = @transform_5, window_bounds = array<i64: 1, 128>}]} {
    %c0_i32 = arith.constant 0 : i32
    %0 = arith.cmpi eq, %arg0, %c0_i32 : i32
    %1 = arith.extui %0 : i1 to i32
    %c0_i32_0 = arith.constant 0 : i32
    %2 = arith.cmpi ne, %1, %c0_i32_0 : i32
    scf.if %2 {
      %cst_20 = arith.constant 0.000000e+00 : f32
      %34 = vector.broadcast %cst_20 : f32 to vector<1x128xf32>
      %c0_21 = arith.constant 0 : index
      %c0_22 = arith.constant 0 : index
      %35 = vector.load %arg5[%c0_21, %c0_22] : memref<1x128xf32, #tpu.memory_space<vmem>>, vector<1x128xf32>
      tpu.vector_store %arg5[%c0_21, %c0_22], %34 {strides = array<i32>} : memref<1x128xf32, #tpu.memory_space<vmem>>, vector<1x128xf32>,
      %cst_23 = arith.constant 0.000000e+00 : f32
      %36 = vector.broadcast %cst_23 : f32 to vector<1x128xf32>
      %c0_24 = arith.constant 0 : index
      %c0_25 = arith.constant 0 : index
      %37 = vector.load %arg6[%c0_24, %c0_25] : memref<1x128xf32, #tpu.memory_space<vmem>>, vector<1x128xf32>
      tpu.vector_store %arg6[%c0_24, %c0_25], %36 {strides = array<i32>} : memref<1x128xf32, #tpu.memory_space<vmem>>, vector<1x128xf32>,
    } else {
    }
    %c0 = arith.constant 0 : index
    %c0_1 = arith.constant 0 : index
    %3 = vector.load %arg1[%c0, %c0_1] : memref<128x256xf32, #tpu.memory_space<vmem>>, vector<128x256xf32>
    %4 = arith.truncf %3 : vector<128x256xf32> to vector<128x256xbf16>
    %c0_2 = arith.constant 0 : index
    %c0_3 = arith.constant 0 : index
    %5 = vector.load %arg2[%c0_2, %c0_3] : memref<256x128xbf16, #tpu.memory_space<vmem>>, vector<256x128xbf16>
    %cst = arith.constant dense<0.000000e+00> : vector<128x128xf32>
    %6 = tpu.matmul %4, %5, %cst {dimension_numbers = #tpu.dot_dimension_numbers<[1], [0], [0], [1], [0, 0, 1, 1], [], []>} : vector<128x256xbf16>, vector<256x128xbf16>, vector<128x128xf32> -> vector<128x128xf32>
    %c0_4 = arith.constant 0 : index
    %c0_5 = arith.constant 0 : index
    %7 = vector.load %arg3[%c0_4, %c0_5] : memref<1x128xf32, #tpu.memory_space<vmem>>, vector<1x128xf32>
    %8 = vector.broadcast %7 : vector<1x128xf32> to vector<128x128xf32>
    %9 = arith.addf %6, %8 : vector<128x128xf32>
    %cst_6 = arith.constant 0.000000e+00 : f32
    %10 = vector.broadcast %cst_6 : f32 to vector<128x128xf32>
    %11 = arith.maximumf %9, %10 : vector<128x128xf32>
    %c0_7 = arith.constant 0 : index
    %c0_8 = arith.constant 0 : index
    %12 = vector.load %arg4[%c0_7, %c0_8] : memref<128x128xf32, #tpu.memory_space<vmem>>, vector<128x128xf32>
    tpu.vector_store %arg4[%c0_7, %c0_8], %11 {strides = array<i32>} : memref<128x128xf32, #tpu.memory_space<vmem>>, vector<128x128xf32>,
    %c128_i32 = arith.constant 128 : i32
    %13 = arith.muli %arg0, %c128_i32 : i32
    %14 = tpu.iota {dimensions = array<i32: 0>} : vector<128x1xi32>
    %15 = vector.broadcast %13 : i32 to vector<128x1xi32>
    %16 = arith.addi %15, %14 : vector<128x1xi32>
    %c256_i32 = arith.constant 256 : i32
    %17 = vector.broadcast %c256_i32 : i32 to vector<128x1xi32>
    %18 = arith.cmpi slt, %16, %17 : vector<128x1xi32>
    %cst_9 = arith.constant 0.000000e+00 : f32
    %19 = vector.shape_cast %18 : vector<128x1xi1> to vector<128x1xi1>
    %20 = vector.broadcast %19 : vector<128x1xi1> to vector<128x128xi1>
    %21 = vector.broadcast %cst_9 : f32 to vector<128x128xf32>
    %22 = arith.select %20, %11, %21 : vector<128x128xi1>, vector<128x128xf32>
    %c0_10 = arith.constant 0 : index
    %c0_11 = arith.constant 0 : index
    %23 = vector.load %arg5[%c0_10, %c0_11] : memref<1x128xf32, #tpu.memory_space<vmem>>, vector<1x128xf32>
    %cst_12 = arith.constant dense<0.000000e+00> : vector<128xf32>
    %24 = vector.multi_reduction <add>, %22, %cst_12 [0] : vector<128x128xf32> to vector<128xf32>
    %25 = vector.shape_cast %24 : vector<128xf32> to vector<1x128xf32>
    %26 = arith.addf %23, %25 : vector<1x128xf32>
    %c0_13 = arith.constant 0 : index
    %c0_14 = arith.constant 0 : index
    %27 = vector.load %arg5[%c0_13, %c0_14] : memref<1x128xf32, #tpu.memory_space<vmem>>, vector<1x128xf32>
    tpu.vector_store %arg5[%c0_13, %c0_14], %26 {strides = array<i32>} : memref<1x128xf32, #tpu.memory_space<vmem>>, vector<1x128xf32>,
    %c0_15 = arith.constant 0 : index
    %c0_16 = arith.constant 0 : index
    %28 = vector.load %arg6[%c0_15, %c0_16] : memref<1x128xf32, #tpu.memory_space<vmem>>, vector<1x128xf32>
    %29 = arith.mulf %22, %22 : vector<128x128xf32>
    %cst_17 = arith.constant dense<0.000000e+00> : vector<128xf32>
    %30 = vector.multi_reduction <add>, %29, %cst_17 [0] : vector<128x128xf32> to vector<128xf32>
    %31 = vector.shape_cast %30 : vector<128xf32> to vector<1x128xf32>
    %32 = arith.addf %28, %31 : vector<1x128xf32>
    %c0_18 = arith.constant 0 : index
    %c0_19 = arith.constant 0 : index
    %33 = vector.load %arg6[%c0_18, %c0_19] : memref<1x128xf32, #tpu.memory_space<vmem>>, vector<1x128xf32>
    tpu.vector_store %arg6[%c0_18, %c0_19], %32 {strides = array<i32>} : memref<1x128xf32, #tpu.memory_space<vmem>>, vector<1x128xf32>,
    return
  }
  func.func @transform_0(%arg0: i32) -> (i32, i32) {
    %c0_i32 = arith.constant 0 : i32
    %c0_i32_0 = arith.constant 0 : i32
    return %arg0, %c0_i32 : i32, i32
  }
  func.func @transform_1(%arg0: i32) -> (i32, i32) {
    %c0_i32 = arith.constant 0 : i32
    %c0_i32_0 = arith.constant 0 : i32
    %c0_i32_1 = arith.constant 0 : i32
    return %c0_i32, %c0_i32_0 : i32, i32
  }
  func.func @transform_2(%arg0: i32) -> (i32, i32) {
    %c0_i32 = arith.constant 0 : i32
    %c0_i32_0 = arith.constant 0 : i32
    %c0_i32_1 = arith.constant 0 : i32
    return %c0_i32, %c0_i32_0 : i32, i32
  }
  func.func @transform_3(%arg0: i32) -> (i32, i32) {
    %c0_i32 = arith.constant 0 : i32
    %c0_i32_0 = arith.constant 0 : i32
    return %arg0, %c0_i32 : i32, i32
  }
  func.func @transform_4(%arg0: i32) -> (i32, i32) {
    %c0_i32 = arith.constant 0 : i32
    %c0_i32_0 = arith.constant 0 : i32
    %c0_i32_1 = arith.constant 0 : i32
    return %c0_i32, %c0_i32_0 : i32, i32
  }
  func.func @transform_5(%arg0: i32) -> (i32, i32) {
    %c0_i32 = arith.constant 0 : i32
    %c0_i32_0 = arith.constant 0 : i32
    %c0_i32_1 = arith.constant 0 : i32
    return %c0_i32, %c0_i32_0 : i32, i32
  }
}

module attributes {stable_mosaic.version = 11 : i64} {
  func.func @_linear_kernel(%arg0: i32, %arg1: memref<128x128xf32, #tpu.memory_space<vmem>>, %arg2: memref<128x128xbf16, #tpu.memory_space<vmem>>, %arg3: memref<1x128xf32, #tpu.memory_space<vmem>>, %arg4: memref<128x128xf32, #tpu.memory_space<vmem>>) attributes {dimension_semantics = [#tpu.dimension_semantics<parallel>], iteration_bounds = array<i64: 2>, scalar_prefetch = 0 : i64, scratch_operands = 0 : i64, tpu.core_type = #tpu.core_type<tc>, window_params = [{transform_indices = @transform_0, window_bounds = array<i64: 128, 128>}, {pipeline_mode = #tpu.pipeline_mode<synchronous>, transform_indices = @transform_1, window_bounds = array<i64: 128, 128>}, {pipeline_mode = #tpu.pipeline_mode<synchronous>, transform_indices = @transform_2, window_bounds = array<i64: 1, 128>}, {transform_indices = @transform_3, window_bounds = array<i64: 128, 128>}]} {
    %c0 = arith.constant 0 : index
    %c0_0 = arith.constant 0 : index
    %0 = vector.load %arg1[%c0, %c0_0] : memref<128x128xf32, #tpu.memory_space<vmem>>, vector<128x128xf32>
    %1 = arith.truncf %0 : vector<128x128xf32> to vector<128x128xbf16>
    %c0_1 = arith.constant 0 : index
    %c0_2 = arith.constant 0 : index
    %2 = vector.load %arg2[%c0_1, %c0_2] : memref<128x128xbf16, #tpu.memory_space<vmem>>, vector<128x128xbf16>
    %cst = arith.constant dense<0.000000e+00> : vector<128x128xf32>
    %3 = tpu.matmul %1, %2, %cst {dimension_numbers = #tpu.dot_dimension_numbers<[1], [0], [0], [1], [0, 0, 1, 1], [], []>} : vector<128x128xbf16>, vector<128x128xbf16>, vector<128x128xf32> -> vector<128x128xf32>
    %c0_3 = arith.constant 0 : index
    %c0_4 = arith.constant 0 : index
    %4 = vector.load %arg3[%c0_3, %c0_4] : memref<1x128xf32, #tpu.memory_space<vmem>>, vector<1x128xf32>
    %5 = vector.broadcast %4 : vector<1x128xf32> to vector<128x128xf32>
    %6 = arith.addf %3, %5 : vector<128x128xf32>
    %c0_5 = arith.constant 0 : index
    %c0_6 = arith.constant 0 : index
    %7 = vector.load %arg4[%c0_5, %c0_6] : memref<128x128xf32, #tpu.memory_space<vmem>>, vector<128x128xf32>
    tpu.vector_store %arg4[%c0_5, %c0_6], %6 {strides = array<i32>} : memref<128x128xf32, #tpu.memory_space<vmem>>, vector<128x128xf32>,
    return
  }
  func.func @transform_0(%arg0: i32) -> (i32, i32) {
    %c0_i32 = arith.constant 0 : i32
    %c0_i32_0 = arith.constant 0 : i32
    return %arg0, %c0_i32 : i32, i32
  }
  func.func @transform_1(%arg0: i32) -> (i32, i32) {
    %c0_i32 = arith.constant 0 : i32
    %c0_i32_0 = arith.constant 0 : i32
    %c0_i32_1 = arith.constant 0 : i32
    return %c0_i32, %c0_i32_0 : i32, i32
  }
  func.func @transform_2(%arg0: i32) -> (i32, i32) {
    %c0_i32 = arith.constant 0 : i32
    %c0_i32_0 = arith.constant 0 : i32
    %c0_i32_1 = arith.constant 0 : i32
    return %c0_i32, %c0_i32_0 : i32, i32
  }
  func.func @transform_3(%arg0: i32) -> (i32, i32) {
    %c0_i32 = arith.constant 0 : i32
    %c0_i32_0 = arith.constant 0 : i32
    return %arg0, %c0_i32 : i32, i32
  }
}

</mosaic_0001>

<bundles_post_ra>
// kernel: generic_net_forward.4
= control target key start
LH: loop header
LB: loop body
LE: loop exit
PB: predicated region body
PF: predicated region fallthrough
CT: control target
= control target key end

     0   :  { %8 = vsyncpa [#allocation3], 0  ;;  %s1661_s0 = inlined_call_operand.hbm [shape: f32[256,512], index: 0, kind: input, shape index: {}]   ;;  %s1662_s1 = inlined_call_operand.vmem [shape: f32[1,512], index: 1, kind: output, shape index: {0}]   ;;  %s1663_s2 = inlined_call_operand.vmem [shape: f32[1,512], index: 2, kind: output, shape index: {1}]  }
   0x1   :  { %10 = vsyncpa [#allocation3 + $0x1], 0  ;;  %s859_s9 = smov 0   ;;  %s861_s10 = smov 0  }
   0x2   :  { %s863_s11 = smov 0   ;;  %s865_s12 = smov 0  }
   0x3 LB: > { %s878_s13 = sadd.s32 4294967295, %s837_s12   ;;  %s881_s14 = sadd.s32 1, %s837_s12   ;;  %s837_s12 = sphi %s865_s12, %s1772_s12   ;;  %s833_s11 = sphi %s863_s11, %s1771_s11   ;;  %s829_s10 = sphi %s861_s10, %s1770_s10   ;;  %s825_s9 = sphi %s859_s9, %s1769_s9  }
   0x4   : > { %s20_s15 = ssub.s32 %s837_s12, %s881_s14  ;;  %s23_s16 = sadd.s32 1, %s833_s11 }
   0x5   : > { %p21_p0 = scmp.eq.s32.totalorder %s20_s15, 0  ;;  %p30_p1 = scmp.ne.s32.totalorder %s833_s11, %s829_s10 }
   0x6   : > { %p31_p2 = scmp.eq.s32.totalorder %s837_s12, 0  ;;  %p36_p3 = scmp.ne.s32.totalorder %s829_s10, %s825_s9 }
   0x7   : > { %s891_s17 = scalar_select %p21_p0, %s833_s11, %s23_s16  }
   0x8   : > { %p32_p4 = por %p31_p2, %p30_p1  ;;  %p37_p5 = scmp.eq.s32.totalorder %s878_s13, 0 }
   0x9   : > { %p736_p6 = scmp.lt.s32.totalorder %s837_s12, 2  ;;  %s102_s19 = sand.u32 1, %s833_s11  }
   0xa   : > { %p895_p7 = por %p37_p5, %p36_p3  ;;  %s718_s20 = sshll.u32 %s102_s19, 9 }
   0xb   : > { %s729_s21 = sshll.u32 %s837_s12, 13  ;;  %s106_s25 = scalar_lea.vmem [#allocation2], %s718_s20 }
   0xc   : > { %s904_s24 = scalar_lea.hbm %s1661_s0, %s729_s21  ;;  %s114_s26 = sshll.u32 %s106_s25, 4  ;;  %s906_s26 = int_to_ptr.vmem [resolvable:$true] %s114_s26 }
   0xd   : > { %p908_p8 = pnand %p736_p6, %p32_p4  ;;  %s913_s28 = scalar_lea.sflag [#allocation3], %s102_s19 }
   0xe   : > { %s773_s29 = scalar_lea.hbm %s904_s24, 8192  ;;  %s778_s4 = scalar_lea.hbm %s1661_s0, 16384 }
   0xf   : > { %p774_p10 = scmp.ne.s32.totalorder %s904_s24, %s773_s29  ;;  %p775_p11 = pneg %p908_p8 }
  0x10   : > { %p779_p0 = scmp.lt.u32.totalorder %s904_s24, %s1661_s0  ;;  %p780_p1 = scmp.lt.u32.totalorder %s778_s4, %s773_s29 }
  0x11   : > { %p776_p12 = pnand %p775_p11, %p774_p10  ;;  %p782_p3 = scmp.lt.u32.totalorder %s773_s29, %s904_s24 }
  0x12   : > { %p781_p2 = por %p780_p1, %p779_p0 }
  0x13   : > { %p777_p13 = pneg %p776_p12 }
  0x14   : > { %p783_p4 = por %p782_p3, %p781_p2 }
  0x16   : > { %p784_p5 = pnand %p783_p4, %p777_p13 }
  0x18   : > { %787 = shalt.err (!%p784_p5)
}
  0x19   : > { %s788_s7 = scalar_lea.vmem %s906_s26, 8192  ;;  %s839_s8 = smov [#allocation2]  }
  0x1a   : > { %p789_p6 = scmp.ne.s32.totalorder %s906_s26, %s788_s7  ;;  %s793_s9 = sshll.u32 %s839_s8, 4  ;;  %s794_s9 = int_to_ptr.vmem [resolvable:$false] %s793_s9 }
  0x1b   : > { %s795_s15 = scalar_lea.vmem %s794_s9, 16384  ;;  %p796_p9 = scmp.lt.s32.totalorder %s906_s26, %s794_s9 }
  0x1c   : > { %p791_p10 = pnand %p789_p6, %p775_p11  ;;  %p797_p0 = scmp.lt.s32.totalorder %s795_s15, %s788_s7 }
  0x1e   : > { %p792_p12 = pneg %p791_p10  ;;  %p798_p1 = por %p797_p0, %p796_p9 }
  0x20   : > { %p799_p2 = pnand %p798_p1, %p792_p12 }
  0x22   : > { %802 = shalt.err (!%p799_p2)
}
  0x23   : > { %s840_s16 = smov 512   ;;  %s841_s19 = smov 32  }
  0x24   : > { %735 = dma.hbm_to_vmem [thread:$0]  (!%p908_p8), %s904_s24, 8192, %s906_s26, %s913_s28, %s840_s16, %s840_s16, %s841_s19  }
  0x25   : > { %p122_p11 = scmp.lt.s32.totalorder %s837_s12, 3  ;;  %p1699_p13 = scmp.ge.s32.totalorder %s837_s12, 1 }
  0x27   : > { %p123_p3 = pnand %p1699_p13, %p122_p11 }
  0x29   : > { %126 = sbr.rel (%p123_p3) target bundleno = 174 (0xae), region = 24 }
  0x30   : > { %s128_s20 = sand.u32 1, %s829_s10  }
  0x31   : > { %s723_s21 = sshll.u32 %s128_s20, 9  ;;  %s129_s22 = scalar_lea.sflag [#allocation3], %s128_s20 }
  0x32   : > { %s945_s23 = scalar_lea.vmem [#allocation2], %s723_s21 }
  0x33   : > { %820 = dma.done.wait (%p895_p7), %s129_s22, 8192  }
  0x34   : > { %822 = vsyncadd (%p895_p7), %s129_s22, 4294959104  ;;  %p724_p9 = scmp.ne.s32.totalorder %s878_s13, 0 }
  0x35   : > { %v153_v0 = vlaneseq (!%p724_p9)  ;;  %v842_v1 = vmov (!%p724_p9), 0.0  }
  0x36   : > { %152 = sbr.rel (%p724_p9) target bundleno = 61 (0x3d), region = 32 }
  0x37   : > { %vm155_vm0 = vcmp.lt.s32.totalorder (!%p724_p9), %v153_v0, 512 }
  0x38   : > { %157 = vst.msk [vmem:[%s1662_s1] sm:$0xf] (!%p724_p9), %vm155_vm0, %v842_v1  ;;  %158 = vst.msk [vmem:[%s1663_s2] sm:$0xf] (!%p724_p9), %vm155_vm0, %v842_v1 }
  0x3d PF: > { %v1664_v2 = vlaneseq  ;;  %v843_v3 = vmov 1966171168   ;;  %s725_s18 = sshll.u32 %s878_s13, 7  ;;  %v159_v29 = vld [vmem:[%s945_s23] sm:$0xff]  ;;  %v160_v30 = vld [vmem:[%s945_s23 + $0x8] sm:$0xff]  ;;  %v161_v31 = vld [vmem:[%s945_s23 + $0x10] sm:$0xff] }
  0x3e   : > { %v462_v4 = vunpack.c.l.s4 %v843_v3  ;;  %v241_v6 = vstv %s725_s18  ;;  %v162_v35 = vld [vmem:[%s945_s23 + $0x18] sm:$0xff]  ;;  %v163_v36 = vld [vmem:[%s945_s23 + $0x20] sm:$0xff]  ;;  %v164_v37 = vld [vmem:[%s945_s23 + $0x28] sm:$0xff] }
  0x3f   : > { %v225_v5 = vshrl.u32 %v1664_v2, 7  ;;  %v165_v42 = vld [vmem:[%s945_s23 + $0x30] sm:$0xff]  ;;  %v166_v43 = vld [vmem:[%s945_s23 + $0x38] sm:$0xff]  ;;  %v167_v44 = vld [vmem:[%s945_s23 + $0x40] sm:$0xff] }
  0x40   : > { %v463_v7 = vunpack.c.0.s8 %v462_v4  ;;  %v168_v49 = vld [vmem:[%s945_s23 + $0x48] sm:$0xff]  ;;  %v169_v50 = vld [vmem:[%s945_s23 + $0x50] sm:$0xff]  ;;  %v170_v51 = vld [vmem:[%s945_s23 + $0x58] sm:$0xff] }
  0x41   : > { %v226_v8 = vadd.s32 8, %v225_v5  ;;  %v227_v9 = vadd.s32 16, %v225_v5  ;;  %v228_v10 = vadd.s32 24, %v225_v5  ;;  %v229_v11 = vadd.s32 32, %v225_v5  ;;  %v171_v53 = vld [vmem:[%s945_s23 + $0x60] sm:$0xff]  ;;  %v172_v54 = vld [vmem:[%s945_s23 + $0x68] sm:$0xff] }
  0x42   : > { %v960_v12 = vadd.s32 %v241_v6, %v225_v5  ;;  %v230_v13 = vadd.s32 40, %v225_v5  ;;  %v231_v14 = vadd.s32 48, %v225_v5  ;;  %v232_v15 = vadd.s32 56, %v225_v5  ;;  %v173_v55 = vld [vmem:[%s945_s23 + $0x70] sm:$0xff]  ;;  %v174_v56 = vld [vmem:[%s945_s23 + $0x78] sm:$0xff]  ;;  %v175_v57 = vld [vmem:[%s945_s23 + $0x80] sm:$0xff] }
  0x43   : > { %v962_v16 = vsub.s32 %v463_v7, %v225_v5  ;;  %v233_v17 = vadd.s32 64, %v225_v5  ;;  %v234_v18 = vadd.s32 72, %v225_v5  ;;  %v235_v19 = vadd.s32 80, %v225_v5  ;;  %v176_v58 = vld [vmem:[%s945_s23 + $0x88] sm:$0xff]  ;;  %v177_v59 = vld [vmem:[%s945_s23 + $0x90] sm:$0xff]  ;;  %v178_v60 = vld [vmem:[%s945_s23 + $0x98] sm:$0xff] }
  0x44   : > { %v236_v20 = vadd.s32 88, %v225_v5  ;;  %v237_v21 = vadd.s32 96, %v225_v5  ;;  %v238_v22 = vadd.s32 104, %v225_v5  ;;  %v239_v23 = vadd.s32 112, %v225_v5  ;;  %v179_v63 = vld [vmem:[%s945_s23 + $0xa0] sm:$0xff]  ;;  %v180_v0 = vld [vmem:[%s945_s23 + $0xa8] sm:$0xff] }
  0x45   : > { %1700 = vst [vmem:[#allocation5_spill] sm:$0xff] %v962_v16  ;;  %v240_v24 = vadd.s32 120, %v225_v5  ;;  %v243_v25 = vadd.s32 %v241_v6, %v226_v8  ;;  %v964_v26 = vadd.s32 %v241_v6, %v227_v9  ;;  %v966_v27 = vadd.s32 %v241_v6, %v228_v10  ;;  %v181_v1 = vld [vmem:[%s945_s23 + $0xb0] sm:$0xff]  ;;  %v182_v3 = vld [vmem:[%s945_s23 + $0xb8] sm:$0xff]  ;;  %v183_v8 = vld [vmem:[%s945_s23 + $0xc0] sm:$0xff] }
  0x46   : > { %v968_v28 = vadd.s32 %v241_v6, %v229_v11  ;;  %v973_v32 = vadd.s32 %v241_v6, %v230_v13  ;;  %v975_v33 = vadd.s32 %v241_v6, %v231_v14  ;;  %v977_v34 = vadd.s32 %v241_v6, %v232_v15  ;;  %v184_v9 = vld [vmem:[%s945_s23 + $0xc8] sm:$0xff]  ;;  %v185_v10 = vld [vmem:[%s945_s23 + $0xd0] sm:$0xff]  ;;  %v186_v15 = vld [vmem:[%s945_s23 + $0xd8] sm:$0xff] }
  0x47   : > { %vm258_vm1 = vcmp.lt.s32.totalorder %v960_v12, 256  ;;  %v983_v38 = vadd.s32 %v241_v6, %v233_v17  ;;  %v985_v39 = vadd.s32 %v241_v6, %v234_v18  ;;  %v987_v40 = vadd.s32 %v241_v6, %v235_v19  ;;  %v187_v17 = vld [vmem:[%s945_s23 + $0xe0] sm:$0xff]  ;;  %v188_v18 = vld [vmem:[%s945_s23 + $0xe8] sm:$0xff] }
  0x48   : > { %v989_v41 = vadd.s32 %v241_v6, %v236_v20  ;;  %v994_v45 = vadd.s32 %v241_v6, %v237_v21  ;;  %v996_v46 = vadd.s32 %v241_v6, %v238_v22  ;;  %v998_v47 = vadd.s32 %v241_v6, %v239_v23  ;;  %v189_v23 = vld [vmem:[%s945_s23 + $0xf0] sm:$0xff] }
  0x49   : > { %v1000_v48 = vadd.s32 %v241_v6, %v240_v24  ;;  %vm259_vm2 = vcmp.lt.s32.totalorder %v243_v25, 256  ;;  %vm260_vm3 = vcmp.lt.s32.totalorder %v964_v26, 256  ;;  %vm261_vm4 = vcmp.lt.s32.totalorder %v966_v27, 256  ;;  %v190_v24 = vld [vmem:[%s945_s23 + $0xf8] sm:$0xff] }
  0x4a   : > { %v306_v52 = vsel %vm258_vm1, %v159_v29, 0.0  ;;  %vm262_vm5 = vcmp.lt.s32.totalorder %v968_v28, 256  ;;  %vm263_vm6 = vcmp.lt.s32.totalorder %v973_v32, 256  ;;  %vm264_vm7 = vcmp.lt.s32.totalorder %v975_v33, 256 }
  0x4b   : > { %vm265_vm8 = vcmp.lt.s32.totalorder %v977_v34, 256  ;;  %vm266_vm9 = vcmp.lt.s32.totalorder %v983_v38, 256  ;;  %vm267_vm10 = vcmp.lt.s32.totalorder %v985_v39, 256  ;;  %v1025_v61 = vsel %vm258_vm1, %v160_v30, 0.0  ;;  %v203_v38 = vld [vmem:[%s945_s23 + $0x160] sm:$0xff] }
  0x4c   : > { %v1029_v62 = vsel %vm258_vm1, %v161_v31, 0.0  ;;  %vm268_vm11 = vcmp.lt.s32.totalorder %v987_v40, 256  ;;  %v1038_v4 = vsel %vm258_vm1, %v162_v35, 0.0  ;;  %v1041_v5 = vsel %vm259_vm2, %v163_v36, 0.0  ;;  %v191_v31 = vld [vmem:[%s945_s23 + $0x100] sm:$0xff]  ;;  %v192_v35 = vld [vmem:[%s945_s23 + $0x108] sm:$0xff] }
  0x4d   : > { %v1044_v6 = vsel %vm259_vm2, %v164_v37, 0.0  ;;  %v1046_v7 = vmul.f32 %v306_v52, %v306_v52  ;;  %v1052_v11 = vsel %vm259_vm2, %v165_v42, 0.0  ;;  %v1055_v12 = vsel %vm259_vm2, %v166_v43, 0.0  ;;  %v193_v43 = vld [vmem:[%s945_s23 + $0x110] sm:$0xff] }
  0x4e   : > { %v1059_v13 = vsel %vm260_vm3, %v167_v44, 0.0  ;;  %v371_v14 = vadd.f32 %v1041_v5, %v306_v52  ;;  %vm269_vm12 = vcmp.lt.s32.totalorder %v989_v41, 256  ;;  %v1068_v19 = vsel %vm260_vm3, %v168_v49, 0.0  ;;  %v194_v44 = vld [vmem:[%s945_s23 + $0x118] sm:$0xff]  ;;  %v195_v52 = vld [vmem:[%s945_s23 + $0x120] sm:$0xff] }
  0x4f   : > { %1701 = vst [vmem:[#allocation6_spill] sm:$0xff] %v1046_v7  ;;  %v1072_v20 = vsel %vm260_vm3, %v169_v50, 0.0  ;;  %v1076_v21 = vsel %vm260_vm3, %v170_v51, 0.0  ;;  %v392_v22 = vadd.f32 %v1044_v6, %v1025_v61  ;;  %v1084_v25 = vsel %vm261_vm4, %v171_v53, 0.0  ;;  %v196_v53 = vld [vmem:[%s945_s23 + $0x128] sm:$0xff] }
  0x50   : > { %1702 = vst [vmem:[#allocation7_spill] sm:$0xff] %v1072_v20  ;;  %1703 = vst [vmem:[#allocation8_spill] sm:$0xff] %v1084_v25  ;;  %v1088_v29 = vsel %vm261_vm4, %v172_v54, 0.0  ;;  %v1092_v26 = vsel %vm261_vm4, %v173_v55, 0.0  ;;  %v1096_v30 = vsel %vm261_vm4, %v174_v56, 0.0  ;;  %vm270_vm13 = vcmp.lt.s32.totalorder %v994_v45, 256 }
  0x51   : > { %1704 = vst [vmem:[#allocation9_spill] sm:$0xff] %v1088_v29  ;;  %1705 = vst [vmem:[#allocation10_spill] sm:$0xff] %v1092_v26  ;;  %v1103_v36 = vsel %vm262_vm5, %v175_v57, 0.0  ;;  %v1107_v37 = vsel %vm262_vm5, %v176_v58, 0.0  ;;  %v1111_v42 = vsel %vm262_vm5, %v177_v59, 0.0  ;;  %v1115_v27 = vsel %vm262_vm5, %v178_v60, 0.0 }
  0x52   : > { %1706 = vst [vmem:[#allocation11_spill] sm:$0xff] %v1103_v36  ;;  %1707 = vst [vmem:[#allocation12_spill] sm:$0xff] %v1107_v37  ;;  %v1121_v49 = vsel %vm263_vm6, %v179_v63, 0.0  ;;  %v1125_v50 = vsel %vm263_vm6, %v180_v0, 0.0  ;;  %v1129_v51 = vsel %vm263_vm6, %v181_v1, 0.0  ;;  %v1133_v28 = vsel %vm263_vm6, %v182_v3, 0.0 }
  0x53   : > { %1708 = vst [vmem:[#allocation13_spill] sm:$0xff] %v1111_v42  ;;  %1709 = vst [vmem:[#allocation14_spill] sm:$0xff] %v1115_v27  ;;  %vm271_vm14 = vcmp.lt.s32.totalorder %v996_v46, 256  ;;  %v1140_v54 = vsel %vm264_vm7, %v183_v8, 0.0  ;;  %v1144_v55 = vsel %vm264_vm7, %v184_v9, 0.0  ;;  %v1148_v56 = vsel %vm264_vm7, %v185_v10, 0.0 }
  0x54   : > { %1710 = vst [vmem:[#allocation15_spill] sm:$0xff] %v1121_v49  ;;  %1711 = vst [vmem:[#allocation16_spill] sm:$0xff] %v1125_v50  ;;  %v1152_v32 = vsel %vm264_vm7, %v186_v15, 0.0  ;;  %v197_v57 = vld [vmem:[%s945_s23 + $0x130] sm:$0xff]  ;;  %v198_v58 = vld [vmem:[%s945_s23 + $0x138] sm:$0xff]  ;;  %v1158_v59 = vsel %vm265_vm8, %v187_v17, 0.0 }
  0x55   : > { %1712 = vst [vmem:[#allocation17_spill] sm:$0xff] %v1140_v54  ;;  %1713 = vst [vmem:[#allocation18_spill] sm:$0xff] %v1144_v55  ;;  %v1162_v60 = vsel %vm265_vm8, %v188_v18, 0.0  ;;  %v1166_v63 = vsel %vm265_vm8, %v189_v23, 0.0  ;;  %v1170_v33 = vsel %vm265_vm8, %v190_v24, 0.0  ;;  %v199_v0 = vld [vmem:[%s945_s23 + $0x140] sm:$0xff]  ;;  %v372_v18 = vadd.f32 %v371_v14, %v1059_v13 }
  0x56   : > { %vm272_vm15 = vcmp.lt.s32.totalorder %v998_v47, 256  ;;  %v1176_v1 = vsel %vm266_vm9, %v191_v31, 0.0  ;;  %v1180_v3 = vsel %vm266_vm9, %v192_v35, 0.0  ;;  %v1184_v8 = vsel %vm266_vm9, %v193_v43, 0.0  ;;  %v200_v9 = vld [vmem:[%s945_s23 + $0x148] sm:$0xff]  ;;  %v201_v10 = vld [vmem:[%s945_s23 + $0x150] sm:$0xff] }
  0x57   : > { %v1188_v34 = vsel %vm266_vm9, %v194_v44, 0.0  ;;  %v202_v15 = vld [vmem:[%s945_s23 + $0x158] sm:$0xff]  ;;  %v1195_v17 = vsel %vm267_vm10, %v195_v52, 0.0  ;;  %v393_v23 = vadd.f32 %v392_v22, %v1068_v19  ;;  %v413_v24 = vadd.f32 %v1052_v11, %v1029_v62  ;;  %v204_v43 = vld [vmem:[%s945_s23 + $0x168] sm:$0xff]  ;;  %v205_v44 = vld [vmem:[%s945_s23 + $0x170] sm:$0xff] }
  0x58   : > { %vm273_vm0 = vcmp.lt.s32.totalorder %v1000_v48, 256  ;;  %v1205_v31 = vsel %vm267_vm10, %v196_v53, 0.0  ;;  %v1209_v35 = vsel %vm267_vm10, %v197_v57, 0.0  ;;  %v1213_v14 = vsel %vm267_vm10, %v198_v58, 0.0  ;;  %v206_v52 = vld [vmem:[%s945_s23 + $0x178] sm:$0xff]  ;;  %v207_v58 = vld [vmem:[%s945_s23 + $0x180] sm:$0xff] }
  0x59   : > { %v434_v22 = vadd.f32 %v1055_v12, %v1038_v4  ;;  %v1222_v53 = vsel %vm268_vm11, %v199_v0, 0.0  ;;  %v373_v57 = vadd.f32 %v372_v18, %v1084_v25  ;;  %v394_v2 = vadd.f32 %v393_v23, %v1088_v29  ;;  %v208_v23 = vld [vmem:[%s945_s23 + $0x188] sm:$0xff]  ;;  %v210_v29 = vld [vmem:[%s945_s23 + $0x198] sm:$0xff]  ;;  %v219_v45 = vld [vmem:[%s945_s23 + $0x1e0] sm:$0xff] }
  0x5a   : > { %v414_v39 = vadd.f32 %v413_v24, %v1072_v20  ;;  %v1230_v16 = vsel %vm268_vm11, %v200_v9, 0.0  ;;  %v1234_v7 = vsel %vm268_vm11, %v201_v10, 0.0  ;;  %v1238_v0 = vsel %vm268_vm11, %v202_v15, 0.0  ;;  %v209_v24 = vld [vmem:[%s945_s23 + $0x190] sm:$0xff]  ;;  %v211_v20 = vld [vmem:[%s945_s23 + $0x1a0] sm:$0xff] }
  0x5b   : > { %1714 = vst [vmem:[#allocation19_spill] sm:$0xff] %v1238_v0  ;;  %v435_v18 = vadd.f32 %v434_v22, %v1076_v21  ;;  %v1246_v9 = vsel %vm269_vm12, %v203_v38, 0.0  ;;  %v374_v25 = vadd.f32 %v373_v57, %v1103_v36  ;;  %v395_v10 = vadd.f32 %v394_v2, %v1107_v37  ;;  %v212_v57 = vld [vmem:[%s945_s23 + $0x1a8] sm:$0xff]  ;;  %v214_v37 = vld [vmem:[%s945_s23 + $0x1b8] sm:$0xff] }
  0x5c   : > { %1715 = vst [vmem:[#allocation20_spill] sm:$0xff] %v1246_v9  ;;  %v415_v40 = vadd.f32 %v414_v39, %v1092_v26  ;;  %v1254_v15 = vsel %vm269_vm12, %v204_v43, 0.0  ;;  %v1258_v22 = vsel %vm269_vm12, %v205_v44, 0.0  ;;  %v1262_v38 = vsel %vm269_vm12, %v206_v52, 0.0  ;;  %v213_v39 = vld [vmem:[%s945_s23 + $0x1b0] sm:$0xff]  ;;  %v215_v26 = vld [vmem:[%s945_s23 + $0x1c0] sm:$0xff] }
  0x5d   : > { %1716 = vst [vmem:[#allocation21_spill] sm:$0xff] %v1254_v15  ;;  %1717 = vst [vmem:[#allocation22_spill] sm:$0xff] %v1258_v22  ;;  %v436_v2 = vadd.f32 %v435_v18, %v1096_v30  ;;  %v1270_v43 = vsel %vm270_vm13, %v207_v58, 0.0  ;;  %v375_v36 = vadd.f32 %v374_v25, %v1121_v49  ;;  %v396_v44 = vadd.f32 %v395_v10, %v1125_v50  ;;  %v216_v10 = vld [vmem:[%s945_s23 + $0x1c8] sm:$0xff]  ;;  %v218_v50 = vld [vmem:[%s945_s23 + $0x1d8] sm:$0xff] }
  0x5e   : > { %1718 = vst [vmem:[#allocation23_spill] sm:$0xff] %v1262_v38  ;;  %1719 = vst [vmem:[#allocation24_spill] sm:$0xff] %v1270_v43  ;;  %v416_v41 = vadd.f32 %v415_v40, %v1111_v42  ;;  %v1278_v52 = vsel %vm270_vm13, %v208_v23, 0.0  ;;  %v1282_v18 = vsel %vm270_vm13, %v209_v24, 0.0  ;;  %v1286_v58 = vsel %vm270_vm13, %v210_v29, 0.0  ;;  %v217_v40 = vld [vmem:[%s945_s23 + $0x1d0] sm:$0xff] }
  0x5f   : > { %1720 = vst [vmem:[#allocation25_spill] sm:$0xff] %v1278_v52  ;;  %v437_v25 = vadd.f32 %v436_v2, %v1115_v27  ;;  %v1294_v23 = vsel %vm271_vm14, %v211_v20, 0.0  ;;  %v376_v49 = vadd.f32 %v375_v36, %v1140_v54  ;;  %v397_v24 = vadd.f32 %v396_v44, %v1144_v55  ;;  %v220_v36 = vld [vmem:[%s945_s23 + $0x1e8] sm:$0xff]  ;;  %v221_v54 = vld [vmem:[%s945_s23 + $0x1f0] sm:$0xff]  ;;  %v222_v44 = vld [vmem:[%s945_s23 + $0x1f8] sm:$0xff] }
  0x60   : > { %1721 = vst [vmem:[#allocation26_spill] sm:$0xff] %v1294_v23  ;;  %v417_v42 = vadd.f32 %v416_v41, %v1129_v51  ;;  %v1302_v29 = vsel %vm271_vm14, %v212_v57, 0.0  ;;  %v1306_v2 = vsel %vm271_vm14, %v213_v39, 0.0  ;;  %v1310_v27 = vsel %vm271_vm14, %v214_v37, 0.0 }
  0x61   : > { %1722 = vst [vmem:[#allocation27_spill] sm:$0xff] %v1302_v29  ;;  %1723 = vst [vmem:[#allocation28_spill] sm:$0xff] %v1306_v2  ;;  %v438_v20 = vadd.f32 %v437_v25, %v1133_v28  ;;  %v1318_v41 = vsel %vm272_vm15, %v215_v26, 0.0  ;;  %v377_v57 = vadd.f32 %v376_v49, %v1158_v59  ;;  %v398_v55 = vadd.f32 %v397_v24, %v1162_v60 }
  0x62   : > { %1724 = vst [vmem:[#allocation29_spill] sm:$0xff] %v1310_v27  ;;  %1725 = vst [vmem:[#allocation30_spill] sm:$0xff] %v1318_v41  ;;  %v418_v39 = vadd.f32 %v417_v42, %v1148_v56  ;;  %v1325_v46 = vsel %vm272_vm15, %v216_v10, 0.0  ;;  %v1329_v37 = vsel %vm272_vm15, %v217_v40, 0.0  ;;  %v1333_v25 = vsel %vm272_vm15, %v218_v50, 0.0 }
  0x63   : > { %1726 = vst [vmem:[#allocation31_spill] sm:$0xff] %v1325_v46  ;;  %1727 = vst [vmem:[#allocation32_spill] sm:$0xff] %v1329_v37  ;;  %v439_v26 = vadd.f32 %v438_v20, %v1152_v32  ;;  %v1338_v49 = vsel %vm273_vm0, %v219_v45, 0.0  ;;  %v378_v42 = vadd.f32 %v377_v57, %v1176_v1  ;;  %v399_v24 = vadd.f32 %v398_v55, %v1180_v3 }
  0x64   : > { %1728 = vst [vmem:[#allocation33_spill] sm:$0xff] %v1333_v25  ;;  %1729 = vst [vmem:[#allocation34_spill] sm:$0xff] %v1338_v49  ;;  %v419_v10 = vadd.f32 %v418_v39, %v1166_v63  ;;  %v1345_v40 = vsel %vm273_vm0, %v220_v36, 0.0  ;;  %v1349_v47 = vsel %vm273_vm0, %v221_v54, 0.0  ;;  %v1353_v50 = vsel %vm273_vm0, %v222_v44, 0.0 }
  0x65   : > { %1730 = vst [vmem:[#allocation35_spill] sm:$0xff] %v1345_v40  ;;  %1731 = vst [vmem:[#allocation36_spill] sm:$0xff] %v1349_v47  ;;  %v440_v45 = vadd.f32 %v439_v26, %v1170_v33  ;;  %v379_v20 = vadd.f32 %v378_v42, %v1195_v17  ;;  %v400_v55 = vadd.f32 %v399_v24, %v1205_v31 }
  0x66   : > { %1732 = vst [vmem:[#allocation37_spill] sm:$0xff] %v1353_v50  ;;  %v420_v57 = vadd.f32 %v419_v10, %v1184_v8  ;;  %v1361_v36 = vmul.f32 %v1025_v61, %v1025_v61  ;;  %v1366_v54 = vmul.f32 %v1029_v62, %v1029_v62  ;;  %v1370_v48 = vmul.f32 %v1038_v4, %v1038_v4 }
  0x67   : > { %v441_v39 = vadd.f32 %v440_v45, %v1188_v34  ;;  %v1374_v44 = vmul.f32 %v1041_v5, %v1041_v5  ;;  %v380_v26 = vadd.f32 %v379_v20, %v1222_v53  ;;  %v401_v42 = vadd.f32 %v400_v55, %v1230_v16 }
  0x68   : > { %v421_v61 = vadd.f32 %v420_v57, %v1209_v35  ;;  %v1381_v24 = vmul.f32 %v1044_v6, %v1044_v6  ;;  %v1386_v4 = vmul.f32 %v1052_v11, %v1052_v11  ;;  %v1390_v5 = vmul.f32 %v1055_v12, %v1055_v12  ;;  %v1733_v57 = vld [vmem:[#allocation7_spill] sm:$0xff] }
  0x69   : > { %v442_v62 = vadd.f32 %v441_v39, %v1213_v14  ;;  %v1394_v10 = vmul.f32 %v1059_v13, %v1059_v13  ;;  %v381_v45 = vadd.f32 %v380_v26, %v1246_v9  ;;  %v402_v20 = vadd.f32 %v401_v42, %v1254_v15  ;;  %v1734_v39 = vld [vmem:[#allocation8_spill] sm:$0xff]  ;;  %v1735_v15 = vld [vmem:[#allocation9_spill] sm:$0xff]  ;;  %v1736_v9 = vld [vmem:[#allocation10_spill] sm:$0xff] }
  0x6a   : > { %v422_v6 = vadd.f32 %v421_v61, %v1234_v7  ;;  %v1401_v55 = vmul.f32 %v1068_v19, %v1068_v19  ;;  %v1406_v12 = vmul.f32 %v1733_v57, %v1733_v57  ;;  %v1410_v13 = vmul.f32 %v1076_v21, %v1076_v21 }
  0x6b   : > { %v443_v11 = vadd.f32 %v442_v62, %v1238_v0  ;;  %v1414_v26 = vmul.f32 %v1734_v39, %v1734_v39  ;;  %v382_v42 = vadd.f32 %v381_v45, %v1270_v43  ;;  %v403_v61 = vadd.f32 %v402_v20, %v1278_v52  ;;  %v1737_v0 = vld [vmem:[#allocation11_spill] sm:$0xff]  ;;  %v1738_v52 = vld [vmem:[#allocation12_spill] sm:$0xff]  ;;  %v1739_v43 = vld [vmem:[#allocation13_spill] sm:$0xff] }
  0x6c   : > { %v423_v19 = vadd.f32 %v422_v6, %v1258_v22  ;;  %v1421_v62 = vmul.f32 %v1735_v15, %v1735_v15  ;;  %v1426_v21 = vmul.f32 %v1736_v9, %v1736_v9  ;;  %v1430_v39 = vmul.f32 %v1096_v30, %v1096_v30  ;;  %v1741_v22 = vld [vmem:[#allocation15_spill] sm:$0xff] }
  0x6d   : > { %v444_v57 = vadd.f32 %v443_v11, %v1262_v38  ;;  %v1434_v45 = vmul.f32 %v1737_v0, %v1737_v0  ;;  %v383_v20 = vadd.f32 %v382_v42, %v1294_v23  ;;  %v404_v6 = vadd.f32 %v403_v61, %v1302_v29  ;;  %v1740_v38 = vld [vmem:[#allocation14_spill] sm:$0xff]  ;;  %v1742_v29 = vld [vmem:[#allocation16_spill] sm:$0xff]  ;;  %v1743_v23 = vld [vmem:[#allocation17_spill] sm:$0xff] }
  0x6e   : > { %v424_v15 = vadd.f32 %v423_v19, %v1282_v18  ;;  %v1441_v11 = vmul.f32 %v1738_v52, %v1738_v52  ;;  %v1446_v30 = vmul.f32 %v1739_v43, %v1739_v43  ;;  %v1450_v0 = vmul.f32 %v1740_v38, %v1740_v38 }
  0x6f   : > { %v445_v9 = vadd.f32 %v444_v57, %v1286_v58  ;;  %v1454_v42 = vmul.f32 %v1741_v22, %v1741_v22  ;;  %v384_v61 = vadd.f32 %v383_v20, %v1318_v41  ;;  %v405_v19 = vadd.f32 %v404_v6, %v1325_v46  ;;  %v1744_v46 = vld [vmem:[#allocation18_spill] sm:$0xff] }
  0x70   : > { %v425_v52 = vadd.f32 %v424_v15, %v1306_v2  ;;  %v1461_v57 = vmul.f32 %v1742_v29, %v1742_v29  ;;  %v1466_v38 = vmul.f32 %v1129_v51, %v1129_v51  ;;  %v1470_v22 = vmul.f32 %v1133_v28, %v1133_v28 }
  0x71   : > { %v446_v43 = vadd.f32 %v445_v9, %v1310_v27  ;;  %v1474_v20 = vmul.f32 %v1743_v23, %v1743_v23  ;;  %v385_v6 = vadd.f32 %v384_v61, %v1338_v49  ;;  %v406_v15 = vadd.f32 %v405_v19, %v1345_v40 }
  0x72   : > { %v426_v29 = vadd.f32 %v425_v52, %v1329_v37  ;;  %v1481_v9 = vmul.f32 %v1744_v46, %v1744_v46  ;;  %v1486_v28 = vmul.f32 %v1148_v56, %v1148_v56  ;;  %v1490_v23 = vmul.f32 %v1152_v32, %v1152_v32 }
  0x73   : > { %v447_v51 = vadd.f32 %v446_v43, %v1333_v25  ;;  %v1494_v61 = vmul.f32 %v1158_v59, %v1158_v59  ;;  %v386_v19 = vrot.slane %v385_v6, 4  ;;  %v407_v52 = vrot.slane %v406_v15, 4 }
  0x74   : > { %v427_v40 = vadd.f32 %v426_v29, %v1349_v47  ;;  %v1499_v46 = vmul.f32 %v1162_v60, %v1162_v60  ;;  %v1504_v56 = vmul.f32 %v1166_v63, %v1166_v63  ;;  %v1508_v32 = vmul.f32 %v1170_v33, %v1170_v33 }
  0x75   : > { %v448_v43 = vadd.f32 %v447_v51, %v1353_v50  ;;  %v1512_v59 = vmul.f32 %v1176_v1, %v1176_v1  ;;  %v387_v49 = vadd.f32 %v386_v19, %v385_v6  ;;  %v408_v29 = vadd.f32 %v407_v52, %v406_v15  ;;  %v1745_v52 = vld [vmem:[#allocation6_spill] sm:$0xff] }
  0x76   : > { %v428_v47 = vrot.slane %v427_v40, 4  ;;  %v1516_v60 = vmul.f32 %v1180_v3, %v1180_v3  ;;  %v1520_v63 = vmul.f32 %v1184_v8, %v1184_v8  ;;  %v1524_v33 = vmul.f32 %v1188_v34, %v1188_v34 }
  0x77   : > { %v449_v51 = vrot.slane %v448_v43, 4  ;;  %v1528_v1 = vmul.f32 %v1195_v17, %v1195_v17  ;;  %v388_v6 = vrot.slane %v387_v49, 2  ;;  %v409_v15 = vrot.slane %v408_v29, 2 }
  0x78   : > { %v429_v19 = vadd.f32 %v428_v47, %v427_v40  ;;  %v555_v3 = vadd.f32 %v1374_v44, %v1745_v52  ;;  %v576_v25 = vadd.f32 %v1381_v24, %v1361_v36  ;;  %v597_v8 = vadd.f32 %v1386_v4, %v1366_v54 }
  0x79   : > { %v450_v50 = vadd.f32 %v449_v51, %v448_v43  ;;  %v618_v34 = vadd.f32 %v1390_v5, %v1370_v48  ;;  %v389_v37 = vadd.f32 %v388_v6, %v387_v49  ;;  %v410_v41 = vadd.f32 %v409_v15, %v408_v29 }
  0x7a   : > { %v430_v17 = vrot.slane %v429_v19, 2  ;;  %v556_v27 = vadd.f32 %v555_v3, %v1394_v10  ;;  %v577_v40 = vadd.f32 %v576_v25, %v1401_v55  ;;  %v598_v47 = vadd.f32 %v597_v8, %v1406_v12 }
  0x7b   : > { %v451_v2 = vrot.slane %v450_v50, 2  ;;  %v619_v44 = vadd.f32 %v618_v34, %v1410_v13  ;;  %v390_v43 = vrot.slane %v389_v37, 1  ;;  %v411_v36 = vrot.slane %v410_v41, 1 }
  0x7c   : > { %v431_v24 = vadd.f32 %v430_v17, %v429_v19  ;;  %v557_v54 = vadd.f32 %v556_v27, %v1414_v26  ;;  %v578_v48 = vadd.f32 %v577_v40, %v1421_v62  ;;  %v599_v49 = vadd.f32 %v598_v47, %v1426_v21  ;;  %v1753_v47 = vld [vmem:[#allocation22_spill] sm:$0xff] }
  0x7d   : > { %v452_v4 = vadd.f32 %v451_v2, %v450_v50  ;;  %v620_v5 = vadd.f32 %v619_v44, %v1430_v39  ;;  %v391_v10 = vadd.f32 %v390_v43, %v389_v37  ;;  %v412_v29 = vadd.f32 %v411_v36, %v410_v41  ;;  %v1746_v39 = vld [vmem:[#allocation5_spill] sm:$0xff]  ;;  %v1754_v43 = vld [vmem:[#allocation23_spill] sm:$0xff] }
  0x7e   : > { %v432_v51 = vrot.slane %v431_v24, 1  ;;  %v558_v25 = vadd.f32 %v557_v54, %v1434_v45  ;;  %v579_v12 = vadd.f32 %v578_v48, %v1441_v11  ;;  %v600_v13 = vadd.f32 %v599_v49, %v1446_v30  ;;  %v1756_v48 = vld [vmem:[#allocation25_spill] sm:$0xff] }
  0x7f   : > { %v453_v55 = vrot.slane %v452_v4, 1  ;;  %v621_v6 = vadd.f32 %v620_v5, %v1450_v0  ;;  %v459_v2 = vcombine.low %v391_v10, %v412_v29  ;;  %v528_v50 = vmul.f32 %v1205_v31, %v1205_v31 }
  0x80   : > { %v433_v27 = vadd.f32 %v432_v51, %v431_v24  ;;  %v559_v26 = vadd.f32 %v558_v25, %v1454_v42  ;;  %v580_v41 = vadd.f32 %v579_v12, %v1461_v57  ;;  %v601_v37 = vadd.f32 %v600_v13, %v1466_v38  ;;  %v1755_v24 = vld [vmem:[#allocation24_spill] sm:$0xff] }
  0x81   : > { %v454_v62 = vadd.f32 %v453_v55, %v452_v4  ;;  %v622_v21 = vadd.f32 %v621_v6, %v1470_v22  ;;  %v467_v45 = vrot.slane %v459_v2, %v1746_v39  ;;  %v1747_v11 = vlaneseq  ;;  %v1758_v6 = vld [vmem:[#allocation27_spill] sm:$0xff]  ;;  %v1759_v2 = vld [vmem:[#allocation28_spill] sm:$0xff] }
  0x82   : > { %v529_v0 = vmul.f32 %v1209_v35, %v1209_v35  ;;  %v530_v31 = vmul.f32 %v1213_v14, %v1213_v14  ;;  %v560_v42 = vadd.f32 %v559_v26, %v1474_v20  ;;  %v581_v38 = vadd.f32 %v580_v41, %v1481_v9 }
  0x83   : > { %vm1558_vm1 = vcmp.lt.s32.totalorder %v1747_v11, 512  ;;  %v460_v57 = vcombine.low %v433_v27, %v454_v62  ;;  %v602_v22 = vadd.f32 %v601_v37, %v1486_v28  ;;  %v623_v15 = vadd.f32 %v622_v21, %v1490_v23  ;;  %v1750_v23 = vld [vmem:[#allocation19_spill] sm:$0xff]  ;;  %v1761_v21 = vld [vmem:[#allocation30_spill] sm:$0xff] }
  0x84   : > { %v531_v19 = vmul.f32 %v1222_v53, %v1222_v53  ;;  %v532_v52 = vmul.f32 %v1230_v16, %v1230_v16  ;;  %v533_v35 = vmul.f32 %v1234_v7, %v1234_v7  ;;  %v561_v14 = vadd.f32 %v560_v42, %v1494_v61  ;;  %v1751_v53 = vld [vmem:[#allocation20_spill] sm:$0xff]  ;;  %v1752_v16 = vld [vmem:[#allocation21_spill] sm:$0xff]  ;;  %v1762_v11 = vld [vmem:[#allocation31_spill] sm:$0xff] }
  0x85   : > { %v474_v20 = vrot.slane %v460_v57, %v1746_v39  ;;  %v582_v3 = vadd.f32 %v581_v38, %v1499_v46  ;;  %v603_v9 = vadd.f32 %v602_v22, %v1504_v56  ;;  %v624_v28 = vadd.f32 %v623_v15, %v1508_v32  ;;  %v370_v32 = vld [vmem:[%s1662_s1] sm:$0xf] }
  0x86   : > { %v534_v8 = vmul.f32 %v1750_v23, %v1750_v23  ;;  %v535_v34 = vmul.f32 %v1751_v53, %v1751_v53  ;;  %v536_v17 = vmul.f32 %v1752_v16, %v1752_v16  ;;  %v562_v7 = vadd.f32 %v561_v14, %v1512_v59  ;;  %v1764_v38 = vld [vmem:[#allocation33_spill] sm:$0xff] }
  0x87   : > { %v475_v61 = vcombine.low %v467_v45, %v474_v20  ;;  %v583_v40 = vadd.f32 %v582_v3, %v1516_v60  ;;  %v604_v46 = vadd.f32 %v603_v9, %v1520_v63  ;;  %v625_v56 = vadd.f32 %v624_v28, %v1524_v33  ;;  %v1766_v20 = vld [vmem:[#allocation35_spill] sm:$0xff]  ;;  %v1767_v9 = vld [vmem:[#allocation36_spill] sm:$0xff] }
  0x88   : > { %v537_v44 = vmul.f32 %v1753_v47, %v1753_v47  ;;  %v538_v36 = vmul.f32 %v1754_v43, %v1754_v43  ;;  %v539_v59 = vmul.f32 %v1755_v24, %v1755_v24  ;;  %v563_v54 = vadd.f32 %v562_v7, %v1528_v1  ;;  %v1757_v1 = vld [vmem:[#allocation26_spill] sm:$0xff] }
  0x89   : > { %v482_v60 = vrot.slane %v475_v61, %v1746_v39  ;;  %v584_v63 = vadd.f32 %v583_v40, %v528_v50  ;;  %v605_v4 = vadd.f32 %v604_v46, %v529_v0  ;;  %v626_v33 = vadd.f32 %v625_v56, %v530_v31  ;;  %v1763_v31 = vld [vmem:[#allocation32_spill] sm:$0xff] }
  0x8a   : > { %v540_v49 = vmul.f32 %v1756_v48, %v1756_v48  ;;  %v541_v5 = vmul.f32 %v1282_v18, %v1282_v18  ;;  %v542_v10 = vmul.f32 %v1286_v58, %v1286_v58  ;;  %v564_v29 = vadd.f32 %v563_v54, %v531_v19  ;;  %v1760_v18 = vld [vmem:[#allocation29_spill] sm:$0xff] }
  0x8b   : > { %v484_v51 = vadd.f32 %v482_v60, %v370_v32  ;;  %v585_v25 = vadd.f32 %v584_v63, %v532_v52  ;;  %v606_v55 = vadd.f32 %v605_v4, %v533_v35  ;;  %v627_v12 = vadd.f32 %v626_v33, %v534_v8  ;;  %v1765_v35 = vld [vmem:[#allocation34_spill] sm:$0xff]  ;;  %v1768_v8 = vld [vmem:[#allocation37_spill] sm:$0xff] }
  0x8c   : > { %v543_v13 = vmul.f32 %v1757_v1, %v1757_v1  ;;  %v544_v27 = vmul.f32 %v1758_v6, %v1758_v6  ;;  %v545_v50 = vmul.f32 %v1759_v2, %v1759_v2  ;;  %v565_v26 = vadd.f32 %v564_v29, %v535_v34 }
  0x8d   : > { %489 = vst.msk [vmem:[%s1662_s1] sm:$0xf] %vm1558_vm1, %v484_v51  ;;  %v546_v58 = vmul.f32 %v1760_v18, %v1760_v18  ;;  %v586_v62 = vadd.f32 %v585_v25, %v536_v17  ;;  %v607_v41 = vadd.f32 %v606_v55, %v537_v44  ;;  %v628_v37 = vadd.f32 %v627_v12, %v538_v36 }
  0x8e   : > { %v547_v45 = vmul.f32 %v1761_v21, %v1761_v21  ;;  %v548_v0 = vmul.f32 %v1762_v11, %v1762_v11  ;;  %v549_v42 = vmul.f32 %v1763_v31, %v1763_v31  ;;  %v566_v57 = vadd.f32 %v565_v26, %v539_v59 }
  0x8f   : > { %v550_v22 = vmul.f32 %v1764_v38, %v1764_v38  ;;  %v587_v15 = vadd.f32 %v586_v62, %v540_v49  ;;  %v608_v19 = vadd.f32 %v607_v41, %v541_v5  ;;  %v629_v52 = vadd.f32 %v628_v37, %v542_v10  ;;  %v490_v37 = vld [vmem:[%s1663_s2] sm:$0xf] }
  0x90   : > { %v551_v14 = vmul.f32 %v1765_v35, %v1765_v35  ;;  %v552_v3 = vmul.f32 %v1766_v20, %v1766_v20  ;;  %v553_v28 = vmul.f32 %v1767_v9, %v1767_v9  ;;  %v567_v23 = vadd.f32 %v566_v57, %v543_v13 }
  0x91   : > { %v554_v53 = vmul.f32 %v1768_v8, %v1768_v8  ;;  %v588_v34 = vadd.f32 %v587_v15, %v544_v27  ;;  %v609_v16 = vadd.f32 %v608_v19, %v545_v50  ;;  %v630_v17 = vadd.f32 %v629_v52, %v546_v58 }
  0x92   : > { %v568_v7 = vadd.f32 %v567_v23, %v547_v45 }
  0x93   : > { %v589_v61 = vadd.f32 %v588_v34, %v548_v0  ;;  %v610_v40 = vadd.f32 %v609_v16, %v549_v42  ;;  %v631_v46 = vadd.f32 %v630_v17, %v550_v22 }
  0x94   : > { %v569_v56 = vadd.f32 %v568_v7, %v551_v14 }
  0x95   : > { %v590_v32 = vadd.f32 %v589_v61, %v552_v3  ;;  %v611_v47 = vadd.f32 %v610_v40, %v553_v28  ;;  %v632_v44 = vadd.f32 %v631_v46, %v554_v53 }
  0x96   : > { %v570_v43 = vrot.slane %v569_v56, 4 }
  0x97   : > { %v591_v36 = vrot.slane %v590_v32, 4  ;;  %v612_v24 = vrot.slane %v611_v47, 4  ;;  %v633_v59 = vrot.slane %v632_v44, 4 }
  0x98   : > { %v571_v54 = vadd.f32 %v570_v43, %v569_v56 }
  0x99   : > { %v592_v60 = vadd.f32 %v591_v36, %v590_v32  ;;  %v613_v63 = vadd.f32 %v612_v24, %v611_v47  ;;  %v634_v4 = vadd.f32 %v633_v59, %v632_v44 }
  0x9a   : > { %v572_v33 = vrot.slane %v571_v54, 2 }
  0x9b   : > { %v593_v48 = vrot.slane %v592_v60, 2  ;;  %v614_v49 = vrot.slane %v613_v63, 2  ;;  %v635_v5 = vrot.slane %v634_v4, 2 }
  0x9c   : > { %v573_v10 = vadd.f32 %v572_v33, %v571_v54 }
  0x9d   : > { %v594_v29 = vadd.f32 %v593_v48, %v592_v60  ;;  %v615_v51 = vadd.f32 %v614_v49, %v613_v63  ;;  %v636_v25 = vadd.f32 %v635_v5, %v634_v4 }
  0x9e   : > { %v574_v55 = vrot.slane %v573_v10, 1 }
  0x9f   : > { %v595_v12 = vrot.slane %v594_v29, 1  ;;  %v616_v1 = vrot.slane %v615_v51, 1  ;;  %v637_v13 = vrot.slane %v636_v25, 1 }
  0xa0   : > { %v575_v6 = vadd.f32 %v574_v55, %v573_v10 }
  0xa1   : > { %v596_v27 = vadd.f32 %v595_v12, %v594_v29  ;;  %v617_v2 = vadd.f32 %v616_v1, %v615_v51  ;;  %v638_v50 = vadd.f32 %v637_v13, %v636_v25 }
  0xa3   : > { %v643_v26 = vcombine.low %v575_v6, %v596_v27  ;;  %v644_v18 = vcombine.low %v617_v2, %v638_v50 }
  0xa5   : > { %v651_v58 = vrot.slane %v643_v26, %v1746_v39  ;;  %v658_v62 = vrot.slane %v644_v18, %v1746_v39 }
  0xa7   : > { %v659_v41 = vcombine.low %v651_v58, %v658_v62 }
  0xa9   : > { %v666_v21 = vrot.slane %v659_v41, %v1746_v39 }
  0xab   : > { %v668_v45 = vadd.f32 %v666_v21, %v490_v37 }
  0xad   : > { %669 = vst.msk [vmem:[%s1663_s2] sm:$0xf] %vm1558_vm1, %v668_v45 }
  0xae PF: > { %p13_p7 = scmp.ge.s32.totalorder %s881_s14, 4   ;;  %s1769_s9 = smov %s829_s10 }
  0xaf   : > { %s1770_s10 = smov %s833_s11  ;;  %s1771_s11 = smov %s891_s17 }
  0xb0   : > { %s1772_s12 = smov %s881_s14  ;;  %15 = sbr.rel (!%p13_p7) target bundleno = 3 (0x3), region = 72 }
  0xb7   :  { %687 = vsyncpa [#allocation3], 1 }
  0xb8   :  { %689 = vsyncpa [#allocation3 + $0x1], 1 }

// kernel: generic_net_forward.6
= control target key start
LH: loop header
LB: loop body
LE: loop exit
PB: predicated region body
PF: predicated region fallthrough
CT: control target
= control target key end

     0   :  { %s952_s18 = smov 0   ;;  %s1193_s0 = inlined_call_operand.vmem [shape: f32[256,256], index: 0, kind: input, shape index: {}]   ;;  %s1194_s1 = inlined_call_operand.vmem [shape: bf16[256,128], index: 1, kind: input, shape index: {}]   ;;  %s1195_s2 = inlined_call_operand.vmem [shape: f32[1,128], index: 2, kind: input, shape index: {}]   ;;  %s1196_s3 = inlined_call_operand.vmem [shape: f32[256,128], index: 3, kind: output, shape index: {0}]   ;;  %s1197_s4 = inlined_call_operand.vmem [shape: f32[1,128], index: 4, kind: output, shape index: {1}]   ;;  %s1198_s5 = inlined_call_operand.vmem [shape: f32[1,128], index: 5, kind: output, shape index: {2}]  }
   0x1 LB: > { %s958_s19 = sadd.s32 4294967295, %s919_s18   ;;  %p780_p0 = scmp.ge.s32.totalorder %s919_s18, 1  ;;  %s919_s18 = sphi %s952_s18, %s16_s18  }
   0x2   : > { %p184_p1 = scmp.lt.s32.totalorder %s919_s18, 3 }
   0x4   : > { %p185_p2 = pnand %p780_p0, %p184_p1 }
   0x5   : > { %s781_s20 = sshll.u32 (!%p185_p2), %s958_s19, 4  ;;  %p786_p4 = scmp.ne.s32.totalorder (!%p185_p2), %s958_s19, 0 }
   0x6   : > { %188 = sbr.rel (%p185_p2) target bundleno = 334 (0x14e), region = 32  ;;  %p214_p3 = scmp.lt.s32.totalorder (!%p185_p2), %s781_s20, 31 }
   0xd   : > { %s1200_s20 = smov (!%p214_p3, %s781_s20), 31  ;;  %230 = sbr.rel (%p786_p4) target bundleno = 20 (0x14), region = 36 }
   0xe   : > { %s807_s21 = sshll.u32 %s1200_s20, 4  ;;  %s785_s22 = sshll.u32 %s1200_s20, 3  ;;  %v921_v0 = vmov (!%p786_p4), 0.0  }
   0xf   : > { %s966_s25 = scalar_lea.vmem %s1193_s0, %s807_s21  ;;  %s971_s28 = scalar_lea.vmem %s1196_s3, %s785_s22  ;;  %231 = vst [vmem:[%s1197_s4] sm:$0x1] (!%p786_p4), %v921_v0  ;;  %232 = vst [vmem:[%s1198_s5] sm:$0x1] (!%p786_p4), %v921_v0 }
  0x14 PF: > { %v897_v1 = vld [vmem:[%s1194_s1 + $0x40] sm:$0xff]   ;;  %v899_v3 = vld [vmem:[%s1194_s1 + $0x48] sm:$0xff]   ;;  %v901_v5 = vld [vmem:[%s1194_s1 + $0x50] sm:$0xff]   ;;  %s804_s21 = sshll.u32 %s958_s19, 7 }
  0x15   : > { %v898_v2 = vld [vmem:[%s1194_s1] sm:$0xff]   ;;  %808 = vmatprep.subr.bf16.mxu0 %v897_v1  ;;  %872 = vmatprep.subr.bf16.mxu1 %v897_v1  ;;  %v900_v4 = vld [vmem:[%s1194_s1 + $0x8] sm:$0xff]   ;;  %v902_v6 = vld [vmem:[%s1194_s1 + $0x10] sm:$0xff]   ;;  %v546_v1 = vlaneseq }
  0x16   : > { %809 = vmatpush3.bf16.msra.mxu0 %v898_v2  ;;  %880 = vmatpush3.bf16.msra.mxu1 %v898_v2  ;;  %v903_v7 = vld [vmem:[%s1194_s1 + $0x58] sm:$0xff]   ;;  %v905_v9 = vld [vmem:[%s1194_s1 + $0x60] sm:$0xff]   ;;  %v907_v11 = vld [vmem:[%s1194_s1 + $0x68] sm:$0xff]  }
  0x17   : > { %810 = vmatprep.subr.bf16.mxu0 %v899_v3  ;;  %873 = vmatprep.subr.bf16.mxu1 %v899_v3  ;;  %v904_v8 = vld [vmem:[%s1194_s1 + $0x18] sm:$0xff]   ;;  %v906_v10 = vld [vmem:[%s1194_s1 + $0x20] sm:$0xff]   ;;  %v234_v12 = vld [vmem:[%s966_s25 + $0x8] sm:$0xff]  ;;  %v1061_v2 = vshrl.u32 %v546_v1, 7  ;;  %v1063_v3 = vstv %s804_s21 }
  0x18   : > { %v236_v13 = vld [vmem:[%s966_s25 + $0x18] sm:$0xff]  ;;  %v250_v15 = vld [vmem:[%s966_s25 + $0x88] sm:$0xff]  ;;  %v909_v18 = vld [vmem:[%s1194_s1 + $0x70] sm:$0xff]  }
  0x19   : > { %v266_v14 = vpack.c.bf16 %v236_v13, %v234_v12  ;;  %v908_v16 = vld [vmem:[%s1194_s1 + $0x28] sm:$0xff]   ;;  %v252_v17 = vld [vmem:[%s966_s25 + $0x98] sm:$0xff]  ;;  %v910_v20 = vld [vmem:[%s1194_s1 + $0x30] sm:$0xff]  }
  0x1a   : > { %811 = vmatpush3.bf16.msra.mxu0 %v900_v4  ;;  %881 = vmatpush3.bf16.msra.mxu1 %v900_v4  ;;  %v274_v19 = vpack.c.bf16 %v252_v17, %v250_v15  ;;  %v911_v21 = vld [vmem:[%s1194_s1 + $0x78] sm:$0xff]   ;;  %v233_v23 = vld [vmem:[%s966_s25] sm:$0xff]  ;;  %v235_v24 = vld [vmem:[%s966_s25 + $0x10] sm:$0xff]  ;;  %v548_v4 = vadd.s32 8, %v1061_v2 }
  0x1b   : > { %812 = vmatprep.subr.bf16.mxu0 %v901_v5  ;;  %874 = vmatprep.subr.bf16.mxu1 %v901_v5  ;;  %v912_v22 = vld [vmem:[%s1194_s1 + $0x38] sm:$0xff]   ;;  %v238_v25 = vld [vmem:[%s966_s25 + $0x28] sm:$0xff]  ;;  %v249_v26 = vld [vmem:[%s966_s25 + $0x80] sm:$0xff]  ;;  %v265_v31 = vpack.c.bf16 %v235_v24, %v233_v23 }
  0x1c   : > { %448 = vmatprep.mubr.bf16.mxu0 %v266_v14  ;;  %480 = vmatprep.mubr.bf16.mxu1 %v274_v19  ;;  %v251_v27 = vld [vmem:[%s966_s25 + $0x90] sm:$0xff]  ;;  %v240_v28 = vld [vmem:[%s966_s25 + $0x38] sm:$0xff]  ;;  %v254_v29 = vld [vmem:[%s966_s25 + $0xa8] sm:$0xff] }
  0x1d   : > { %v256_v30 = vld [vmem:[%s966_s25 + $0xb8] sm:$0xff]  ;;  %v273_v32 = vpack.c.bf16 %v251_v27, %v249_v26  ;;  %v268_v33 = vpack.c.bf16 %v240_v28, %v238_v25  ;;  %v237_v35 = vld [vmem:[%s966_s25 + $0x20] sm:$0xff]  ;;  %v239_v36 = vld [vmem:[%s966_s25 + $0x30] sm:$0xff]  ;;  %v550_v27 = vadd.s32 24, %v1061_v2 }
  0x1e   : > { %813 = vmatpush3.bf16.msra.mxu0 %v902_v6  ;;  %882 = vmatpush3.bf16.msra.mxu1 %v902_v6  ;;  %v276_v34 = vpack.c.bf16 %v256_v30, %v254_v29  ;;  %v242_v37 = vld [vmem:[%s966_s25 + $0x48] sm:$0xff]  ;;  %v253_v38 = vld [vmem:[%s966_s25 + $0xa0] sm:$0xff]  ;;  %v255_v39 = vld [vmem:[%s966_s25 + $0xb0] sm:$0xff]  ;;  %v267_v43 = vpack.c.bf16 %v239_v36, %v237_v35 }
  0x1f   : > { %814 = vmatprep.subr.bf16.mxu0 %v903_v7  ;;  %875 = vmatprep.subr.bf16.mxu1 %v903_v7  ;;  %v244_v40 = vld [vmem:[%s966_s25 + $0x58] sm:$0xff]  ;;  %v258_v41 = vld [vmem:[%s966_s25 + $0xc8] sm:$0xff]  ;;  %v275_v44 = vpack.c.bf16 %v255_v39, %v253_v38  ;;  %v241_v47 = vld [vmem:[%s966_s25 + $0x40] sm:$0xff] }
  0x20   : > { %v260_v42 = vld [vmem:[%s966_s25 + $0xd8] sm:$0xff]  ;;  %v270_v45 = vpack.c.bf16 %v244_v40, %v242_v37  ;;  %v243_v48 = vld [vmem:[%s966_s25 + $0x50] sm:$0xff]  ;;  %v246_v49 = vld [vmem:[%s966_s25 + $0x68] sm:$0xff] }
  0x21   : > { %v278_v46 = vpack.c.bf16 %v260_v42, %v258_v41  ;;  %v257_v50 = vld [vmem:[%s966_s25 + $0xc0] sm:$0xff]  ;;  %v259_v51 = vld [vmem:[%s966_s25 + $0xd0] sm:$0xff]  ;;  %v248_v52 = vld [vmem:[%s966_s25 + $0x78] sm:$0xff]  ;;  %v269_v55 = vpack.c.bf16 %v243_v48, %v241_v47 }
  0x22   : > { %815 = vmatpush3.bf16.msra.mxu0 %v904_v8  ;;  %883 = vmatpush3.bf16.msra.mxu1 %v904_v8  ;;  %v262_v53 = vld [vmem:[%s966_s25 + $0xe8] sm:$0xff]  ;;  %v264_v54 = vld [vmem:[%s966_s25 + $0xf8] sm:$0xff]  ;;  %v277_v56 = vpack.c.bf16 %v259_v51, %v257_v50  ;;  %v272_v57 = vpack.c.bf16 %v248_v52, %v246_v49  ;;  %v245_v59 = vld [vmem:[%s966_s25 + $0x60] sm:$0xff]  ;;  %v551_v52 = vadd.s32 32, %v1061_v2 }
  0x23   : > { %816 = vmatprep.subr.bf16.mxu0 %v905_v9  ;;  %876 = vmatprep.subr.bf16.mxu1 %v905_v9  ;;  %v280_v58 = vpack.c.bf16 %v264_v54, %v262_v53  ;;  %v247_v60 = vld [vmem:[%s966_s25 + $0x70] sm:$0xff]  ;;  %v261_v61 = vld [vmem:[%s966_s25 + $0xe0] sm:$0xff]  ;;  %v564_v9 = vadd.s32 %v1063_v3, %v1061_v2 }
  0x24   : > { %v263_v62 = vld [vmem:[%s966_s25 + $0xf0] sm:$0xff]  ;;  %v271_v63 = vpack.c.bf16 %v247_v60, %v245_v59  ;;  %v1069_v7 = vld [vmem:[%s1195_s2] ss:$0 sm:$0xff] }
  0x25   : > { %v279_v0 = vpack.c.bf16 %v263_v62, %v261_v61  ;;  %vm580_vm0 = vcmp.lt.s32.totalorder %v564_v9, 256 }
  0x26   : > { %817 = vmatpush3.bf16.msra.mxu0 %v906_v10  ;;  %884 = vmatpush3.bf16.msra.mxu1 %v906_v10 }
  0x27   : > { %818 = vmatprep.subr.bf16.mxu0 %v907_v11  ;;  %877 = vmatprep.subr.bf16.mxu1 %v907_v11 }
  0x2a   : > { %819 = vmatpush3.bf16.msra.mxu0 %v908_v16  ;;  %885 = vmatpush3.bf16.msra.mxu1 %v908_v16  ;;  %v565_v16 = vadd.s32 %v1063_v3, %v548_v4  ;;  %v568_v4 = vadd.s32 %v1063_v3, %v551_v52 }
  0x2b   : > { %820 = vmatprep.subr.bf16.mxu0 %v909_v18  ;;  %878 = vmatprep.subr.bf16.mxu1 %v909_v18 }
  0x2c   : > { %vm581_vm1 = vcmp.lt.s32.totalorder %v565_v16, 256  ;;  %vm584_vm4 = vcmp.lt.s32.totalorder %v568_v4, 256 }
  0x2e   : > { %821 = vmatpush3.bf16.msra.mxu0 %v910_v20  ;;  %886 = vmatpush3.bf16.msra.mxu1 %v910_v20 }
  0x2f   : > { %822 = vmatprep.subr.bf16.mxu0 %v911_v21  ;;  %879 = vmatprep.subr.bf16.mxu1 %v911_v21 }
  0x32   : > { %823 = vmatpush3.bf16.msra.mxu0 %v912_v22  ;;  %887 = vmatpush3.bf16.msra.mxu1 %v912_v22  ;;  %v549_v22 = vadd.s32 16, %v1061_v2 }
  0x35   : > { %449 = vmatmul.mubr.bf16.vlgmr.msra.gmra.mrb[0].mxu0 %v265_v31  ;;  %481 = vmatmul.mubr.bf16.vlgmr.msra.gmra.mrb[0].mxu1 %v273_v32 }
  0x36   : > { %456 = vmatprep.mubr.bf16.mxu0 %v268_v33  ;;  %488 = vmatprep.mubr.bf16.mxu1 %v276_v34  ;;  %v566_v34 = vadd.s32 %v1063_v3, %v549_v22 }
  0x38   : > { %vm582_vm2 = vcmp.lt.s32.totalorder %v566_v34, 256  ;;  %v554_v34 = vadd.s32 56, %v1061_v2 }
  0x3d   : > { %457 = vmatmul.mubr.bf16.gmra.mrb[4].mxu0 %v267_v43  ;;  %489 = vmatmul.mubr.bf16.gmra.mrb[4].mxu1 %v275_v44 }
  0x3e   : > { %464 = vmatprep.mubr.bf16.mxu0 %v270_v45  ;;  %496 = vmatprep.mubr.bf16.mxu1 %v278_v46  ;;  %v567_v45 = vadd.s32 %v1063_v3, %v550_v27  ;;  %v553_v27 = vadd.s32 48, %v1061_v2 }
  0x40   : > { %vm583_vm3 = vcmp.lt.s32.totalorder %v567_v45, 256  ;;  %v570_v45 = vadd.s32 %v1063_v3, %v553_v27 }
  0x42   : > { %vm586_vm6 = vcmp.lt.s32.totalorder %v570_v45, 256 }
  0x45   : > { %465 = vmatmul.mubr.bf16.gmra.mrb[8].mxu0 %v269_v55  ;;  %497 = vmatmul.mubr.bf16.gmra.mrb[8].mxu1 %v277_v56 }
  0x46   : > { %472 = vmatprep.mubr.bf16.mxu0 %v272_v57  ;;  %504 = vmatprep.mubr.bf16.mxu1 %v280_v58  ;;  %v552_v57 = vadd.s32 40, %v1061_v2 }
  0x4d   : > { %473 = vmatmul.mubr.bf16.gmra.mrb[12].mxu0 %v271_v63  ;;  %505 = vmatmul.mubr.bf16.gmra.mrb[12].mxu1 %v279_v0 }
 0x108   : > { %v824_v5 = vpop.f32.mrb[0].mxu0  ;;  %v848_v6 = vpop.f32.mrb[0].mxu1 }
 0x109   : > { %v825_v8 = vpop.f32.mrb[1].mxu0  ;;  %v849_v10 = vpop.f32.mrb[1].mxu1 }
 0x10a   : > { %v826_v11 = vadd.f32 %v825_v8, %v824_v5  ;;  %v827_v12 = vpop.f32.mrb[2].mxu0  ;;  %v850_v13 = vadd.f32 %v849_v10, %v848_v6  ;;  %v851_v14 = vpop.f32.mrb[2].mxu1  ;;  %v555_v8 = vadd.s32 64, %v1061_v2 }
 0x10b   : > { %v828_v15 = vpop.f32.mrb[3].mxu0  ;;  %v852_v17 = vpop.f32.mrb[3].mxu1 }
 0x10c   : > { %v451_v18 = vadd.f32 %v826_v11, %v1069_v7  ;;  %v829_v19 = vadd.f32 %v828_v15, %v827_v12  ;;  %v1076_v20 = vadd.f32 %v850_v13, %v1069_v7  ;;  %v853_v21 = vadd.f32 %v852_v17, %v851_v14 }
 0x10d   : > { %v569_v17 = vadd.s32 %v1063_v3, %v552_v57 }
 0x10e   : > { %v513_v23 = vmax.f32 %v451_v18, 0.0  ;;  %v454_v24 = vadd.f32 %v829_v19, %v1069_v7  ;;  %v521_v25 = vmax.f32 %v1076_v20, 0.0  ;;  %v1082_v26 = vadd.f32 %v853_v21, %v1069_v7 }
 0x10f   : > { %vm585_vm5 = vcmp.lt.s32.totalorder %v569_v17, 256  ;;  %v560_v17 = vadd.s32 104, %v1061_v2 }
 0x110   : > { %529 = vst [vmem:[%s971_s28] sm:$0xff] %v513_v23  ;;  %v628_v28 = vsel %vm580_vm0, %v513_v23, 0.0  ;;  %v514_v29 = vmax.f32 %v454_v24, 0.0  ;;  %v830_v30 = vpop.f32.mrb[4].mxu0  ;;  %537 = vst [vmem:[%s971_s28 + $0x40] sm:$0xff] %v521_v25  ;;  %v522_v31 = vmax.f32 %v1082_v26, 0.0  ;;  %v854_v32 = vpop.f32.mrb[4].mxu1 }
 0x111   : > { %v831_v33 = vpop.f32.mrb[5].mxu0  ;;  %v855_v35 = vpop.f32.mrb[5].mxu1  ;;  %v669_v41 = vmul.f32 %v628_v28, %v628_v28 }
 0x112   : > { %530 = vst [vmem:[%s971_s28 + $0x8] sm:$0xff] %v514_v29  ;;  %v629_v36 = vsel %vm581_vm1, %v514_v29, 0.0  ;;  %v832_v37 = vadd.f32 %v831_v33, %v830_v30  ;;  %v833_v38 = vpop.f32.mrb[6].mxu0  ;;  %538 = vst [vmem:[%s971_s28 + $0x48] sm:$0xff] %v522_v31  ;;  %v856_v39 = vadd.f32 %v855_v35, %v854_v32  ;;  %v857_v40 = vpop.f32.mrb[6].mxu1  ;;  %v556_v33 = vadd.s32 72, %v1061_v2 }
 0x113   : > { %v645_v42 = vadd.f32 %v629_v36, %v628_v28  ;;  %v670_v43 = vmul.f32 %v629_v36, %v629_v36  ;;  %v834_v44 = vpop.f32.mrb[7].mxu0  ;;  %v858_v46 = vpop.f32.mrb[7].mxu1  ;;  %v572_v35 = vadd.s32 %v1063_v3, %v555_v8 }
 0x114   : > { %v459_v47 = vadd.f32 %v832_v37, %v1069_v7  ;;  %v835_v48 = vadd.f32 %v834_v44, %v833_v38  ;;  %v1098_v49 = vadd.f32 %v856_v39, %v1069_v7  ;;  %v859_v50 = vadd.f32 %v858_v46, %v857_v40 }
 0x115   : > { %v685_v51 = vadd.f32 %v670_v43, %v669_v41  ;;  %v557_v43 = vadd.s32 80, %v1061_v2  ;;  %vm588_vm7 = vcmp.lt.s32.totalorder %v572_v35, 256  ;;  %v577_v35 = vadd.s32 %v1063_v3, %v560_v17 }
 0x116   : > { %v515_v53 = vmax.f32 %v459_v47, 0.0  ;;  %v462_v54 = vadd.f32 %v835_v48, %v1069_v7  ;;  %v523_v55 = vmax.f32 %v1098_v49, 0.0  ;;  %v1104_v56 = vadd.f32 %v859_v50, %v1069_v7 }
 0x117   : > { %v558_v48 = vadd.s32 88, %v1061_v2  ;;  %v574_v8 = vadd.s32 %v1063_v3, %v557_v43  ;;  %vm593_vm13 = vcmp.lt.s32.totalorder %v577_v35, 256 }
 0x118   : > { %531 = vst [vmem:[%s971_s28 + $0x10] sm:$0xff] %v515_v53  ;;  %v630_v58 = vsel %vm582_vm2, %v515_v53, 0.0  ;;  %v516_v59 = vmax.f32 %v462_v54, 0.0  ;;  %v836_v60 = vpop.f32.mrb[8].mxu0  ;;  %539 = vst [vmem:[%s971_s28 + $0x50] sm:$0xff] %v523_v55  ;;  %v524_v61 = vmax.f32 %v1104_v56, 0.0 }
 0x119   : > { %v860_v62 = vpop.f32.mrb[8].mxu1  ;;  %v646_v63 = vadd.f32 %v645_v42, %v630_v58  ;;  %v671_v0 = vmul.f32 %v630_v58, %v630_v58  ;;  %v837_v1 = vpop.f32.mrb[9].mxu0  ;;  %vm590_vm10 = vcmp.lt.s32.totalorder %v574_v8, 256 }
 0x11a   : > { %v861_v5 = vpop.f32.mrb[9].mxu1  ;;  %532 = vst [vmem:[%s971_s28 + $0x18] sm:$0xff] %v516_v59  ;;  %v631_v6 = vsel %vm583_vm3, %v516_v59, 0.0  ;;  %v838_v9 = vadd.f32 %v837_v1, %v836_v60  ;;  %v839_v10 = vpop.f32.mrb[10].mxu0  ;;  %540 = vst [vmem:[%s971_s28 + $0x58] sm:$0xff] %v524_v61  ;;  %v571_v60 = vadd.s32 %v1063_v3, %v554_v34 }
 0x11b   : > { %v862_v11 = vadd.f32 %v861_v5, %v860_v62  ;;  %v863_v12 = vpop.f32.mrb[10].mxu1  ;;  %v686_v13 = vadd.f32 %v685_v51, %v671_v0  ;;  %v647_v14 = vadd.f32 %v646_v63, %v631_v6  ;;  %v672_v15 = vmul.f32 %v631_v6, %v631_v6  ;;  %v840_v16 = vpop.f32.mrb[11].mxu0 }
 0x11c   : > { %v864_v18 = vpop.f32.mrb[11].mxu1  ;;  %v467_v19 = vadd.f32 %v838_v9, %v1069_v7  ;;  %v841_v21 = vadd.f32 %v840_v16, %v839_v10  ;;  %v573_v5 = vadd.s32 %v1063_v3, %v556_v33  ;;  %vm587_vm8 = vcmp.lt.s32.totalorder %v571_v60, 256 }
 0x11d   : > { %v1121_v22 = vadd.f32 %v862_v11, %v1069_v7  ;;  %v865_v23 = vadd.f32 %v864_v18, %v863_v12  ;;  %v687_v24 = vadd.f32 %v686_v13, %v672_v15  ;;  %v575_v13 = vadd.s32 %v1063_v3, %v558_v48 }
 0x11e   : > { %v517_v28 = vmax.f32 %v467_v19, 0.0  ;;  %v470_v29 = vadd.f32 %v841_v21, %v1069_v7  ;;  %vm589_vm9 = vcmp.lt.s32.totalorder %v573_v5, 256 }
 0x11f   : > { %v525_v30 = vmax.f32 %v1121_v22, 0.0  ;;  %v1127_v32 = vadd.f32 %v865_v23, %v1069_v7  ;;  %v636_v23 = vsel %vm588_vm7, %v521_v25, 0.0  ;;  %v637_v34 = vsel %vm589_vm9, %v522_v31, 0.0 }
 0x120   : > { %533 = vst [vmem:[%s971_s28 + $0x20] sm:$0xff] %v517_v28  ;;  %v632_v36 = vsel %vm584_vm4, %v517_v28, 0.0  ;;  %v518_v37 = vmax.f32 %v470_v29, 0.0  ;;  %v842_v38 = vpop.f32.mrb[12].mxu0  ;;  %v866_v40 = vpop.f32.mrb[12].mxu1  ;;  %vm591_vm11 = vcmp.lt.s32.totalorder %v575_v13, 256 }
 0x121   : > { %541 = vst [vmem:[%s971_s28 + $0x60] sm:$0xff] %v525_v30  ;;  %v526_v39 = vmax.f32 %v1127_v32, 0.0  ;;  %v648_v41 = vadd.f32 %v647_v14, %v632_v36  ;;  %v673_v42 = vmul.f32 %v632_v36, %v632_v36  ;;  %v843_v44 = vpop.f32.mrb[13].mxu0  ;;  %v867_v46 = vpop.f32.mrb[13].mxu1  ;;  %v559_v14 = vadd.s32 96, %v1061_v2 }
 0x122   : > { %534 = vst [vmem:[%s971_s28 + $0x28] sm:$0xff] %v518_v37  ;;  %v633_v47 = vsel %vm585_vm5, %v518_v37, 0.0  ;;  %v844_v50 = vadd.f32 %v843_v44, %v842_v38  ;;  %v845_v51 = vpop.f32.mrb[14].mxu0  ;;  %v868_v52 = vadd.f32 %v867_v46, %v866_v40  ;;  %v869_v53 = vpop.f32.mrb[14].mxu1  ;;  %v562_v36 = vadd.s32 120, %v1061_v2 }
 0x123   : > { %542 = vst [vmem:[%s971_s28 + $0x68] sm:$0xff] %v526_v39  ;;  %v688_v54 = vadd.f32 %v687_v24, %v673_v42  ;;  %v649_v57 = vadd.f32 %v648_v41, %v633_v47  ;;  %v674_v58 = vmul.f32 %v633_v47, %v633_v47  ;;  %v846_v59 = vpop.f32.mrb[15].mxu0  ;;  %v870_v62 = vpop.f32.mrb[15].mxu1  ;;  %v576_v33 = vadd.s32 %v1063_v3, %v559_v14 }
 0x124   : > { %v475_v63 = vadd.f32 %v844_v50, %v1069_v7  ;;  %v847_v0 = vadd.f32 %v846_v59, %v845_v51  ;;  %v507_v1 = vadd.f32 %v868_v52, %v1069_v7  ;;  %v871_v4 = vadd.f32 %v870_v62, %v869_v53 }
 0x125   : > { %v689_v6 = vadd.f32 %v688_v54, %v674_v58  ;;  %v677_v37 = vmul.f32 %v636_v23, %v636_v23  ;;  %v638_v40 = vsel %vm590_vm10, %v523_v55, 0.0  ;;  %v678_v41 = vmul.f32 %v637_v34, %v637_v34 }
 0x126   : > { %v519_v9 = vmax.f32 %v475_v63, 0.0  ;;  %v478_v10 = vadd.f32 %v847_v0, %v1069_v7  ;;  %v527_v11 = vmax.f32 %v507_v1, 0.0  ;;  %v510_v12 = vadd.f32 %v871_v4, %v1069_v7 }
 0x127   : > { %v561_v7 = vadd.s32 112, %v1061_v2  ;;  %vm592_vm12 = vcmp.lt.s32.totalorder %v576_v33, 256  ;;  %v639_v26 = vsel %vm591_vm11, %v524_v61, 0.0  ;;  %v579_v31 = vadd.s32 %v1063_v3, %v562_v36 }
 0x128   : > { %535 = vst [vmem:[%s971_s28 + $0x30] sm:$0xff] %v519_v9  ;;  %v634_v15 = vsel %vm586_vm6, %v519_v9, 0.0  ;;  %v520_v16 = vmax.f32 %v478_v10, 0.0  ;;  %543 = vst [vmem:[%s971_s28 + $0x70] sm:$0xff] %v527_v11  ;;  %v528_v18 = vmax.f32 %v510_v12, 0.0  ;;  %v679_v2 = vmul.f32 %v638_v40, %v638_v40 }
 0x129   : > { %v650_v19 = vadd.f32 %v649_v57, %v634_v15  ;;  %v675_v21 = vmul.f32 %v634_v15, %v634_v15  ;;  %v578_v38 = vadd.s32 %v1063_v3, %v561_v7  ;;  %v640_v46 = vsel %vm592_vm12, %v525_v30, 0.0  ;;  %v644_v9 = vld [vmem:[%s1197_s4] sm:$0x1] }
 0x12a   : > { %536 = vst [vmem:[%s971_s28 + $0x38] sm:$0xff] %v520_v16  ;;  %v635_v24 = vsel %vm587_vm8, %v520_v16, 0.0  ;;  %544 = vst [vmem:[%s971_s28 + $0x78] sm:$0xff] %v528_v18  ;;  %v680_v49 = vmul.f32 %v639_v26, %v639_v26  ;;  %v641_v48 = vsel %vm593_vm13, %v526_v39, 0.0  ;;  %v681_v56 = vmul.f32 %v640_v46, %v640_v46  ;;  %v668_v12 = vld [vmem:[%s1198_s5] sm:$0x1] }
 0x12b   : > { %v690_v27 = vadd.f32 %v689_v6, %v675_v21  ;;  %v651_v28 = vadd.f32 %v650_v19, %v635_v24  ;;  %v676_v29 = vmul.f32 %v635_v24, %v635_v24  ;;  %vm594_vm14 = vcmp.lt.s32.totalorder %v578_v38, 256 }
 0x12c   : > { %v642_v50 = vsel %vm594_vm14, %v527_v11, 0.0  ;;  %vm595_vm15 = vcmp.lt.s32.totalorder %v579_v31, 256  ;;  %v682_v53 = vmul.f32 %v641_v48, %v641_v48 }
 0x12d   : > { %v652_v20 = vadd.f32 %v651_v28, %v636_v23  ;;  %v691_v25 = vadd.f32 %v690_v27, %v676_v29  ;;  %v683_v54 = vmul.f32 %v642_v50, %v642_v50  ;;  %v643_v57 = vsel %vm595_vm15, %v528_v18, 0.0 }
 0x12e   : > { %v684_v60 = vmul.f32 %v643_v57, %v643_v57 }
 0x12f   : > { %v653_v42 = vadd.f32 %v652_v20, %v637_v34  ;;  %v692_v43 = vadd.f32 %v691_v25, %v677_v37 }
 0x131   : > { %v693_v44 = vadd.f32 %v692_v43, %v678_v41  ;;  %v654_v45 = vadd.f32 %v653_v42, %v638_v40 }
 0x133   : > { %v655_v47 = vadd.f32 %v654_v45, %v639_v26  ;;  %v694_v55 = vadd.f32 %v693_v44, %v679_v2 }
 0x135   : > { %v656_v51 = vadd.f32 %v655_v47, %v640_v46  ;;  %v695_v61 = vadd.f32 %v694_v55, %v680_v49 }
 0x137   : > { %v696_v52 = vadd.f32 %v695_v61, %v681_v56  ;;  %v657_v3 = vadd.f32 %v656_v51, %v641_v48 }
 0x139   : > { %v697_v58 = vadd.f32 %v696_v52, %v682_v53  ;;  %v658_v59 = vadd.f32 %v657_v3, %v642_v50 }
 0x13b   : > { %v698_v22 = vadd.f32 %v697_v58, %v683_v54  ;;  %v659_v30 = vadd.f32 %v658_v59, %v643_v57 }
 0x13d   : > { %v660_v62 = vrot.slane %v659_v30, 4  ;;  %v699_v63 = vadd.f32 %v698_v22, %v684_v60 }
 0x13f   : > { %v661_v0 = vadd.f32 %v660_v62, %v659_v30  ;;  %v700_v32 = vrot.slane %v699_v63, 4 }
 0x141   : > { %v662_v39 = vrot.slane %v661_v0, 2  ;;  %v701_v1 = vadd.f32 %v700_v32, %v699_v63 }
 0x143   : > { %v663_v4 = vadd.f32 %v662_v39, %v661_v0  ;;  %v702_v5 = vrot.slane %v701_v1, 2 }
 0x145   : > { %v664_v6 = vrot.slane %v663_v4, 1  ;;  %v703_v8 = vadd.f32 %v702_v5, %v701_v1 }
 0x147   : > { %v665_v10 = vadd.f32 %v664_v6, %v663_v4  ;;  %v704_v11 = vrot.slane %v703_v8, 1 }
 0x149   : > { %v666_v13 = vadd.f32 %v665_v10, %v644_v9  ;;  %v705_v14 = vadd.f32 %v704_v11, %v703_v8 }
 0x14b   : > { %667 = vst [vmem:[%s1197_s4] sm:$0x1] %v666_v13  ;;  %v706_v15 = vadd.f32 %v705_v14, %v668_v12 }
 0x14d   : > { %707 = vst [vmem:[%s1198_s5] sm:$0x1] %v706_v15 }
 0x14e PF: > { %s16_s18 = sadd.s32 1, %s919_s18  }
 0x14f   : > { %p13_p5 = scmp.ge.s32.totalorder %s16_s18, 4  }
 0x151   :  { %15 = sbr.rel (!%p13_p5) target bundleno = 1 (0x1), region = 82 }

// kernel: generic_net_forward.5
= control target key start
LH: loop header
LB: loop body
LE: loop exit
PB: predicated region body
PF: predicated region fallthrough
CT: control target
= control target key end

     0   :  { %s1658_s18 = smov 0   ;;  %s2167_s0 = inlined_call_operand.vmem [shape: f32[256,512], index: 0, kind: input, shape index: {}]   ;;  %s2168_s1 = inlined_call_operand.vmem [shape: bf16[512,256], index: 1, kind: input, shape index: {}]   ;;  %s2169_s2 = inlined_call_operand.vmem [shape: f32[1,256], index: 2, kind: input, shape index: {}]   ;;  %s2170_s3 = inlined_call_operand.vmem [shape: f32[256,256], index: 3, kind: output, shape index: {0}]   ;;  %s2171_s4 = inlined_call_operand.vmem [shape: f32[1,256], index: 4, kind: output, shape index: {1}]   ;;  %s2172_s5 = inlined_call_operand.vmem [shape: f32[1,256], index: 5, kind: output, shape index: {2}]  }
   0x1 LB: > { %s1664_s19 = sadd.s32 4294967295, %s1624_s18   ;;  %p1371_p0 = scmp.ge.s32.totalorder %s1624_s18, 1  ;;  %s1624_s18 = sphi %s1658_s18, %s16_s18  }
   0x2   : > { %p184_p1 = scmp.lt.s32.totalorder %s1624_s18, 3 }
   0x4   : > { %p185_p2 = pnand %p1371_p0, %p184_p1 }
   0x5   : > { %s1372_s20 = sshll.u32 (!%p185_p2), %s1664_s19, 4  ;;  %p1378_p4 = scmp.ne.s32.totalorder (!%p185_p2), %s1664_s19, 0 }
   0x6   : > { %188 = sbr.rel (%p185_p2) target bundleno = 390 (0x186), region = 32  ;;  %p215_p3 = scmp.lt.s32.totalorder (!%p185_p2), %s1372_s20, 31 }
   0xd   : > { %s2174_s20 = smov (!%p215_p3, %s1372_s20), 31  ;;  %231 = sbr.rel (%p1378_p4) target bundleno = 20 (0x14), region = 36 }
   0xe   : > { %s1446_s21 = sshll.u32 %s2174_s20, 5  ;;  %s1447_s22 = sshll.u32 %s2174_s20, 4  ;;  %v232_v0 = vlaneseq (!%p1378_p4)  ;;  %v1626_v1 = vmov (!%p1378_p4), 0.0  }
   0xf   : > { %s1672_s25 = scalar_lea.vmem %s2167_s0, %s1446_s21  ;;  %s1677_s28 = scalar_lea.vmem %s2170_s3, %s1447_s22 }
  0x10   : > { %vm234_vm0 = vcmp.lt.s32.totalorder (!%p1378_p4), %v232_v0, 256 }
  0x11   : > { %236 = vst.msk [vmem:[%s2171_s4] sm:$0x3] (!%p1378_p4), %vm234_vm0, %v1626_v1  ;;  %237 = vst.msk [vmem:[%s2172_s5] sm:$0x3] (!%p1378_p4), %vm234_vm0, %v1626_v1 }
  0x14 PF: > { %v1522_v2 = vld [vmem:[%s2168_s1 + $0x4] ss:$8 sps:$4 sm:$0xff]   ;;  %v1526_v4 = vld [vmem:[%s2168_s1] ss:$8 sps:$4 sm:$0xff]   ;;  %v1528_v6 = vld [vmem:[%s2168_s1 + $0x14] ss:$8 sps:$4 sm:$0xff]  }
  0x15   : > { %v1524_v3 = vld [vmem:[%s2168_s1 + $0x104] ss:$8 sps:$4 sm:$0xff]   ;;  %730 = vmatprep.subr.bf16.mxu1 %v1522_v2  ;;  %v1527_v5 = vld [vmem:[%s2168_s1 + $0x100] ss:$8 sps:$4 sm:$0xff]   ;;  %v1530_v7 = vld [vmem:[%s2168_s1 + $0x114] ss:$8 sps:$4 sm:$0xff]  }
  0x16   : > { %843 = vmatprep.subr.bf16.mxu0 %v1524_v3  ;;  %731 = vmatpush1.bf16.msra.mxu1 %v1526_v4  ;;  %v1532_v8 = vld [vmem:[%s2168_s1 + $0x10] ss:$8 sps:$4 sm:$0xff]   ;;  %v1534_v10 = vld [vmem:[%s2168_s1 + $0x24] ss:$8 sps:$4 sm:$0xff]   ;;  %v1538_v12 = vld [vmem:[%s2168_s1 + $0x20] ss:$8 sps:$4 sm:$0xff]  }
  0x17   : > { %844 = vmatpush1.bf16.msra.mxu0 %v1527_v5  ;;  %732 = vmatprep.subr.bf16.mxu1 %v1528_v6  ;;  %v1533_v9 = vld [vmem:[%s2168_s1 + $0x110] ss:$8 sps:$4 sm:$0xff]   ;;  %v1536_v11 = vld [vmem:[%s2168_s1 + $0x124] ss:$8 sps:$4 sm:$0xff]   ;;  %v1539_v13 = vld [vmem:[%s2168_s1 + $0x120] ss:$8 sps:$4 sm:$0xff]  }
  0x18   : > { %845 = vmatprep.subr.bf16.mxu0 %v1530_v7  ;;  %v1540_v14 = vld [vmem:[%s2168_s1 + $0x34] ss:$8 sps:$4 sm:$0xff]   ;;  %v1544_v16 = vld [vmem:[%s2168_s1 + $0x30] ss:$8 sps:$4 sm:$0xff]   ;;  %v1546_v18 = vld [vmem:[%s2168_s1 + $0x44] ss:$8 sps:$4 sm:$0xff]  }
  0x19   : > { %v1542_v15 = vld [vmem:[%s2168_s1 + $0x134] ss:$8 sps:$4 sm:$0xff]   ;;  %v1545_v17 = vld [vmem:[%s2168_s1 + $0x130] ss:$8 sps:$4 sm:$0xff]   ;;  %v1548_v19 = vld [vmem:[%s2168_s1 + $0x144] ss:$8 sps:$4 sm:$0xff]  }
  0x1a   : > { %733 = vmatpush1.bf16.msra.mxu1 %v1532_v8  ;;  %v1550_v20 = vld [vmem:[%s2168_s1 + $0x40] ss:$8 sps:$4 sm:$0xff]   ;;  %v1552_v22 = vld [vmem:[%s2168_s1 + $0x54] ss:$8 sps:$4 sm:$0xff]   ;;  %v1556_v24 = vld [vmem:[%s2168_s1 + $0x50] ss:$8 sps:$4 sm:$0xff]  }
  0x1b   : > { %846 = vmatpush1.bf16.msra.mxu0 %v1533_v9  ;;  %734 = vmatprep.subr.bf16.mxu1 %v1534_v10  ;;  %v1551_v21 = vld [vmem:[%s2168_s1 + $0x140] ss:$8 sps:$4 sm:$0xff]   ;;  %v1554_v23 = vld [vmem:[%s2168_s1 + $0x154] ss:$8 sps:$4 sm:$0xff]   ;;  %v1557_v25 = vld [vmem:[%s2168_s1 + $0x150] ss:$8 sps:$4 sm:$0xff]  }
  0x1c   : > { %847 = vmatprep.subr.bf16.mxu0 %v1536_v11  ;;  %v1558_v26 = vld [vmem:[%s2168_s1 + $0x64] ss:$8 sps:$4 sm:$0xff]   ;;  %v1562_v28 = vld [vmem:[%s2168_s1 + $0x60] ss:$8 sps:$4 sm:$0xff]   ;;  %v1564_v30 = vld [vmem:[%s2168_s1 + $0x74] ss:$8 sps:$4 sm:$0xff]  }
  0x1d   : > { %v1560_v27 = vld [vmem:[%s2168_s1 + $0x164] ss:$8 sps:$4 sm:$0xff]   ;;  %v1563_v29 = vld [vmem:[%s2168_s1 + $0x160] ss:$8 sps:$4 sm:$0xff]   ;;  %v1566_v31 = vld [vmem:[%s2168_s1 + $0x174] ss:$8 sps:$4 sm:$0xff]  }
  0x1e   : > { %735 = vmatpush1.bf16.msra.mxu1 %v1538_v12  ;;  %v1568_v32 = vld [vmem:[%s2168_s1 + $0x70] ss:$8 sps:$4 sm:$0xff]   ;;  %v1570_v34 = vld [vmem:[%s2168_s1 + $0x84] ss:$8 sps:$4 sm:$0xff]   ;;  %v1574_v36 = vld [vmem:[%s2168_s1 + $0x80] ss:$8 sps:$4 sm:$0xff]  }
  0x1f   : > { %848 = vmatpush1.bf16.msra.mxu0 %v1539_v13  ;;  %736 = vmatprep.subr.bf16.mxu1 %v1540_v14  ;;  %v1569_v33 = vld [vmem:[%s2168_s1 + $0x170] ss:$8 sps:$4 sm:$0xff]   ;;  %v1572_v35 = vld [vmem:[%s2168_s1 + $0x184] ss:$8 sps:$4 sm:$0xff]   ;;  %v1575_v37 = vld [vmem:[%s2168_s1 + $0x180] ss:$8 sps:$4 sm:$0xff]  }
  0x20   : > { %849 = vmatprep.subr.bf16.mxu0 %v1542_v15  ;;  %v1576_v38 = vld [vmem:[%s2168_s1 + $0x94] ss:$8 sps:$4 sm:$0xff]   ;;  %v1580_v40 = vld [vmem:[%s2168_s1 + $0x90] ss:$8 sps:$4 sm:$0xff]   ;;  %v1582_v42 = vld [vmem:[%s2168_s1 + $0xa4] ss:$8 sps:$4 sm:$0xff]  }
  0x21   : > { %v1578_v39 = vld [vmem:[%s2168_s1 + $0x194] ss:$8 sps:$4 sm:$0xff]   ;;  %v1581_v41 = vld [vmem:[%s2168_s1 + $0x190] ss:$8 sps:$4 sm:$0xff]   ;;  %v1584_v43 = vld [vmem:[%s2168_s1 + $0x1a4] ss:$8 sps:$4 sm:$0xff]  }
  0x22   : > { %737 = vmatpush1.bf16.msra.mxu1 %v1544_v16  ;;  %v1586_v44 = vld [vmem:[%s2168_s1 + $0xa0] ss:$8 sps:$4 sm:$0xff]   ;;  %v1588_v46 = vld [vmem:[%s2168_s1 + $0xb4] ss:$8 sps:$4 sm:$0xff]   ;;  %v1592_v52 = vld [vmem:[%s2168_s1 + $0xb0] ss:$8 sps:$4 sm:$0xff]  }
  0x23   : > { %850 = vmatpush1.bf16.msra.mxu0 %v1545_v17  ;;  %738 = vmatprep.subr.bf16.mxu1 %v1546_v18  ;;  %v1587_v45 = vld [vmem:[%s2168_s1 + $0x1a0] ss:$8 sps:$4 sm:$0xff]   ;;  %v1590_v47 = vld [vmem:[%s2168_s1 + $0x1b4] ss:$8 sps:$4 sm:$0xff]   ;;  %v1593_v53 = vld [vmem:[%s2168_s1 + $0x1b0] ss:$8 sps:$4 sm:$0xff]  }
  0x24   : > { %851 = vmatprep.subr.bf16.mxu0 %v1548_v19  ;;  %v239_v48 = vld [vmem:[%s1672_s25 + $0x8] sm:$0xff]  ;;  %v241_v50 = vld [vmem:[%s1672_s25 + $0x18] sm:$0xff]  ;;  %v238_v8 = vld [vmem:[%s1672_s25] sm:$0xff]  ;;  %s1443_s12 = sshll.u32 %s1664_s19, 7 }
  0x25   : > { %v243_v49 = vld [vmem:[%s1672_s25 + $0x28] sm:$0xff]  ;;  %v245_v51 = vld [vmem:[%s1672_s25 + $0x38] sm:$0xff]  ;;  %v242_v9 = vld [vmem:[%s1672_s25 + $0x20] sm:$0xff] }
  0x26   : > { %739 = vmatpush1.bf16.msra.mxu1 %v1550_v20  ;;  %v303_v54 = vpack.c.bf16 %v243_v49, %v239_v48  ;;  %v305_v55 = vpack.c.bf16 %v245_v51, %v241_v50  ;;  %v1594_v56 = vld [vmem:[%s2168_s1 + $0xc4] ss:$8 sps:$4 sm:$0xff]   ;;  %v1598_v58 = vld [vmem:[%s2168_s1 + $0xc0] ss:$8 sps:$4 sm:$0xff]   ;;  %v1600_v60 = vld [vmem:[%s2168_s1 + $0xd4] ss:$8 sps:$4 sm:$0xff]   ;;  %v302_v16 = vpack.c.bf16 %v242_v9, %v238_v8 }
  0x27   : > { %852 = vmatpush1.bf16.msra.mxu0 %v1551_v21  ;;  %740 = vmatprep.subr.bf16.mxu1 %v1552_v22  ;;  %v1596_v57 = vld [vmem:[%s2168_s1 + $0x1c4] ss:$8 sps:$4 sm:$0xff]   ;;  %v1599_v59 = vld [vmem:[%s2168_s1 + $0x1c0] ss:$8 sps:$4 sm:$0xff]   ;;  %v1602_v61 = vld [vmem:[%s2168_s1 + $0x1d4] ss:$8 sps:$4 sm:$0xff]  }
  0x28   : > { %853 = vmatprep.subr.bf16.mxu0 %v1554_v23  ;;  %762 = vmatprep.mubr.bf16.mxu1 %v303_v54  ;;  %v1604_v62 = vld [vmem:[%s2168_s1 + $0xd0] ss:$8 sps:$4 sm:$0xff]   ;;  %v1606_v0 = vld [vmem:[%s2168_s1 + $0xe4] ss:$8 sps:$4 sm:$0xff]   ;;  %v1610_v2 = vld [vmem:[%s2168_s1 + $0xe0] ss:$8 sps:$4 sm:$0xff]  }
  0x29   : > { %875 = vmatprep.mubr.bf16.mxu0 %v305_v55  ;;  %v1605_v63 = vld [vmem:[%s2168_s1 + $0x1d0] ss:$8 sps:$4 sm:$0xff]   ;;  %v1608_v1 = vld [vmem:[%s2168_s1 + $0x1e4] ss:$8 sps:$4 sm:$0xff]   ;;  %v1611_v3 = vld [vmem:[%s2168_s1 + $0x1e0] ss:$8 sps:$4 sm:$0xff]  }
  0x2a   : > { %741 = vmatpush1.bf16.msra.mxu1 %v1556_v24  ;;  %v1612_v4 = vld [vmem:[%s2168_s1 + $0xf4] ss:$8 sps:$4 sm:$0xff]   ;;  %v1616_v6 = vld [vmem:[%s2168_s1 + $0xf0] ss:$8 sps:$4 sm:$0xff]   ;;  %v247_v12 = vld [vmem:[%s1672_s25 + $0x48] sm:$0xff] }
  0x2b   : > { %854 = vmatpush1.bf16.msra.mxu0 %v1557_v25  ;;  %742 = vmatprep.subr.bf16.mxu1 %v1558_v26  ;;  %v1614_v5 = vld [vmem:[%s2168_s1 + $0x1f4] ss:$8 sps:$4 sm:$0xff]   ;;  %v1617_v7 = vld [vmem:[%s2168_s1 + $0x1f0] ss:$8 sps:$4 sm:$0xff]   ;;  %v251_v13 = vld [vmem:[%s1672_s25 + $0x68] sm:$0xff] }
  0x2c   : > { %855 = vmatprep.subr.bf16.mxu0 %v1560_v27  ;;  %v240_v10 = vld [vmem:[%s1672_s25 + $0x10] sm:$0xff]  ;;  %v249_v14 = vld [vmem:[%s1672_s25 + $0x58] sm:$0xff]  ;;  %v307_v18 = vpack.c.bf16 %v251_v13, %v247_v12  ;;  %v246_v20 = vld [vmem:[%s1672_s25 + $0x40] sm:$0xff] }
  0x2d   : > { %v244_v11 = vld [vmem:[%s1672_s25 + $0x30] sm:$0xff]  ;;  %v253_v15 = vld [vmem:[%s1672_s25 + $0x78] sm:$0xff]  ;;  %v250_v21 = vld [vmem:[%s1672_s25 + $0x60] sm:$0xff] }
  0x2e   : > { %743 = vmatpush1.bf16.msra.mxu1 %v1562_v28  ;;  %v304_v17 = vpack.c.bf16 %v244_v11, %v240_v10  ;;  %v309_v19 = vpack.c.bf16 %v253_v15, %v249_v14  ;;  %v248_v22 = vld [vmem:[%s1672_s25 + $0x50] sm:$0xff]  ;;  %v255_v24 = vld [vmem:[%s1672_s25 + $0x88] sm:$0xff]  ;;  %v257_v26 = vld [vmem:[%s1672_s25 + $0x98] sm:$0xff]  ;;  %v306_v28 = vpack.c.bf16 %v250_v21, %v246_v20 }
  0x2f   : > { %856 = vmatpush1.bf16.msra.mxu0 %v1563_v29  ;;  %744 = vmatprep.subr.bf16.mxu1 %v1564_v30  ;;  %v252_v23 = vld [vmem:[%s1672_s25 + $0x70] sm:$0xff]  ;;  %v259_v25 = vld [vmem:[%s1672_s25 + $0xa8] sm:$0xff]  ;;  %v261_v27 = vld [vmem:[%s1672_s25 + $0xb8] sm:$0xff] }
  0x30   : > { %857 = vmatprep.subr.bf16.mxu0 %v1566_v31  ;;  %v308_v29 = vpack.c.bf16 %v252_v23, %v248_v22  ;;  %v311_v30 = vpack.c.bf16 %v259_v25, %v255_v24  ;;  %v313_v31 = vpack.c.bf16 %v261_v27, %v257_v26  ;;  %v271_v48 = vld [vmem:[%s1672_s25 + $0x108] sm:$0xff]  ;;  %v273_v50 = vld [vmem:[%s1672_s25 + $0x118] sm:$0xff] }
  0x31   : > { %v275_v49 = vld [vmem:[%s1672_s25 + $0x128] sm:$0xff]  ;;  %v277_v51 = vld [vmem:[%s1672_s25 + $0x138] sm:$0xff] }
  0x32   : > { %745 = vmatpush1.bf16.msra.mxu1 %v1568_v32  ;;  %v254_v32 = vld [vmem:[%s1672_s25 + $0x80] sm:$0xff]  ;;  %v319_v54 = vpack.c.bf16 %v275_v49, %v271_v48  ;;  %v321_v55 = vpack.c.bf16 %v277_v51, %v273_v50  ;;  %v287_v8 = vld [vmem:[%s1672_s25 + $0x188] sm:$0xff]  ;;  %v289_v10 = vld [vmem:[%s1672_s25 + $0x198] sm:$0xff] }
  0x33   : > { %858 = vmatpush1.bf16.msra.mxu0 %v1569_v33  ;;  %746 = vmatprep.subr.bf16.mxu1 %v1570_v34  ;;  %v258_v33 = vld [vmem:[%s1672_s25 + $0xa0] sm:$0xff]  ;;  %v256_v34 = vld [vmem:[%s1672_s25 + $0x90] sm:$0xff]  ;;  %v291_v9 = vld [vmem:[%s1672_s25 + $0x1a8] sm:$0xff] }
  0x34   : > { %859 = vmatprep.subr.bf16.mxu0 %v1572_v35  ;;  %v260_v35 = vld [vmem:[%s1672_s25 + $0xb0] sm:$0xff]  ;;  %v293_v11 = vld [vmem:[%s1672_s25 + $0x1b8] sm:$0xff]  ;;  %v327_v14 = vpack.c.bf16 %v291_v9, %v287_v8  ;;  %v295_v20 = vld [vmem:[%s1672_s25 + $0x1c8] sm:$0xff] }
  0x35   : > { %v329_v15 = vpack.c.bf16 %v293_v11, %v289_v10  ;;  %v299_v21 = vld [vmem:[%s1672_s25 + $0x1e8] sm:$0xff]  ;;  %v297_v22 = vld [vmem:[%s1672_s25 + $0x1d8] sm:$0xff] }
  0x36   : > { %747 = vmatpush1.bf16.msra.mxu1 %v1574_v36  ;;  %v263_v36 = vld [vmem:[%s1672_s25 + $0xc8] sm:$0xff]  ;;  %v301_v23 = vld [vmem:[%s1672_s25 + $0x1f8] sm:$0xff]  ;;  %v331_v26 = vpack.c.bf16 %v299_v21, %v295_v20 }
  0x37   : > { %860 = vmatpush1.bf16.msra.mxu0 %v1575_v37  ;;  %748 = vmatprep.subr.bf16.mxu1 %v1576_v38  ;;  %v267_v37 = vld [vmem:[%s1672_s25 + $0xe8] sm:$0xff]  ;;  %v265_v38 = vld [vmem:[%s1672_s25 + $0xd8] sm:$0xff]  ;;  %v333_v27 = vpack.c.bf16 %v301_v23, %v297_v22 }
  0x38   : > { %861 = vmatprep.subr.bf16.mxu0 %v1578_v39  ;;  %v269_v39 = vld [vmem:[%s1672_s25 + $0xf8] sm:$0xff] }
  0x3a   : > { %749 = vmatpush1.bf16.msra.mxu1 %v1580_v40  ;;  %v310_v40 = vpack.c.bf16 %v258_v33, %v254_v32 }
  0x3b   : > { %862 = vmatpush1.bf16.msra.mxu0 %v1581_v41  ;;  %750 = vmatprep.subr.bf16.mxu1 %v1582_v42  ;;  %v312_v41 = vpack.c.bf16 %v260_v35, %v256_v34  ;;  %v315_v42 = vpack.c.bf16 %v267_v37, %v263_v36  ;;  %v400_v34 = vlaneseq  ;;  %v398_v37 = vld [vmem:[%s2169_s2] sm:$0x3] }
  0x3c   : > { %863 = vmatprep.subr.bf16.mxu0 %v1584_v43  ;;  %v317_v43 = vpack.c.bf16 %v269_v39, %v265_v38 }
  0x3d   : > { %v1943_v35 = vshrl.u32 %v400_v34, 7 }
  0x3e   : > { %751 = vmatpush1.bf16.msra.mxu1 %v1586_v44  ;;  %v262_v44 = vld [vmem:[%s1672_s25 + $0xc0] sm:$0xff] }
  0x3f   : > { %864 = vmatpush1.bf16.msra.mxu0 %v1587_v45  ;;  %752 = vmatprep.subr.bf16.mxu1 %v1588_v46  ;;  %v266_v45 = vld [vmem:[%s1672_s25 + $0xe0] sm:$0xff]  ;;  %v264_v46 = vld [vmem:[%s1672_s25 + $0xd0] sm:$0xff]  ;;  %v402_v36 = vsub.s32 0, %v1943_v35  ;;  %v406_v38 = vsub.s32 1, %v1943_v35 }
  0x40   : > { %865 = vmatprep.subr.bf16.mxu0 %v1590_v47  ;;  %v268_v47 = vld [vmem:[%s1672_s25 + $0xf0] sm:$0xff] }
  0x41   : > { %v1951_v39 = vrot.slane %v398_v37, %v402_v36 }
  0x42   : > { %753 = vmatpush1.bf16.msra.mxu1 %v1592_v52  ;;  %v314_v52 = vpack.c.bf16 %v266_v45, %v262_v44  ;;  %v1025_v44 = vadd.s32 24, %v1943_v35 }
  0x43   : > { %866 = vmatpush1.bf16.msra.mxu0 %v1593_v53  ;;  %754 = vmatprep.subr.bf16.mxu1 %v1594_v56  ;;  %v316_v53 = vpack.c.bf16 %v268_v47, %v264_v46  ;;  %v270_v56 = vld [vmem:[%s1672_s25 + $0x100] sm:$0xff] }
  0x44   : > { %867 = vmatprep.subr.bf16.mxu0 %v1596_v57  ;;  %v274_v57 = vld [vmem:[%s1672_s25 + $0x120] sm:$0xff] }
  0x46   : > { %755 = vmatpush1.bf16.msra.mxu1 %v1598_v58  ;;  %v272_v58 = vld [vmem:[%s1672_s25 + $0x110] sm:$0xff] }
  0x47   : > { %868 = vmatpush1.bf16.msra.mxu0 %v1599_v59  ;;  %756 = vmatprep.subr.bf16.mxu1 %v1600_v60  ;;  %v276_v59 = vld [vmem:[%s1672_s25 + $0x130] sm:$0xff]  ;;  %v279_v60 = vld [vmem:[%s1672_s25 + $0x148] sm:$0xff] }
  0x48   : > { %869 = vmatprep.subr.bf16.mxu0 %v1602_v61  ;;  %v283_v61 = vld [vmem:[%s1672_s25 + $0x168] sm:$0xff] }
  0x4a   : > { %757 = vmatpush1.bf16.msra.mxu1 %v1604_v62  ;;  %v281_v62 = vld [vmem:[%s1672_s25 + $0x158] sm:$0xff] }
  0x4b   : > { %870 = vmatpush1.bf16.msra.mxu0 %v1605_v63  ;;  %758 = vmatprep.subr.bf16.mxu1 %v1606_v0  ;;  %v285_v63 = vld [vmem:[%s1672_s25 + $0x178] sm:$0xff]  ;;  %v318_v0 = vpack.c.bf16 %v274_v57, %v270_v56 }
  0x4c   : > { %871 = vmatprep.subr.bf16.mxu0 %v1608_v1  ;;  %v320_v1 = vpack.c.bf16 %v276_v59, %v272_v58 }
  0x4e   : > { %759 = vmatpush1.bf16.msra.mxu1 %v1610_v2  ;;  %v323_v2 = vpack.c.bf16 %v283_v61, %v279_v60  ;;  %v1026_v61 = vadd.s32 32, %v1943_v35 }
  0x4f   : > { %872 = vmatpush1.bf16.msra.mxu0 %v1611_v3  ;;  %760 = vmatprep.subr.bf16.mxu1 %v1612_v4  ;;  %v325_v3 = vpack.c.bf16 %v285_v63, %v281_v62  ;;  %v278_v4 = vld [vmem:[%s1672_s25 + $0x140] sm:$0xff] }
  0x50   : > { %873 = vmatprep.subr.bf16.mxu0 %v1614_v5  ;;  %v282_v5 = vld [vmem:[%s1672_s25 + $0x160] sm:$0xff] }
  0x51   : > { %v322_v12 = vpack.c.bf16 %v282_v5, %v278_v4 }
  0x52   : > { %761 = vmatpush1.bf16.msra.mxu1 %v1616_v6  ;;  %v280_v6 = vld [vmem:[%s1672_s25 + $0x150] sm:$0xff] }
  0x53   : > { %874 = vmatpush1.bf16.msra.mxu0 %v1617_v7  ;;  %v284_v7 = vld [vmem:[%s1672_s25 + $0x170] sm:$0xff] }
  0x54   : > { %v324_v13 = vpack.c.bf16 %v284_v7, %v280_v6  ;;  %v1027_v7 = vadd.s32 40, %v1943_v35 }
  0x55   : > { %763 = vmatmul.mubr.bf16.vlgmr.msra.gmra.mrb[0].mxu1 %v302_v16  ;;  %v286_v16 = vld [vmem:[%s1672_s25 + $0x180] sm:$0xff] }
  0x56   : > { %876 = vmatmul.mubr.bf16.vlgmr.msra.gmra.mrb[0].mxu0 %v304_v17  ;;  %772 = vmatprep.mubr.bf16.mxu1 %v307_v18  ;;  %v290_v17 = vld [vmem:[%s1672_s25 + $0x1a0] sm:$0xff]  ;;  %v288_v18 = vld [vmem:[%s1672_s25 + $0x190] sm:$0xff] }
  0x57   : > { %885 = vmatprep.mubr.bf16.mxu0 %v309_v19  ;;  %v292_v19 = vld [vmem:[%s1672_s25 + $0x1b0] sm:$0xff]  ;;  %v326_v24 = vpack.c.bf16 %v290_v17, %v286_v16 }
  0x58   : > { %v328_v25 = vpack.c.bf16 %v292_v19, %v288_v18 }
  0x5d   : > { %773 = vmatmul.mubr.bf16.gmra.mrb[4].mxu1 %v306_v28  ;;  %v294_v28 = vld [vmem:[%s1672_s25 + $0x1c0] sm:$0xff] }
  0x5e   : > { %886 = vmatmul.mubr.bf16.gmra.mrb[4].mxu0 %v308_v29  ;;  %782 = vmatprep.mubr.bf16.mxu1 %v311_v30  ;;  %v298_v29 = vld [vmem:[%s1672_s25 + $0x1e0] sm:$0xff]  ;;  %v296_v30 = vld [vmem:[%s1672_s25 + $0x1d0] sm:$0xff] }
  0x5f   : > { %895 = vmatprep.mubr.bf16.mxu0 %v313_v31  ;;  %v300_v31 = vld [vmem:[%s1672_s25 + $0x1f0] sm:$0xff]  ;;  %v330_v32 = vpack.c.bf16 %v298_v29, %v294_v28 }
  0x60   : > { %v332_v33 = vpack.c.bf16 %v300_v31, %v296_v30 }
  0x65   : > { %783 = vmatmul.mubr.bf16.gmra.mrb[8].mxu1 %v310_v40  ;;  %v1953_v40 = vstv %s1443_s12 }
  0x66   : > { %896 = vmatmul.mubr.bf16.gmra.mrb[8].mxu0 %v312_v41  ;;  %792 = vmatprep.mubr.bf16.mxu1 %v315_v42  ;;  %v1023_v41 = vadd.s32 8, %v1943_v35  ;;  %v1956_v42 = vrot.slane %v398_v37, %v406_v38  ;;  %v1039_v47 = vadd.s32 %v1953_v40, %v1943_v35  ;;  %v1969_v56 = vadd.s32 %v1953_v40, %v1025_v44 }
  0x67   : > { %905 = vmatprep.mubr.bf16.mxu0 %v317_v43  ;;  %v1024_v43 = vadd.s32 16, %v1943_v35  ;;  %v1979_v6 = vadd.s32 %v1953_v40, %v1026_v61 }
  0x68   : > { %v1040_v51 = vadd.s32 %v1953_v40, %v1023_v41  ;;  %vm1055_vm1 = vcmp.lt.s32.totalorder %v1039_v47, 256  ;;  %vm1058_vm4 = vcmp.lt.s32.totalorder %v1969_v56, 256 }
  0x69   : > { %vm1059_vm5 = vcmp.lt.s32.totalorder %v1979_v6, 256 }
  0x6a   : > { %vm1056_vm2 = vcmp.lt.s32.totalorder %v1040_v51, 256  ;;  %v1031_v51 = vadd.s32 72, %v1943_v35 }
  0x6d   : > { %793 = vmatmul.mubr.bf16.gmra.mrb[12].mxu1 %v314_v52 }
  0x6e   : > { %906 = vmatmul.mubr.bf16.gmra.mrb[12].mxu0 %v316_v53  ;;  %802 = vmatprep.mubr.bf16.mxu1 %v319_v54 }
  0x6f   : > { %915 = vmatprep.mubr.bf16.mxu0 %v321_v55  ;;  %v1966_v55 = vadd.s32 %v1953_v40, %v1024_v43  ;;  %v1996_v43 = vadd.s32 %v1953_v40, %v1027_v7 }
  0x71   : > { %vm1057_vm3 = vcmp.lt.s32.totalorder %v1966_v55, 256  ;;  %vm1060_vm6 = vcmp.lt.s32.totalorder %v1996_v43, 256 }
  0x75   : > { %803 = vmatmul.mubr.bf16.gmra.mrb[16].mxu1 %v318_v0 }
  0x76   : > { %916 = vmatmul.mubr.bf16.gmra.mrb[16].mxu0 %v320_v1  ;;  %812 = vmatprep.mubr.bf16.mxu1 %v323_v2 }
  0x77   : > { %925 = vmatprep.mubr.bf16.mxu0 %v325_v3 }
  0x7d   : > { %813 = vmatmul.mubr.bf16.gmra.mrb[20].mxu1 %v322_v12  ;;  %v1028_v12 = vadd.s32 48, %v1943_v35 }
  0x7e   : > { %926 = vmatmul.mubr.bf16.gmra.mrb[20].mxu0 %v324_v13  ;;  %822 = vmatprep.mubr.bf16.mxu1 %v327_v14  ;;  %v1029_v13 = vadd.s32 56, %v1943_v35 }
  0x7f   : > { %935 = vmatprep.mubr.bf16.mxu0 %v329_v15 }
  0x80   : > { %v2002_v47 = vadd.s32 %v1953_v40, %v1029_v13 }
  0x82   : > { %vm1062_vm8 = vcmp.lt.s32.totalorder %v2002_v47, 256 }
  0x85   : > { %823 = vmatmul.mubr.bf16.gmra.mrb[24].mxu1 %v326_v24 }
  0x86   : > { %936 = vmatmul.mubr.bf16.gmra.mrb[24].mxu0 %v328_v25  ;;  %832 = vmatprep.mubr.bf16.mxu1 %v331_v26 }
  0x87   : > { %945 = vmatprep.mubr.bf16.mxu0 %v333_v27 }
  0x8d   : > { %833 = vmatmul.mubr.bf16.gmra.mrb[28].mxu1 %v330_v32 }
  0x8e   : > { %946 = vmatmul.mubr.bf16.gmra.mrb[28].mxu0 %v332_v33 }
 0x128   : > { %v764_v45 = vpop.f32.mrb[0].mxu1 }
 0x129   : > { %v877_v46 = vpop.f32.mrb[0].mxu0  ;;  %v765_v48 = vadd.f32 %v764_v45, %v1951_v39  ;;  %v766_v49 = vpop.f32.mrb[1].mxu1 }
 0x12a   : > { %v879_v50 = vpop.f32.mrb[1].mxu0  ;;  %v767_v52 = vadd.f32 %v766_v49, %v1956_v42  ;;  %v768_v53 = vpop.f32.mrb[2].mxu1 }
 0x12b   : > { %v881_v54 = vpop.f32.mrb[2].mxu0  ;;  %v878_v57 = vadd.f32 %v877_v46, %v765_v48  ;;  %v769_v58 = vadd.f32 %v768_v53, %v1951_v39  ;;  %v770_v59 = vpop.f32.mrb[3].mxu1  ;;  %v1999_v46 = vadd.s32 %v1953_v40, %v1028_v12 }
 0x12c   : > { %v883_v60 = vpop.f32.mrb[3].mxu0  ;;  %v880_v62 = vadd.f32 %v879_v50, %v767_v52  ;;  %v771_v63 = vadd.f32 %v770_v59, %v1956_v42  ;;  %v1030_v50 = vadd.s32 64, %v1943_v35 }
 0x12d   : > { %v956_v0 = vmax.f32 %v878_v57, 0.0  ;;  %v882_v1 = vadd.f32 %v881_v54, %v769_v58  ;;  %vm1061_vm7 = vcmp.lt.s32.totalorder %v1999_v46, 256 }
 0x12e   : > { %v957_v2 = vmax.f32 %v880_v62, 0.0  ;;  %v884_v3 = vadd.f32 %v883_v60, %v771_v63 }
 0x12f   : > { %988 = vst [vmem:[%s1677_s28] sm:$0xff] %v956_v0  ;;  %v1103_v4 = vsel %vm1055_vm1, %v956_v0, 0.0  ;;  %v958_v5 = vmax.f32 %v882_v1, 0.0 }
 0x130   : > { %989 = vst [vmem:[%s1677_s28 + $0x8] sm:$0xff] %v957_v2  ;;  %v1104_v8 = vsel %vm1055_vm1, %v957_v2, 0.0  ;;  %v959_v9 = vmax.f32 %v884_v3, 0.0  ;;  %v774_v10 = vpop.f32.mrb[4].mxu1  ;;  %v1203_v14 = vmul.f32 %v1103_v4, %v1103_v4  ;;  %vm1199_vm1 = vcmp.lt.s32.totalorder %v400_v34, 256 }
 0x131   : > { %v887_v11 = vpop.f32.mrb[4].mxu0  ;;  %v1204_v15 = vmul.f32 %v1104_v8, %v1104_v8  ;;  %990 = vst [vmem:[%s1677_s28 + $0x10] sm:$0xff] %v958_v5  ;;  %v1105_v16 = vsel %vm1056_vm2, %v958_v5, 0.0  ;;  %v775_v17 = vadd.f32 %v774_v10, %v1951_v39  ;;  %v776_v18 = vpop.f32.mrb[5].mxu1 }
 0x132   : > { %v889_v19 = vpop.f32.mrb[5].mxu0  ;;  %v1136_v20 = vadd.f32 %v1105_v16, %v1103_v4  ;;  %v1205_v21 = vmul.f32 %v1105_v16, %v1105_v16  ;;  %991 = vst [vmem:[%s1677_s28 + $0x18] sm:$0xff] %v959_v9  ;;  %v1106_v22 = vsel %vm1056_vm2, %v959_v9, 0.0  ;;  %v777_v23 = vadd.f32 %v776_v18, %v1956_v42  ;;  %v778_v24 = vpop.f32.mrb[6].mxu1 }
 0x133   : > { %v891_v25 = vpop.f32.mrb[6].mxu0  ;;  %v1157_v26 = vadd.f32 %v1106_v22, %v1104_v8  ;;  %v1206_v27 = vmul.f32 %v1106_v22, %v1106_v22  ;;  %v888_v28 = vadd.f32 %v887_v11, %v775_v17  ;;  %v779_v29 = vadd.f32 %v778_v24, %v1951_v39  ;;  %v780_v30 = vpop.f32.mrb[7].mxu1 }
 0x134   : > { %v893_v31 = vpop.f32.mrb[7].mxu0  ;;  %v1235_v32 = vadd.f32 %v1205_v21, %v1203_v14  ;;  %v890_v33 = vadd.f32 %v889_v19, %v777_v23  ;;  %v781_v36 = vadd.f32 %v780_v30, %v1956_v42  ;;  %v2029_v23 = vadd.s32 %v1953_v40, %v1030_v50 }
 0x135   : > { %v1256_v37 = vadd.f32 %v1206_v27, %v1204_v15  ;;  %v960_v38 = vmax.f32 %v888_v28, 0.0  ;;  %v892_v41 = vadd.f32 %v891_v25, %v779_v29  ;;  %v2032_v24 = vadd.s32 %v1953_v40, %v1031_v51 }
 0x136   : > { %v961_v44 = vmax.f32 %v890_v33, 0.0  ;;  %v894_v45 = vadd.f32 %v893_v31, %v781_v36  ;;  %vm1063_vm9 = vcmp.lt.s32.totalorder %v2029_v23, 256 }
 0x137   : > { %992 = vst [vmem:[%s1677_s28 + $0x20] sm:$0xff] %v960_v38  ;;  %v1107_v48 = vsel %vm1057_vm3, %v960_v38, 0.0  ;;  %v962_v49 = vmax.f32 %v892_v41, 0.0  ;;  %v1033_v38 = vadd.s32 88, %v1943_v35  ;;  %vm1064_vm10 = vcmp.lt.s32.totalorder %v2032_v24, 256 }
 0x138   : > { %v1137_v52 = vadd.f32 %v1136_v20, %v1107_v48  ;;  %v1207_v53 = vmul.f32 %v1107_v48, %v1107_v48  ;;  %993 = vst [vmem:[%s1677_s28 + $0x28] sm:$0xff] %v961_v44  ;;  %v1108_v54 = vsel %vm1057_vm3, %v961_v44, 0.0  ;;  %v963_v57 = vmax.f32 %v894_v45, 0.0  ;;  %v784_v58 = vpop.f32.mrb[8].mxu1 }
 0x139   : > { %v897_v59 = vpop.f32.mrb[8].mxu0  ;;  %v1158_v60 = vadd.f32 %v1157_v26, %v1108_v54  ;;  %v1208_v61 = vmul.f32 %v1108_v54, %v1108_v54  ;;  %994 = vst [vmem:[%s1677_s28 + $0x30] sm:$0xff] %v962_v49  ;;  %v1109_v62 = vsel %vm1058_vm4, %v962_v49, 0.0  ;;  %v785_v63 = vadd.f32 %v784_v58, %v1951_v39  ;;  %v786_v0 = vpop.f32.mrb[9].mxu1 }
 0x13a   : > { %v899_v1 = vpop.f32.mrb[9].mxu0  ;;  %v1236_v2 = vadd.f32 %v1235_v32, %v1207_v53  ;;  %v1138_v3 = vadd.f32 %v1137_v52, %v1109_v62  ;;  %v1209_v4 = vmul.f32 %v1109_v62, %v1109_v62  ;;  %995 = vst [vmem:[%s1677_s28 + $0x38] sm:$0xff] %v963_v57  ;;  %v1110_v55 = vsel %vm1058_vm4, %v963_v57, 0.0  ;;  %v788_v5 = vpop.f32.mrb[10].mxu1 }
 0x13b   : > { %v901_v7 = vpop.f32.mrb[10].mxu0  ;;  %v1257_v8 = vadd.f32 %v1256_v37, %v1208_v61  ;;  %v1159_v9 = vadd.f32 %v1158_v60, %v1110_v55  ;;  %v1210_v10 = vmul.f32 %v1110_v55, %v1110_v55  ;;  %v898_v11 = vadd.f32 %v897_v59, %v785_v63  ;;  %v790_v12 = vpop.f32.mrb[11].mxu1 }
 0x13c   : > { %v903_v13 = vpop.f32.mrb[11].mxu0  ;;  %v1237_v14 = vadd.f32 %v1236_v2, %v1209_v4  ;;  %v787_v15 = vadd.f32 %v786_v0, %v1956_v42  ;;  %v789_v16 = vadd.f32 %v788_v5, %v1951_v39  ;;  %v791_v17 = vadd.f32 %v790_v12, %v1956_v42 }
 0x13d   : > { %v1258_v18 = vadd.f32 %v1257_v8, %v1210_v10  ;;  %v964_v19 = vmax.f32 %v898_v11, 0.0  ;;  %v1032_v37 = vadd.s32 80, %v1943_v35  ;;  %v1034_v8 = vadd.s32 96, %v1943_v35 }
 0x13e   : > { %v900_v56 = vadd.f32 %v899_v1, %v787_v15  ;;  %v902_v20 = vadd.f32 %v901_v7, %v789_v16  ;;  %v904_v21 = vadd.f32 %v903_v13, %v791_v17  ;;  %v2055_v7 = vadd.s32 %v1953_v40, %v1033_v38 }
 0x13f   : > { %996 = vst [vmem:[%s1677_s28 + $0x40] sm:$0xff] %v964_v19  ;;  %v1111_v22 = vsel %vm1059_vm5, %v964_v19, 0.0  ;;  %v2052_v43 = vadd.s32 %v1953_v40, %v1032_v37  ;;  %v2077_v47 = vadd.s32 %v1953_v40, %v1034_v8 }
 0x140   : > { %v1139_v25 = vadd.f32 %v1138_v3, %v1111_v22  ;;  %v1211_v26 = vmul.f32 %v1111_v22, %v1111_v22  ;;  %v965_v27 = vmax.f32 %v900_v56, 0.0  ;;  %v966_v28 = vmax.f32 %v902_v20, 0.0  ;;  %v794_v29 = vpop.f32.mrb[12].mxu1 }
 0x141   : > { %v907_v30 = vpop.f32.mrb[12].mxu0  ;;  %v967_v31 = vmax.f32 %v904_v21, 0.0  ;;  %v795_v32 = vadd.f32 %v794_v29, %v1951_v39  ;;  %v796_v33 = vpop.f32.mrb[13].mxu1  ;;  %vm1065_vm11 = vcmp.lt.s32.totalorder %v2052_v43, 256  ;;  %vm1066_vm12 = vcmp.lt.s32.totalorder %v2055_v7, 256 }
 0x142   : > { %v909_v36 = vpop.f32.mrb[13].mxu0  ;;  %v1238_v41 = vadd.f32 %v1237_v14, %v1211_v26  ;;  %997 = vst [vmem:[%s1677_s28 + $0x48] sm:$0xff] %v965_v27  ;;  %v1112_v44 = vsel %vm1059_vm5, %v965_v27, 0.0  ;;  %998 = vst [vmem:[%s1677_s28 + $0x50] sm:$0xff] %v966_v28  ;;  %v1113_v45 = vsel %vm1060_vm6, %v966_v28, 0.0  ;;  %v797_v48 = vadd.f32 %v796_v33, %v1956_v42  ;;  %v798_v49 = vpop.f32.mrb[14].mxu1 }
 0x143   : > { %v911_v50 = vpop.f32.mrb[14].mxu0  ;;  %v1160_v51 = vadd.f32 %v1159_v9, %v1112_v44  ;;  %v1212_v52 = vmul.f32 %v1112_v44, %v1112_v44  ;;  %v1140_v53 = vadd.f32 %v1139_v25, %v1113_v45  ;;  %v1213_v54 = vmul.f32 %v1113_v45, %v1113_v45  ;;  %999 = vst [vmem:[%s1677_s28 + $0x58] sm:$0xff] %v967_v31  ;;  %v800_v57 = vpop.f32.mrb[15].mxu1 }
 0x144   : > { %v913_v58 = vpop.f32.mrb[15].mxu0  ;;  %v1114_v59 = vsel %vm1060_vm6, %v967_v31, 0.0  ;;  %v908_v6 = vadd.f32 %v907_v30, %v795_v32  ;;  %v910_v60 = vadd.f32 %v909_v36, %v797_v48  ;;  %v799_v61 = vadd.f32 %v798_v49, %v1951_v39 }
 0x145   : > { %v1259_v62 = vadd.f32 %v1258_v18, %v1212_v52  ;;  %v1239_v63 = vadd.f32 %v1238_v41, %v1213_v54  ;;  %v1161_v0 = vadd.f32 %v1160_v51, %v1114_v59  ;;  %v1214_v1 = vmul.f32 %v1114_v59, %v1114_v59 }
 0x146   : > { %v968_v2 = vmax.f32 %v908_v6, 0.0  ;;  %v969_v3 = vmax.f32 %v910_v60, 0.0  ;;  %v912_v4 = vadd.f32 %v911_v50, %v799_v61  ;;  %v801_v55 = vadd.f32 %v800_v57, %v1956_v42 }
 0x147   : > { %v1260_v5 = vadd.f32 %v1259_v62, %v1214_v1  ;;  %v1035_v54 = vadd.s32 104, %v1943_v35  ;;  %v1036_v61 = vadd.s32 112, %v1943_v35  ;;  %vm1067_vm13 = vcmp.lt.s32.totalorder %v2077_v47, 256 }
 0x148   : > { %1000 = vst [vmem:[%s1677_s28 + $0x60] sm:$0xff] %v968_v2  ;;  %v1115_v9 = vsel %vm1061_vm7, %v968_v2, 0.0  ;;  %1001 = vst [vmem:[%s1677_s28 + $0x68] sm:$0xff] %v969_v3  ;;  %v1116_v10 = vsel %vm1061_vm7, %v969_v3, 0.0  ;;  %v970_v11 = vmax.f32 %v912_v4, 0.0  ;;  %v914_v12 = vadd.f32 %v913_v58, %v801_v55  ;;  %v804_v13 = vpop.f32.mrb[16].mxu1 }
 0x149   : > { %v917_v14 = vpop.f32.mrb[16].mxu0  ;;  %v1141_v15 = vadd.f32 %v1140_v53, %v1115_v9  ;;  %v1215_v16 = vmul.f32 %v1115_v9, %v1115_v9  ;;  %v1162_v17 = vadd.f32 %v1161_v0, %v1116_v10  ;;  %v1216_v18 = vmul.f32 %v1116_v10, %v1116_v10  ;;  %v806_v19 = vpop.f32.mrb[17].mxu1 }
 0x14a   : > { %v919_v56 = vpop.f32.mrb[17].mxu0  ;;  %1002 = vst [vmem:[%s1677_s28 + $0x70] sm:$0xff] %v970_v11  ;;  %v1117_v20 = vsel %vm1062_vm8, %v970_v11, 0.0  ;;  %v971_v21 = vmax.f32 %v914_v12, 0.0  ;;  %v805_v22 = vadd.f32 %v804_v13, %v1951_v39  ;;  %v807_v46 = vadd.f32 %v806_v19, %v1956_v42  ;;  %v808_v25 = vpop.f32.mrb[18].mxu1 }
 0x14b   : > { %v921_v26 = vpop.f32.mrb[18].mxu0  ;;  %v1240_v27 = vadd.f32 %v1239_v63, %v1215_v16  ;;  %v1261_v28 = vadd.f32 %v1260_v5, %v1216_v18  ;;  %v1142_v29 = vadd.f32 %v1141_v15, %v1117_v20  ;;  %v1217_v30 = vmul.f32 %v1117_v20, %v1117_v20  ;;  %v810_v31 = vpop.f32.mrb[19].mxu1 }
 0x14c   : > { %v923_v32 = vpop.f32.mrb[19].mxu0  ;;  %1003 = vst [vmem:[%s1677_s28 + $0x78] sm:$0xff] %v971_v21  ;;  %v1118_v33 = vsel %vm1062_vm8, %v971_v21, 0.0  ;;  %v918_v36 = vadd.f32 %v917_v14, %v805_v22  ;;  %v920_v37 = vadd.f32 %v919_v56, %v807_v46  ;;  %v809_v38 = vadd.f32 %v808_v25, %v1951_v39 }
 0x14d   : > { %v1241_v41 = vadd.f32 %v1240_v27, %v1217_v30  ;;  %v1163_v44 = vadd.f32 %v1162_v17, %v1118_v33  ;;  %v1218_v45 = vmul.f32 %v1118_v33, %v1118_v33  ;;  %v811_v48 = vadd.f32 %v810_v31, %v1956_v42 }
 0x14e   : > { %v972_v49 = vmax.f32 %v918_v36, 0.0  ;;  %v973_v50 = vmax.f32 %v920_v37, 0.0  ;;  %v922_v51 = vadd.f32 %v921_v26, %v809_v38  ;;  %v2099_v24 = vadd.s32 %v1953_v40, %v1035_v54 }
 0x14f   : > { %v1262_v52 = vadd.f32 %v1261_v28, %v1218_v45  ;;  %v924_v53 = vadd.f32 %v923_v32, %v811_v48  ;;  %v1037_v37 = vadd.s32 120, %v1943_v35 }
 0x150   : > { %1004 = vst [vmem:[%s1677_s28 + $0x80] sm:$0xff] %v972_v49  ;;  %v1119_v57 = vsel %vm1063_vm9, %v972_v49, 0.0  ;;  %1005 = vst [vmem:[%s1677_s28 + $0x88] sm:$0xff] %v973_v50  ;;  %v1120_v58 = vsel %vm1063_vm9, %v973_v50, 0.0  ;;  %v974_v59 = vmax.f32 %v922_v51, 0.0  ;;  %v814_v6 = vpop.f32.mrb[20].mxu1 }
 0x151   : > { %v927_v60 = vpop.f32.mrb[20].mxu0  ;;  %v1143_v62 = vadd.f32 %v1142_v29, %v1119_v57  ;;  %v1219_v63 = vmul.f32 %v1119_v57, %v1119_v57  ;;  %v1164_v0 = vadd.f32 %v1163_v44, %v1120_v58  ;;  %v1220_v1 = vmul.f32 %v1120_v58, %v1120_v58  ;;  %v816_v2 = vpop.f32.mrb[21].mxu1 }
 0x152   : > { %v929_v3 = vpop.f32.mrb[21].mxu0  ;;  %1006 = vst [vmem:[%s1677_s28 + $0x90] sm:$0xff] %v974_v59  ;;  %v1121_v4 = vsel %vm1064_vm10, %v974_v59, 0.0  ;;  %v975_v55 = vmax.f32 %v924_v53, 0.0  ;;  %v815_v23 = vadd.f32 %v814_v6, %v1951_v39  ;;  %v817_v5 = vadd.f32 %v816_v2, %v1956_v42  ;;  %v818_v8 = vpop.f32.mrb[22].mxu1 }
 0x153   : > { %v931_v9 = vpop.f32.mrb[22].mxu0  ;;  %v1242_v10 = vadd.f32 %v1241_v41, %v1219_v63  ;;  %v1263_v11 = vadd.f32 %v1262_v52, %v1220_v1  ;;  %v1144_v12 = vadd.f32 %v1143_v62, %v1121_v4  ;;  %v1221_v13 = vmul.f32 %v1121_v4, %v1121_v4  ;;  %v820_v14 = vpop.f32.mrb[23].mxu1 }
 0x154   : > { %v933_v15 = vpop.f32.mrb[23].mxu0  ;;  %1007 = vst [vmem:[%s1677_s28 + $0x98] sm:$0xff] %v975_v55  ;;  %v1122_v16 = vsel %vm1064_vm10, %v975_v55, 0.0  ;;  %v928_v17 = vadd.f32 %v927_v60, %v815_v23  ;;  %v930_v18 = vadd.f32 %v929_v3, %v817_v5  ;;  %v819_v19 = vadd.f32 %v818_v8, %v1951_v39 }
 0x155   : > { %v1243_v56 = vadd.f32 %v1242_v10, %v1221_v13  ;;  %v1165_v20 = vadd.f32 %v1164_v0, %v1122_v16  ;;  %v1222_v21 = vmul.f32 %v1122_v16, %v1122_v16  ;;  %v821_v22 = vadd.f32 %v820_v14, %v1956_v42 }
 0x156   : > { %v976_v46 = vmax.f32 %v928_v17, 0.0  ;;  %v977_v25 = vmax.f32 %v930_v18, 0.0  ;;  %v932_v26 = vadd.f32 %v931_v9, %v819_v19  ;;  %v2102_v29 = vadd.s32 %v1953_v40, %v1036_v61 }
 0x157   : > { %v1264_v27 = vadd.f32 %v1263_v11, %v1222_v21  ;;  %v934_v28 = vadd.f32 %v933_v15, %v821_v22  ;;  %vm1068_vm14 = vcmp.lt.s32.totalorder %v2099_v24, 256  ;;  %v1054_v15 = vadd.s32 %v1953_v40, %v1037_v37 }
 0x158   : > { %1008 = vst [vmem:[%s1677_s28 + $0xa0] sm:$0xff] %v976_v46  ;;  %v1123_v30 = vsel %vm1065_vm11, %v976_v46, 0.0  ;;  %1009 = vst [vmem:[%s1677_s28 + $0xa8] sm:$0xff] %v977_v25  ;;  %v1124_v31 = vsel %vm1065_vm11, %v977_v25, 0.0  ;;  %v978_v32 = vmax.f32 %v932_v26, 0.0  ;;  %v824_v33 = vpop.f32.mrb[24].mxu1 }
 0x159   : > { %v937_v36 = vpop.f32.mrb[24].mxu0  ;;  %v1145_v38 = vadd.f32 %v1144_v12, %v1123_v30  ;;  %v1223_v41 = vmul.f32 %v1123_v30, %v1123_v30  ;;  %v1166_v44 = vadd.f32 %v1165_v20, %v1124_v31  ;;  %v1224_v45 = vmul.f32 %v1124_v31, %v1124_v31  ;;  %v826_v48 = vpop.f32.mrb[25].mxu1 }
 0x15a   : > { %v939_v49 = vpop.f32.mrb[25].mxu0  ;;  %1010 = vst [vmem:[%s1677_s28 + $0xb0] sm:$0xff] %v978_v32  ;;  %v1125_v50 = vsel %vm1066_vm12, %v978_v32, 0.0  ;;  %v979_v51 = vmax.f32 %v934_v28, 0.0  ;;  %v825_v43 = vadd.f32 %v824_v33, %v1951_v39  ;;  %v827_v52 = vadd.f32 %v826_v48, %v1956_v42  ;;  %v828_v53 = vpop.f32.mrb[26].mxu1 }
 0x15b   : > { %v941_v54 = vpop.f32.mrb[26].mxu0  ;;  %v1244_v57 = vadd.f32 %v1243_v56, %v1223_v41  ;;  %v1265_v58 = vadd.f32 %v1264_v27, %v1224_v45  ;;  %v1146_v59 = vadd.f32 %v1145_v38, %v1125_v50  ;;  %v1225_v6 = vmul.f32 %v1125_v50, %v1125_v50  ;;  %v830_v60 = vpop.f32.mrb[27].mxu1 }
 0x15c   : > { %v943_v61 = vpop.f32.mrb[27].mxu0  ;;  %1011 = vst [vmem:[%s1677_s28 + $0xb8] sm:$0xff] %v979_v51  ;;  %v1126_v62 = vsel %vm1066_vm12, %v979_v51, 0.0  ;;  %v938_v63 = vadd.f32 %v937_v36, %v825_v43  ;;  %v940_v0 = vadd.f32 %v939_v49, %v827_v52  ;;  %v829_v1 = vadd.f32 %v828_v53, %v1951_v39 }
 0x15d   : > { %v1245_v2 = vadd.f32 %v1244_v57, %v1225_v6  ;;  %v1167_v3 = vadd.f32 %v1166_v44, %v1126_v62  ;;  %v1226_v4 = vmul.f32 %v1126_v62, %v1126_v62  ;;  %v831_v55 = vadd.f32 %v830_v60, %v1956_v42 }
 0x15e   : > { %v980_v23 = vmax.f32 %v938_v63, 0.0  ;;  %v981_v5 = vmax.f32 %v940_v0, 0.0  ;;  %v942_v8 = vadd.f32 %v941_v54, %v829_v1  ;;  %vm1069_vm15 = vcmp.lt.s32.totalorder %v2102_v29, 256 }
 0x15f   : > { %v1266_v9 = vadd.f32 %v1265_v58, %v1226_v4  ;;  %v944_v10 = vadd.f32 %v943_v61, %v831_v55  ;;  %vm1070_vm0 = vcmp.lt.s32.totalorder %v1054_v15, 256 }
 0x160   : > { %1012 = vst [vmem:[%s1677_s28 + $0xc0] sm:$0xff] %v980_v23  ;;  %v1127_v7 = vsel %vm1067_vm13, %v980_v23, 0.0  ;;  %1013 = vst [vmem:[%s1677_s28 + $0xc8] sm:$0xff] %v981_v5  ;;  %v1128_v11 = vsel %vm1067_vm13, %v981_v5, 0.0  ;;  %v982_v12 = vmax.f32 %v942_v8, 0.0  ;;  %v834_v13 = vpop.f32.mrb[28].mxu1 }
 0x161   : > { %v947_v14 = vpop.f32.mrb[28].mxu0  ;;  %v1147_v16 = vadd.f32 %v1146_v59, %v1127_v7  ;;  %v1227_v17 = vmul.f32 %v1127_v7, %v1127_v7  ;;  %v1168_v18 = vadd.f32 %v1167_v3, %v1128_v11  ;;  %v1228_v19 = vmul.f32 %v1128_v11, %v1128_v11  ;;  %v836_v56 = vpop.f32.mrb[29].mxu1 }
 0x162   : > { %v949_v20 = vpop.f32.mrb[29].mxu0  ;;  %1014 = vst [vmem:[%s1677_s28 + $0xd0] sm:$0xff] %v982_v12  ;;  %v1129_v21 = vsel %vm1068_vm14, %v982_v12, 0.0  ;;  %v983_v22 = vmax.f32 %v944_v10, 0.0  ;;  %v835_v47 = vadd.f32 %v834_v13, %v1951_v39  ;;  %v837_v46 = vadd.f32 %v836_v56, %v1956_v42  ;;  %v838_v25 = vpop.f32.mrb[30].mxu1 }
 0x163   : > { %v951_v26 = vpop.f32.mrb[30].mxu0  ;;  %v1246_v27 = vadd.f32 %v1245_v2, %v1227_v17  ;;  %v1267_v40 = vadd.f32 %v1266_v9, %v1228_v19  ;;  %v1148_v28 = vadd.f32 %v1147_v16, %v1129_v21  ;;  %v1229_v30 = vmul.f32 %v1129_v21, %v1129_v21  ;;  %v840_v31 = vpop.f32.mrb[31].mxu1 }
 0x164   : > { %v953_v32 = vpop.f32.mrb[31].mxu0  ;;  %1015 = vst [vmem:[%s1677_s28 + $0xd8] sm:$0xff] %v983_v22  ;;  %v1130_v33 = vsel %vm1068_vm14, %v983_v22, 0.0  ;;  %v948_v36 = vadd.f32 %v947_v14, %v835_v47  ;;  %v950_v37 = vadd.f32 %v949_v20, %v837_v46  ;;  %v839_v38 = vadd.f32 %v838_v25, %v1951_v39 }
 0x165   : > { %v1247_v41 = vadd.f32 %v1246_v27, %v1229_v30  ;;  %v1169_v44 = vadd.f32 %v1168_v18, %v1130_v33  ;;  %v1230_v45 = vmul.f32 %v1130_v33, %v1130_v33  ;;  %v841_v48 = vadd.f32 %v840_v31, %v1956_v42  ;;  %v1135_v33 = vld [vmem:[%s2171_s4] sm:$0x3] }
 0x166   : > { %v984_v49 = vmax.f32 %v948_v36, 0.0  ;;  %v985_v50 = vmax.f32 %v950_v37, 0.0  ;;  %v952_v51 = vadd.f32 %v951_v26, %v839_v38  ;;  %v1627_v8 = vmov 1966171168   ;;  %v1202_v38 = vld [vmem:[%s2172_s5] sm:$0x3] }
 0x167   : > { %v1268_v43 = vadd.f32 %v1267_v40, %v1230_v45  ;;  %v954_v52 = vadd.f32 %v953_v32, %v841_v48  ;;  %v1182_v9 = vunpack.c.l.s4 %v1627_v8 }
 0x168   : > { %1016 = vst [vmem:[%s1677_s28 + $0xe0] sm:$0xff] %v984_v49  ;;  %v1131_v24 = vsel %vm1069_vm15, %v984_v49, 0.0  ;;  %1017 = vst [vmem:[%s1677_s28 + $0xe8] sm:$0xff] %v985_v50  ;;  %v1132_v39 = vsel %vm1069_vm15, %v985_v50, 0.0  ;;  %v986_v53 = vmax.f32 %v952_v51, 0.0 }
 0x169   : > { %v1149_v54 = vadd.f32 %v1148_v28, %v1131_v24  ;;  %v1231_v57 = vmul.f32 %v1131_v24, %v1131_v24  ;;  %v1170_v42 = vadd.f32 %v1169_v44, %v1132_v39  ;;  %v1232_v58 = vmul.f32 %v1132_v39, %v1132_v39 }
 0x16a   : > { %1018 = vst [vmem:[%s1677_s28 + $0xf0] sm:$0xff] %v986_v53  ;;  %v1133_v59 = vsel %vm1070_vm0, %v986_v53, 0.0  ;;  %v987_v6 = vmax.f32 %v954_v52, 0.0  ;;  %v1183_v15 = vunpack.c.0.s8 %v1182_v9 }
 0x16b   : > { %v1248_v60 = vadd.f32 %v1247_v41, %v1231_v57  ;;  %v1269_v61 = vadd.f32 %v1268_v43, %v1232_v58  ;;  %v1150_v62 = vadd.f32 %v1149_v54, %v1133_v59  ;;  %v1233_v63 = vmul.f32 %v1133_v59, %v1133_v59 }
 0x16c   : > { %1019 = vst [vmem:[%s1677_s28 + $0xf8] sm:$0xff] %v987_v6  ;;  %v1134_v0 = vsel %vm1070_vm0, %v987_v6, 0.0  ;;  %v1186_v27 = vsub.s32 %v1183_v15, %v1943_v35 }
 0x16d   : > { %v1151_v1 = vrot.slane %v1150_v62, 4  ;;  %v1249_v2 = vadd.f32 %v1248_v60, %v1233_v63  ;;  %v1171_v29 = vadd.f32 %v1170_v42, %v1134_v0  ;;  %v1234_v3 = vmul.f32 %v1134_v0, %v1134_v0 }
 0x16f   : > { %v1152_v4 = vadd.f32 %v1151_v1, %v1150_v62  ;;  %v1250_v55 = vrot.slane %v1249_v2, 4  ;;  %v1172_v23 = vrot.slane %v1171_v29, 4  ;;  %v1270_v5 = vadd.f32 %v1269_v61, %v1234_v3 }
 0x171   : > { %v1153_v10 = vrot.slane %v1152_v4, 2  ;;  %v1251_v7 = vadd.f32 %v1250_v55, %v1249_v2  ;;  %v1173_v11 = vadd.f32 %v1172_v23, %v1171_v29  ;;  %v1271_v12 = vrot.slane %v1270_v5, 4 }
 0x173   : > { %v1154_v13 = vadd.f32 %v1153_v10, %v1152_v4  ;;  %v1252_v14 = vrot.slane %v1251_v7, 2  ;;  %v1174_v16 = vrot.slane %v1173_v11, 2  ;;  %v1272_v17 = vadd.f32 %v1271_v12, %v1270_v5 }
 0x175   : > { %v1155_v18 = vrot.slane %v1154_v13, 1  ;;  %v1253_v19 = vadd.f32 %v1252_v14, %v1251_v7  ;;  %v1175_v56 = vadd.f32 %v1174_v16, %v1173_v11  ;;  %v1273_v20 = vrot.slane %v1272_v17, 2 }
 0x177   : > { %v1156_v21 = vadd.f32 %v1155_v18, %v1154_v13  ;;  %v1254_v22 = vrot.slane %v1253_v19, 1  ;;  %v1176_v47 = vrot.slane %v1175_v56, 1  ;;  %v1274_v46 = vadd.f32 %v1273_v20, %v1272_v17 }
 0x179   : > { %v1255_v25 = vadd.f32 %v1254_v22, %v1253_v19  ;;  %v1177_v26 = vadd.f32 %v1176_v47, %v1175_v56  ;;  %v1275_v40 = vrot.slane %v1274_v46, 1 }
 0x17b   : > { %v1180_v28 = vcombine.low %v1156_v21, %v1177_v26  ;;  %v1276_v30 = vadd.f32 %v1275_v40, %v1274_v46 }
 0x17d   : > { %v1187_v31 = vrot.slane %v1180_v28, %v1186_v27  ;;  %v1279_v32 = vcombine.low %v1255_v25, %v1276_v30 }
 0x17f   : > { %v1194_v36 = vrot.slane %v1187_v31, %v1186_v27  ;;  %v1286_v37 = vrot.slane %v1279_v32, %v1186_v27 }
 0x181   : > { %v1196_v41 = vadd.f32 %v1194_v36, %v1135_v33  ;;  %v1293_v44 = vrot.slane %v1286_v37, %v1186_v27 }
 0x183   : > { %1201 = vst.msk [vmem:[%s2171_s4] sm:$0x3] %vm1199_vm1, %v1196_v41  ;;  %v1295_v35 = vadd.f32 %v1293_v44, %v1202_v38 }
 0x185   : > { %1296 = vst.msk [vmem:[%s2172_s5] sm:$0x3] %vm1199_vm1, %v1295_v35 }
 0x186 PF: > { %s16_s18 = sadd.s32 1, %s1624_s18  }
 0x187   : > { %p13_p5 = scmp.ge.s32.totalorder %s16_s18, 4  }
 0x189   :  { %15 = sbr.rel (!%p13_p5) target bundleno = 1 (0x1), region = 82 }

// kernel: generic_net_forward.7
= control target key start
LH: loop header
LB: loop body
LE: loop exit
PB: predicated region body
PF: predicated region fallthrough
CT: control target
= control target key end

     0   :  { %s567_s12 = smov 0   ;;  %s654_s0 = inlined_call_operand.vmem [shape: f32[256,128], index: 0, kind: input, shape index: {}]   ;;  %s655_s1 = inlined_call_operand.vmem [shape: bf16[128,128], index: 1, kind: input, shape index: {}]   ;;  %s656_s2 = inlined_call_operand.vmem [shape: f32[1,128], index: 2, kind: input, shape index: {}]   ;;  %s657_s3 = inlined_call_operand.vmem [shape: f32[256,128], index: 3, kind: output, shape index: {}]  }
   0x1 LB: > { %s439_s13 = sadd.s32 4294967295, %s545_s12   ;;  %p443_p0 = scmp.ge.s32.totalorder %s545_s12, 1  ;;  %s545_s12 = sphi %s567_s12, %s13_s12  }
   0x2   : > { %p138_p1 = scmp.lt.s32.totalorder %s545_s12, 3 }
   0x4   : > { %p139_p2 = pnand %p443_p0, %p138_p1 }
   0x5   : > { %v531_v0 = vld [vmem:[%s655_s1] sm:$0xff] (!%p139_p2)   ;;  %s444_s16 = sshll.u32 (!%p139_p2), %s439_s13, 4  ;;  %v532_v1 = vld [vmem:[%s655_s1 + $0x8] sm:$0xff] (!%p139_p2)   ;;  %v533_v2 = vld [vmem:[%s655_s1 + $0x10] sm:$0xff] (!%p139_p2)  }
   0x6   : > { %142 = sbr.rel (%p139_p2) target bundleno = 265 (0x109), region = 32  ;;  %p163_p3 = scmp.lt.s32.totalorder (!%p139_p2), %s444_s16, 31  ;;  %475 = vmatprep.subr.bf16.mxu0 (!%p139_p2), %v531_v0  ;;  %507 = vmatprep.subr.bf16.mxu1 (!%p139_p2), %v531_v0  ;;  %v534_v3 = vld [vmem:[%s655_s1 + $0x18] sm:$0xff] (!%p139_p2)   ;;  %v535_v10 = vld [vmem:[%s655_s1 + $0x20] sm:$0xff] (!%p139_p2)   ;;  %v536_v11 = vld [vmem:[%s655_s1 + $0x28] sm:$0xff] (!%p139_p2)  }
   0x7   : > { %476 = vmatpush3.bf16.msra.mxu0 (!%p139_p2), %v531_v0  ;;  %515 = vmatpush3.bf16.msra.mxu1 (!%p139_p2), %v531_v0  ;;  %v537_v12 = vld [vmem:[%s655_s1 + $0x30] sm:$0xff] (!%p139_p2)   ;;  %v538_v13 = vld [vmem:[%s655_s1 + $0x38] sm:$0xff] (!%p139_p2)   ;;  %v448_v32 = vld [vmem:[%s656_s2] ss:$0 sm:$0xff] (!%p139_p2) }
   0x8   : > { %477 = vmatprep.subr.bf16.mxu0 (!%p139_p2), %v532_v1  ;;  %508 = vmatprep.subr.bf16.mxu1 (!%p139_p2), %v532_v1 }
   0xb   : > { %478 = vmatpush3.bf16.msra.mxu0 (!%p139_p2), %v532_v1  ;;  %516 = vmatpush3.bf16.msra.mxu1 (!%p139_p2), %v532_v1 }
   0xc   : > { %479 = vmatprep.subr.bf16.mxu0 (!%p139_p2), %v533_v2  ;;  %509 = vmatprep.subr.bf16.mxu1 (!%p139_p2), %v533_v2 }
   0xd   : > { %s659_s16 = smov (!%p163_p3, %s444_s16), 31 }
   0xe   : > { %s445_s21 = sshll.u32 %s659_s16, 3 }
   0xf   : > { %s592_s24 = scalar_lea.vmem %s654_s0, %s445_s21  ;;  %480 = vmatpush3.bf16.msra.mxu0 %v533_v2  ;;  %517 = vmatpush3.bf16.msra.mxu1 %v533_v2  ;;  %s633_s13 = scalar_lea.vmem %s657_s3, %s445_s21 }
  0x10   : > { %v175_v4 = vld [vmem:[%s592_s24] sm:$0xff]  ;;  %v176_v5 = vld [vmem:[%s592_s24 + $0x8] sm:$0xff]  ;;  %481 = vmatprep.subr.bf16.mxu0 %v534_v3  ;;  %510 = vmatprep.subr.bf16.mxu1 %v534_v3  ;;  %v177_v14 = vld [vmem:[%s592_s24 + $0x10] sm:$0xff] }
  0x11   : > { %v183_v6 = vld [vmem:[%s592_s24 + $0x40] sm:$0xff]  ;;  %v191_v7 = vpack.c.bf16 %v176_v5, %v175_v4  ;;  %v184_v8 = vld [vmem:[%s592_s24 + $0x48] sm:$0xff]  ;;  %v178_v15 = vld [vmem:[%s592_s24 + $0x18] sm:$0xff] }
  0x12   : > { %v195_v9 = vpack.c.bf16 %v184_v8, %v183_v6  ;;  %v185_v16 = vld [vmem:[%s592_s24 + $0x50] sm:$0xff]  ;;  %v186_v17 = vld [vmem:[%s592_s24 + $0x58] sm:$0xff]  ;;  %v179_v18 = vld [vmem:[%s592_s24 + $0x20] sm:$0xff]  ;;  %v192_v22 = vpack.c.bf16 %v178_v15, %v177_v14 }
  0x13   : > { %491 = vmatprep.mubr.bf16.mxu0 %v191_v7  ;;  %482 = vmatpush3.bf16.msra.mxu0 %v534_v3  ;;  %v180_v19 = vld [vmem:[%s592_s24 + $0x28] sm:$0xff]  ;;  %v187_v20 = vld [vmem:[%s592_s24 + $0x60] sm:$0xff]  ;;  %v196_v23 = vpack.c.bf16 %v186_v17, %v185_v16  ;;  %v181_v26 = vld [vmem:[%s592_s24 + $0x30] sm:$0xff] }
  0x14   : > { %499 = vmatprep.mubr.bf16.mxu1 %v195_v9  ;;  %518 = vmatpush3.bf16.msra.mxu1 %v534_v3  ;;  %v188_v21 = vld [vmem:[%s592_s24 + $0x68] sm:$0xff]  ;;  %v193_v24 = vpack.c.bf16 %v180_v19, %v179_v18  ;;  %v182_v27 = vld [vmem:[%s592_s24 + $0x38] sm:$0xff]  ;;  %v189_v28 = vld [vmem:[%s592_s24 + $0x70] sm:$0xff] }
  0x15   : > { %483 = vmatprep.subr.bf16.mxu0 %v535_v10  ;;  %511 = vmatprep.subr.bf16.mxu1 %v535_v10  ;;  %v197_v25 = vpack.c.bf16 %v188_v21, %v187_v20  ;;  %v190_v29 = vld [vmem:[%s592_s24 + $0x78] sm:$0xff]  ;;  %v194_v30 = vpack.c.bf16 %v182_v27, %v181_v26 }
  0x16   : > { %v198_v31 = vpack.c.bf16 %v190_v29, %v189_v28 }
  0x17   : > { %484 = vmatpush3.bf16.msra.mxu0 %v535_v10 }
  0x18   : > { %519 = vmatpush3.bf16.msra.mxu1 %v535_v10  ;;  %485 = vmatprep.subr.bf16.mxu0 %v536_v11 }
  0x19   : > { %512 = vmatprep.subr.bf16.mxu1 %v536_v11 }
  0x1b   : > { %486 = vmatpush3.bf16.msra.mxu0 %v536_v11 }
  0x1c   : > { %520 = vmatpush3.bf16.msra.mxu1 %v536_v11  ;;  %487 = vmatprep.subr.bf16.mxu0 %v537_v12 }
  0x1d   : > { %513 = vmatprep.subr.bf16.mxu1 %v537_v12 }
  0x1f   : > { %488 = vmatpush3.bf16.msra.mxu0 %v537_v12 }
  0x20   : > { %521 = vmatpush3.bf16.msra.mxu1 %v537_v12  ;;  %489 = vmatprep.subr.bf16.mxu0 %v538_v13 }
  0x21   : > { %514 = vmatprep.subr.bf16.mxu1 %v538_v13 }
  0x23   : > { %490 = vmatpush3.bf16.msra.mxu0 %v538_v13 }
  0x24   : > { %522 = vmatpush3.bf16.msra.mxu1 %v538_v13 }
  0x26   : > { %492 = vmatmul.mubr.bf16.vlgmr.msra.gmra.mrb[0].mxu0 %v192_v22 }
  0x27   : > { %500 = vmatmul.mubr.bf16.vlgmr.msra.gmra.mrb[0].mxu1 %v196_v23  ;;  %495 = vmatprep.mubr.bf16.mxu0 %v193_v24 }
  0x28   : > { %503 = vmatprep.mubr.bf16.mxu1 %v197_v25 }
  0x2e   : > { %496 = vmatmul.mubr.bf16.gmra.mrb[4].mxu0 %v194_v30 }
  0x2f   : > { %504 = vmatmul.mubr.bf16.gmra.mrb[4].mxu1 %v198_v31 }
  0xf9   : > { %v493_v33 = vpop.f32.mrb[0].mxu0 }
  0xfa   : > { %v501_v34 = vpop.f32.mrb[0].mxu1  ;;  %v313_v35 = vadd.f32 %v493_v33, %v448_v32  ;;  %v304_v37 = vpop.f32.mrb[1].mxu0 }
  0xfb   : > { %v345_v36 = vadd.f32 %v501_v34, %v448_v32  ;;  %v336_v38 = vpop.f32.mrb[1].mxu1  ;;  %v305_v39 = vadd.f32 %v448_v32, %v304_v37  ;;  %v494_v41 = vpop.f32.mrb[2].mxu0 }
  0xfc   : > { %v337_v40 = vadd.f32 %v448_v32, %v336_v38  ;;  %v502_v42 = vpop.f32.mrb[2].mxu1  ;;  %369 = vst [vmem:[%s633_s13 + $0x10] sm:$0xff] %v313_v35  ;;  %v316_v43 = vadd.f32 %v494_v41, %v448_v32  ;;  %v307_v45 = vpop.f32.mrb[3].mxu0 }
  0xfd   : > { %377 = vst [vmem:[%s633_s13 + $0x50] sm:$0xff] %v345_v36  ;;  %v348_v44 = vadd.f32 %v502_v42, %v448_v32  ;;  %v339_v46 = vpop.f32.mrb[3].mxu1  ;;  %367 = vst [vmem:[%s633_s13] sm:$0xff] %v305_v39  ;;  %v308_v47 = vadd.f32 %v448_v32, %v307_v45 }
  0xfe   : > { %375 = vst [vmem:[%s633_s13 + $0x40] sm:$0xff] %v337_v40  ;;  %v340_v48 = vadd.f32 %v448_v32, %v339_v46  ;;  %370 = vst [vmem:[%s633_s13 + $0x18] sm:$0xff] %v316_v43 }
  0xff   : > { %378 = vst [vmem:[%s633_s13 + $0x58] sm:$0xff] %v348_v44  ;;  %368 = vst [vmem:[%s633_s13 + $0x8] sm:$0xff] %v308_v47 }
 0x100   : > { %376 = vst [vmem:[%s633_s13 + $0x48] sm:$0xff] %v340_v48 }
 0x101   : > { %v497_v49 = vpop.f32.mrb[4].mxu0 }
 0x102   : > { %v505_v50 = vpop.f32.mrb[4].mxu1  ;;  %v329_v51 = vadd.f32 %v497_v49, %v448_v32  ;;  %v320_v53 = vpop.f32.mrb[5].mxu0 }
 0x103   : > { %v361_v52 = vadd.f32 %v505_v50, %v448_v32  ;;  %v352_v54 = vpop.f32.mrb[5].mxu1  ;;  %v321_v55 = vadd.f32 %v448_v32, %v320_v53  ;;  %v498_v57 = vpop.f32.mrb[6].mxu0 }
 0x104   : > { %v353_v56 = vadd.f32 %v448_v32, %v352_v54  ;;  %v506_v58 = vpop.f32.mrb[6].mxu1  ;;  %373 = vst [vmem:[%s633_s13 + $0x30] sm:$0xff] %v329_v51  ;;  %v332_v59 = vadd.f32 %v498_v57, %v448_v32  ;;  %v323_v61 = vpop.f32.mrb[7].mxu0 }
 0x105   : > { %381 = vst [vmem:[%s633_s13 + $0x70] sm:$0xff] %v361_v52  ;;  %v364_v60 = vadd.f32 %v506_v58, %v448_v32  ;;  %v355_v62 = vpop.f32.mrb[7].mxu1  ;;  %371 = vst [vmem:[%s633_s13 + $0x20] sm:$0xff] %v321_v55  ;;  %v324_v63 = vadd.f32 %v448_v32, %v323_v61 }
 0x106   : > { %379 = vst [vmem:[%s633_s13 + $0x60] sm:$0xff] %v353_v56  ;;  %v356_v0 = vadd.f32 %v448_v32, %v355_v62  ;;  %374 = vst [vmem:[%s633_s13 + $0x38] sm:$0xff] %v332_v59 }
 0x107   : > { %382 = vst [vmem:[%s633_s13 + $0x78] sm:$0xff] %v364_v60  ;;  %372 = vst [vmem:[%s633_s13 + $0x28] sm:$0xff] %v324_v63 }
 0x108   : > { %380 = vst [vmem:[%s633_s13 + $0x68] sm:$0xff] %v356_v0 }
 0x109 PF: > { %s13_s12 = sadd.s32 1, %s545_s12  }
 0x10a   : > { %p10_p4 = scmp.ge.s32.totalorder %s13_s12, 4  }
 0x10c   :  { %12 = sbr.rel (!%p10_p4) target bundleno = 1 (0x1), region = 62 }

</bundles_post_ra>
